<compile_context>
chip_gen: v5e
topology: v5e:2x2
jax: 0.10.0
libtpu: 0.0.40
codegen_flags: <defaults>
</compile_context>

<pallas_src>
import jax
import jax.numpy as jnp
from jax.experimental import pallas as pl
from jax.experimental.pallas import tpu as pltpu


# --------------------------------------------------------------------------- kernel
def fcnconv3_kernel(x_ref, w1_ref, s1_ref, w2_ref, s2_ref, w3_ref, s3_ref,
                    out_ref, xpad_ref, mid_ref):
    """One grid program processes a batch tile, fully resident in VMEM.

    x_ref   : (D, bt, Lin)        bf16  unpadded lane-packed input, Lin = w_pack*H*Cin
    w*_ref  : (3, Lin|Lout, Lout) bf16  banded weights (kH taps, H-pad, W-pack, BN scale)
    s*_ref  : (1, Lout)           f32   folded conv-bias + BN shift (per output lane)
    out_ref : (D, bt, Lout)       f32
    xpad_ref: (D+2, bt, Lin)      bf16  scratch: input with zeroed D-halo rows
    mid_ref : (D+2, bt, Lout)     bf16  scratch: chained intermediates with D-halo
    """
    D, bt, Lin = x_ref.shape
    Lout = out_ref.shape[2]

    def conv_bn_relu(src_ref, w_ref, s_ref):
        k_in = src_ref.shape[2]
        # kd = 0 tap initializes the accumulator directly (no zero-fill + VPU add).
        acc = jnp.dot(src_ref[0:D].reshape(D * bt, k_in), w_ref[0],
                      preferred_element_type=jnp.float32)
        for kd in (1, 2):
            acc = acc + jnp.dot(src_ref[kd:kd + D].reshape(D * bt, k_in),
                                w_ref[kd], preferred_element_type=jnp.float32)
        # folded bias + BN shift, ReLU (f32)
        return jnp.maximum(acc + s_ref[...], 0.0)

    # Stage the input into a D-halo'd scratch (replaces wrapper-side jnp.pad);
    # only the two halo rows are zeroed, the interior is a straight copy.
    xpad_ref[0:1] = jnp.zeros((1, bt, Lin), xpad_ref.dtype)
    xpad_ref[D + 1:D + 2] = jnp.zeros((1, bt, Lin), xpad_ref.dtype)
    xpad_ref[1:D + 1] = x_ref[...]

    # ---- conv1 + BN1 + ReLU ----
    h = conv_bn_relu(xpad_ref, w1_ref, s1_ref)
    zrow = jnp.zeros((1, bt, Lout), mid_ref.dtype)
    mid_ref[0:1] = zrow
    mid_ref[D + 1:D + 2] = zrow
    mid_ref[1:D + 1] = h.reshape(D, bt, Lout).astype(mid_ref.dtype)

    # ---- conv2 + BN2 + ReLU ----
    h = conv_bn_relu(mid_ref, w2_ref, s2_ref)
    mid_ref[1:D + 1] = h.reshape(D, bt, Lout).astype(mid_ref.dtype)

    # ---- conv3 + BN3 + ReLU ----
    h = conv_bn_relu(mid_ref, w3_ref, s3_ref)
    out_ref[...] = h.reshape(D, bt, Lout)


# --------------------------------------------------------------------------- wrapper
def _fold_layer(w, b, gamma, beta, mean, var, H, w_pack, eps=1e-5):
    """Fold conv-bias + inference BN + W-packing into banded lane-packed weights.

    w: (3, 3, Cin, Cout) taps over (kD, kH).
    Returns banded weights (3, w_pack*H*Cin, w_pack*H*Cout) bf16 and
    shift (1, w_pack*H*Cout) f32.
    Band (per kD tap): M[(h_in*Cin+cin), (h_out*Cout+cout)] = w[kd,kh,cin,cout]*scale[cout]
    with h_in = h_out + kh - 1 (clip -> zero padding along H); the w_pack lanes are
    independent -> block-diagonal via kron(I_wpack, M).
    """
    Cin, Cout = w.shape[2], w.shape[3]
    scale = gamma / jnp.sqrt(var + eps)
    w_eff = w * scale[None, None, None, :]
    shift = beta + (b - mean) * scale
    bands = []
    for kd in range(3):
        M = jnp.zeros((H * Cin, H * Cout), jnp.float32)
        for kh in range(3):
            S = jnp.eye(H, H, k=1 - kh, dtype=jnp.float32)   # h_in - h_out == kh - 1
            M = M + jnp.kron(S, w_eff[kd, kh])
        if w_pack > 1:
            M = jnp.kron(jnp.eye(w_pack, dtype=jnp.float32), M)
        bands.append(M)
    banded = jnp.stack(bands).astype(jnp.bfloat16)
    shift_v = jnp.tile(shift, w_pack * H).reshape(1, w_pack * H * Cout).astype(jnp.float32)
    return banded, shift_v


def _pick_block_b(B):
    """Batch tile: multiple of 16 (bf16 sublanes) toward 64-256 rows, with grid >= 2
    when possible (both v7x TensorCores); fall back gracefully for tiny B."""
    for step, cap in ((16, 256), (8, 256)):
        best = None
        for c in range(step, min(B // 2, cap) + 1, step):
            if B % c == 0:
                best = c
        if best is not None:
            return best
    return B


def fcnconv3_forward(x, params, eps=1e-5, block_b=None, w_pack=None):
    """x: (N, Cin, D, H, W) float32 (PyTorch NCDHW). Returns (N, Cout, D, H, W) float32."""
    N, Cin, D, H, W = x.shape
    Cout = params["w1"].shape[-1]

    if w_pack is None:
        # 256-wide lanes fill the v6e/v7x MXU; use w_pack=1 on v5e (128-wide MXU).
        w_pack = 2 if (W % 2 == 0 and H * max(Cin, Cout) <= 128) else 1
    assert W % w_pack == 0
    Wp = W // w_pack
    B = N * Wp
    Lin, Lout = w_pack * H * Cin, w_pack * H * Cout

    w1, s1 = _fold_layer(params["w1"], params["b1"], params["g1"], params["be1"],
                         params["m1"], params["v1"], H, w_pack, eps)
    w2, s2 = _fold_layer(params["w2"], params["b2"], params["g2"], params["be2"],
                         params["m2"], params["v2"], H, w_pack, eps)
    w3, s3 = _fold_layer(params["w3"], params["b3"], params["g3"], params["be3"],
                         params["m3"], params["v3"], H, w_pack, eps)

    # NCDHW -> D-major lane-packed (D, N*Wp, w_pack*H*Cin); no padding here (the D
    # halo is handled in-kernel), only one layout pass + bf16 cast.
    x5 = jnp.transpose(x, (0, 4, 2, 3, 1))                      # (N, W, D, H, Cin)
    x6 = x5.reshape(N, Wp, w_pack, D, H, Cin)
    xl = jnp.transpose(x6, (3, 0, 1, 2, 4, 5)).reshape(D, B, Lin).astype(jnp.bfloat16)

    if block_b is None:
        block_b = _pick_block_b(B)
    assert B % block_b == 0, "batch*W/w_pack must be divisible by the batch tile"
    grid = (B // block_b,)

    def full3(shp):
        return pl.BlockSpec(shp, lambda i: (0, 0, 0))

    def full2(shp):
        return pl.BlockSpec(shp, lambda i: (0, 0))

    out = pl.pallas_call(
        fcnconv3_kernel,
        out_shape=jax.ShapeDtypeStruct((D, B, Lout), jnp.float32),
        grid_spec=pltpu.PrefetchScalarGridSpec(
            num_scalar_prefetch=0,
            grid=grid,
            in_specs=[
                pl.BlockSpec((D, block_b, Lin), lambda i: (0, i, 0)),
                full3(w1.shape), full2(s1.shape),
                full3(w2.shape), full2(s2.shape),
                full3(w3.shape), full2(s3.shape),
            ],
            out_specs=pl.BlockSpec((D, block_b, Lout), lambda i: (0, i, 0)),
            scratch_shapes=[
                pltpu.VMEM((D + 2, block_b, Lin), jnp.bfloat16),
                pltpu.VMEM((D + 2, block_b, Lout), jnp.bfloat16),
            ],
        ),
        compiler_params=pltpu.CompilerParams(
            dimension_semantics=("parallel",),
            vmem_limit_bytes=48 * 1024 * 1024,   # safe on v7x (64 MiB phys), ample on v5e/v6e
        ),
    )(xl, w1, s1, w2, s2, w3, s3)

    # (D, B, w_pack*H*Cout) -> (N, Cout, D, H, W)
    o = out.reshape(D, N, Wp, w_pack, H, Cout)
    o = jnp.transpose(o, (1, 5, 0, 4, 2, 3))                    # (N, Cout, D, H, Wp, w2)
    return o.reshape(N, Cout, D, H, W)


# --------------------------------------------------------------------------- reference
def fcnconv3_reference(x, params, eps=1e-5):
    """Pure-JAX reference with the same (bf16 matmul inputs, f32 accumulate) numerics."""
    N, Cin, D, H, W = x.shape

    def rnd(a):  # bf16 rounding of matmul inputs, math stays f32
        return a.astype(jnp.bfloat16).astype(jnp.float32)

    def layer(inp, w, b, g, be, m, v):
        s = g / jnp.sqrt(v + eps)
        w_eff = rnd(w * s[None, None, None, :])
        shift = (be + (b - m) * s).astype(jnp.float32)
        y = jax.lax.conv_general_dilated(
            inp, w_eff, window_strides=(1, 1), padding=((1, 1), (1, 1)),
            dimension_numbers=("NHWC", "HWIO", "NHWC"))
        return jnp.maximum(y + shift[None, None, None, :], 0.0)

    h = jnp.transpose(x, (0, 4, 2, 3, 1)).reshape(N * W, D, H, Cin)
    h = rnd(h)
    h = layer(h, params["w1"], params["b1"], params["g1"], params["be1"],
              params["m1"], params["v1"])
    h = rnd(h)
    h = layer(h, params["w2"], params["b2"], params["g2"], params["be2"],
              params["m2"], params["v2"])
    h = rnd(h)
    h = layer(h, params["w3"], params["b3"], params["g3"], params["be3"],
              params["m3"], params["v3"])
    Cout = params["w3"].shape[-1]
    h = h.reshape(N, W, D, H, Cout)
    return jnp.transpose(h, (0, 4, 2, 3, 1))


# --------------------------------------------------------------------------- main
if __name__ == "__main__":
    key = jax.random.PRNGKey(0)
    N, Cin, Cout = 2, 4, 4
    D, H, W = 16, 32, 8          # w_pack=2 -> lane width 256 (fills v6e/v7x MXU)
    ks = iter(jax.random.split(key, 32))

    x = jax.random.normal(next(ks), (N, Cin, D, H, W), jnp.float32)

    def conv_params(cin, cout):
        return {
            "w": 0.1 * jax.random.normal(next(ks), (3, 3, cin, cout), jnp.float32),
            "b": 0.1 * jax.random.normal(next(ks), (cout,), jnp.float32),
            "g": 1.0 + 0.1 * jax.random.normal(next(ks), (cout,), jnp.float32),
            "be": 0.1 * jax.random.normal(next(ks), (cout,), jnp.float32),
            "m": 0.1 * jax.random.normal(next(ks), (cout,), jnp.float32),
            "v": 1.0 + 0.1 * jax.random.uniform(next(ks), (cout,), jnp.float32),
        }

    layers = (conv_params(Cin, Cout), conv_params(Cout, Cout), conv_params(Cout, Cout))
    params = {}
    for idx, p in enumerate(layers, start=1):
        params[f"w{idx}"] = p["w"]; params[f"b{idx}"] = p["b"]
        params[f"g{idx}"] = p["g"]; params[f"be{idx}"] = p["be"]
        params[f"m{idx}"] = p["m"]; params[f"v{idx}"] = p["v"]

    out = jax.block_until_ready(fcnconv3_forward(x, params))
    ref = jax.block_until_ready(fcnconv3_reference(x, params))

    assert out.shape == (N, Cout, D, H, W)
    max_err = float(jnp.max(jnp.abs(out - ref)))
    assert jnp.allclose(out, ref, atol=2e-2, rtol=2e-2), f"mismatch, max abs err = {max_err}"

    print("KERNEL_OK")
</pallas_src>

<mosaic_0001>
module attributes {stable_mosaic.version = 11 : i64} {
  func.func @fcnconv3_kernel(%arg0: i32, %arg1: memref<16x8x256xbf16, #tpu.memory_space<vmem>>, %arg2: memref<3x256x256xbf16, #tpu.memory_space<vmem>>, %arg3: memref<1x256xf32, #tpu.memory_space<vmem>>, %arg4: memref<3x256x256xbf16, #tpu.memory_space<vmem>>, %arg5: memref<1x256xf32, #tpu.memory_space<vmem>>, %arg6: memref<3x256x256xbf16, #tpu.memory_space<vmem>>, %arg7: memref<1x256xf32, #tpu.memory_space<vmem>>, %arg8: memref<16x8x256xf32, #tpu.memory_space<vmem>>, %arg9: memref<18x8x256xbf16, #tpu.memory_space<vmem>>, %arg10: memref<18x8x256xbf16, #tpu.memory_space<vmem>>) attributes {dimension_semantics = [#tpu.dimension_semantics<parallel>], iteration_bounds = array<i64: 1>, scalar_prefetch = 0 : i64, scratch_operands = 2 : i64, tpu.core_type = #tpu.core_type<tc>, window_params = [{transform_indices = @transform_0, window_bounds = array<i64: 16, 8, 256>}, {pipeline_mode = #tpu.pipeline_mode<synchronous>, transform_indices = @transform_1, window_bounds = array<i64: 3, 256, 256>}, {pipeline_mode = #tpu.pipeline_mode<synchronous>, transform_indices = @transform_2, window_bounds = array<i64: 1, 256>}, {pipeline_mode = #tpu.pipeline_mode<synchronous>, transform_indices = @transform_3, window_bounds = array<i64: 3, 256, 256>}, {pipeline_mode = #tpu.pipeline_mode<synchronous>, transform_indices = @transform_4, window_bounds = array<i64: 1, 256>}, {pipeline_mode = #tpu.pipeline_mode<synchronous>, transform_indices = @transform_5, window_bounds = array<i64: 3, 256, 256>}, {pipeline_mode = #tpu.pipeline_mode<synchronous>, transform_indices = @transform_6, window_bounds = array<i64: 1, 256>}, {transform_indices = @transform_7, window_bounds = array<i64: 16, 8, 256>}]} {
    %cst = arith.constant 0.000000e+00 : bf16
    %0 = vector.broadcast %cst : bf16 to vector<1x8x256xbf16>
    %c0 = arith.constant 0 : index
    %c0_0 = arith.constant 0 : index
    %c0_1 = arith.constant 0 : index
    %1 = vector.load %arg9[%c0, %c0_0, %c0_1] : memref<18x8x256xbf16, #tpu.memory_space<vmem>>, vector<1x8x256xbf16>
    tpu.vector_store %arg9[%c0, %c0_0, %c0_1], %0 {strides = array<i32>} : memref<18x8x256xbf16, #tpu.memory_space<vmem>>, vector<1x8x256xbf16>,
    %cst_2 = arith.constant 0.000000e+00 : bf16
    %2 = vector.broadcast %cst_2 : bf16 to vector<1x8x256xbf16>
    %c17 = arith.constant 17 : index
    %c0_3 = arith.constant 0 : index
    %c0_4 = arith.constant 0 : index
    %3 = vector.load %arg9[%c17, %c0_3, %c0_4] : memref<18x8x256xbf16, #tpu.memory_space<vmem>>, vector<1x8x256xbf16>
    tpu.vector_store %arg9[%c17, %c0_3, %c0_4], %2 {strides = array<i32>} : memref<18x8x256xbf16, #tpu.memory_space<vmem>>, vector<1x8x256xbf16>,
    %c0_5 = arith.constant 0 : index
    %c0_6 = arith.constant 0 : index
    %c0_7 = arith.constant 0 : index
    %4 = vector.load %arg1[%c0_5, %c0_6, %c0_7] : memref<16x8x256xbf16, #tpu.memory_space<vmem>>, vector<16x8x256xbf16>
    %c1 = arith.constant 1 : index
    %c0_8 = arith.constant 0 : index
    %c0_9 = arith.constant 0 : index
    %5 = vector.load %arg9[%c1, %c0_8, %c0_9] : memref<18x8x256xbf16, #tpu.memory_space<vmem>>, vector<16x8x256xbf16>
    tpu.vector_store %arg9[%c1, %c0_8, %c0_9], %4 {strides = array<i32>} : memref<18x8x256xbf16, #tpu.memory_space<vmem>>, vector<16x8x256xbf16>,
    %c0_10 = arith.constant 0 : index
    %c0_11 = arith.constant 0 : index
    %c0_12 = arith.constant 0 : index
    %6 = vector.load %arg9[%c0_10, %c0_11, %c0_12] : memref<18x8x256xbf16, #tpu.memory_space<vmem>>, vector<16x8x256xbf16>
    %7 = vector.shape_cast %6 : vector<16x8x256xbf16> to vector<128x256xbf16>
    %c0_13 = arith.constant 0 : index
    %c0_14 = arith.constant 0 : index
    %c0_15 = arith.constant 0 : index
    %8 = vector.load %arg2[%c0_13, %c0_14, %c0_15] : memref<3x256x256xbf16, #tpu.memory_space<vmem>>, vector<1x256x256xbf16>
    %9 = vector.shape_cast %8 : vector<1x256x256xbf16> to vector<256x256xbf16>
    %cst_16 = arith.constant dense<0.000000e+00> : vector<128x256xf32>
    %10 = tpu.matmul %7, %9, %cst_16 {dimension_numbers = #tpu.dot_dimension_numbers<[1], [0], [0], [1], [0, 0, 1, 1], [], []>} : vector<128x256xbf16>, vector<256x256xbf16>, vector<128x256xf32> -> vector<128x256xf32>
    %c1_17 = arith.constant 1 : index
    %c0_18 = arith.constant 0 : index
    %c0_19 = arith.constant 0 : index
    %11 = vector.load %arg9[%c1_17, %c0_18, %c0_19] : memref<18x8x256xbf16, #tpu.memory_space<vmem>>, vector<16x8x256xbf16>
    %12 = vector.shape_cast %11 : vector<16x8x256xbf16> to vector<128x256xbf16>
    %c1_20 = arith.constant 1 : index
    %c0_21 = arith.constant 0 : index
    %c0_22 = arith.constant 0 : index
    %13 = vector.load %arg2[%c1_20, %c0_21, %c0_22] : memref<3x256x256xbf16, #tpu.memory_space<vmem>>, vector<1x256x256xbf16>
    %14 = vector.shape_cast %13 : vector<1x256x256xbf16> to vector<256x256xbf16>
    %cst_23 = arith.constant dense<0.000000e+00> : vector<128x256xf32>
    %15 = tpu.matmul %12, %14, %cst_23 {dimension_numbers = #tpu.dot_dimension_numbers<[1], [0], [0], [1], [0, 0, 1, 1], [], []>} : vector<128x256xbf16>, vector<256x256xbf16>, vector<128x256xf32> -> vector<128x256xf32>
    %16 = arith.addf %10, %15 : vector<128x256xf32>
    %c2 = arith.constant 2 : index
    %c0_24 = arith.constant 0 : index
    %c0_25 = arith.constant 0 : index
    %17 = vector.load %arg9[%c2, %c0_24, %c0_25] : memref<18x8x256xbf16, #tpu.memory_space<vmem>>, vector<16x8x256xbf16>
    %18 = vector.shape_cast %17 : vector<16x8x256xbf16> to vector<128x256xbf16>
    %c2_26 = arith.constant 2 : index
    %c0_27 = arith.constant 0 : index
    %c0_28 = arith.constant 0 : index
    %19 = vector.load %arg2[%c2_26, %c0_27, %c0_28] : memref<3x256x256xbf16, #tpu.memory_space<vmem>>, vector<1x256x256xbf16>
    %20 = vector.shape_cast %19 : vector<1x256x256xbf16> to vector<256x256xbf16>
    %cst_29 = arith.constant dense<0.000000e+00> : vector<128x256xf32>
    %21 = tpu.matmul %18, %20, %cst_29 {dimension_numbers = #tpu.dot_dimension_numbers<[1], [0], [0], [1], [0, 0, 1, 1], [], []>} : vector<128x256xbf16>, vector<256x256xbf16>, vector<128x256xf32> -> vector<128x256xf32>
    %22 = arith.addf %16, %21 : vector<128x256xf32>
    %c0_30 = arith.constant 0 : index
    %c0_31 = arith.constant 0 : index
    %23 = vector.load %arg3[%c0_30, %c0_31] : memref<1x256xf32, #tpu.memory_space<vmem>>, vector<1x256xf32>
    %24 = vector.broadcast %23 : vector<1x256xf32> to vector<128x256xf32>
    %25 = arith.addf %22, %24 : vector<128x256xf32>
    %cst_32 = arith.constant 0.000000e+00 : f32
    %26 = vector.broadcast %cst_32 : f32 to vector<128x256xf32>
    %27 = arith.maximumf %25, %26 : vector<128x256xf32>
    %cst_33 = arith.constant 0.000000e+00 : bf16
    %28 = vector.broadcast %cst_33 : bf16 to vector<1x8x256xbf16>
    %c0_34 = arith.constant 0 : index
    %c0_35 = arith.constant 0 : index
    %c0_36 = arith.constant 0 : index
    %29 = vector.load %arg10[%c0_34, %c0_35, %c0_36] : memref<18x8x256xbf16, #tpu.memory_space<vmem>>, vector<1x8x256xbf16>
    tpu.vector_store %arg10[%c0_34, %c0_35, %c0_36], %28 {strides = array<i32>} : memref<18x8x256xbf16, #tpu.memory_space<vmem>>, vector<1x8x256xbf16>,
    %c17_37 = arith.constant 17 : index
    %c0_38 = arith.constant 0 : index
    %c0_39 = arith.constant 0 : index
    %30 = vector.load %arg10[%c17_37, %c0_38, %c0_39] : memref<18x8x256xbf16, #tpu.memory_space<vmem>>, vector<1x8x256xbf16>
    tpu.vector_store %arg10[%c17_37, %c0_38, %c0_39], %28 {strides = array<i32>} : memref<18x8x256xbf16, #tpu.memory_space<vmem>>, vector<1x8x256xbf16>,
    %31 = vector.shape_cast %27 : vector<128x256xf32> to vector<16x8x256xf32>
    %32 = arith.truncf %31 : vector<16x8x256xf32> to vector<16x8x256xbf16>
    %c1_40 = arith.constant 1 : index
    %c0_41 = arith.constant 0 : index
    %c0_42 = arith.constant 0 : index
    %33 = vector.load %arg10[%c1_40, %c0_41, %c0_42] : memref<18x8x256xbf16, #tpu.memory_space<vmem>>, vector<16x8x256xbf16>
    tpu.vector_store %arg10[%c1_40, %c0_41, %c0_42], %32 {strides = array<i32>} : memref<18x8x256xbf16, #tpu.memory_space<vmem>>, vector<16x8x256xbf16>,
    %c0_43 = arith.constant 0 : index
    %c0_44 = arith.constant 0 : index
    %c0_45 = arith.constant 0 : index
    %34 = vector.load %arg10[%c0_43, %c0_44, %c0_45] : memref<18x8x256xbf16, #tpu.memory_space<vmem>>, vector<16x8x256xbf16>
    %35 = vector.shape_cast %34 : vector<16x8x256xbf16> to vector<128x256xbf16>
    %c0_46 = arith.constant 0 : index
    %c0_47 = arith.constant 0 : index
    %c0_48 = arith.constant 0 : index
    %36 = vector.load %arg4[%c0_46, %c0_47, %c0_48] : memref<3x256x256xbf16, #tpu.memory_space<vmem>>, vector<1x256x256xbf16>
    %37 = vector.shape_cast %36 : vector<1x256x256xbf16> to vector<256x256xbf16>
    %cst_49 = arith.constant dense<0.000000e+00> : vector<128x256xf32>
    %38 = tpu.matmul %35, %37, %cst_49 {dimension_numbers = #tpu.dot_dimension_numbers<[1], [0], [0], [1], [0, 0, 1, 1], [], []>} : vector<128x256xbf16>, vector<256x256xbf16>, vector<128x256xf32> -> vector<128x256xf32>
    %c1_50 = arith.constant 1 : index
    %c0_51 = arith.constant 0 : index
    %c0_52 = arith.constant 0 : index
    %39 = vector.load %arg10[%c1_50, %c0_51, %c0_52] : memref<18x8x256xbf16, #tpu.memory_space<vmem>>, vector<16x8x256xbf16>
    %40 = vector.shape_cast %39 : vector<16x8x256xbf16> to vector<128x256xbf16>
    %c1_53 = arith.constant 1 : index
    %c0_54 = arith.constant 0 : index
    %c0_55 = arith.constant 0 : index
    %41 = vector.load %arg4[%c1_53, %c0_54, %c0_55] : memref<3x256x256xbf16, #tpu.memory_space<vmem>>, vector<1x256x256xbf16>
    %42 = vector.shape_cast %41 : vector<1x256x256xbf16> to vector<256x256xbf16>
    %cst_56 = arith.constant dense<0.000000e+00> : vector<128x256xf32>
    %43 = tpu.matmul %40, %42, %cst_56 {dimension_numbers = #tpu.dot_dimension_numbers<[1], [0], [0], [1], [0, 0, 1, 1], [], []>} : vector<128x256xbf16>, vector<256x256xbf16>, vector<128x256xf32> -> vector<128x256xf32>
    %44 = arith.addf %38, %43 : vector<128x256xf32>
    %c2_57 = arith.constant 2 : index
    %c0_58 = arith.constant 0 : index
    %c0_59 = arith.constant 0 : index
    %45 = vector.load %arg10[%c2_57, %c0_58, %c0_59] : memref<18x8x256xbf16, #tpu.memory_space<vmem>>, vector<16x8x256xbf16>
    %46 = vector.shape_cast %45 : vector<16x8x256xbf16> to vector<128x256xbf16>
    %c2_60 = arith.constant 2 : index
    %c0_61 = arith.constant 0 : index
    %c0_62 = arith.constant 0 : index
    %47 = vector.load %arg4[%c2_60, %c0_61, %c0_62] : memref<3x256x256xbf16, #tpu.memory_space<vmem>>, vector<1x256x256xbf16>
    %48 = vector.shape_cast %47 : vector<1x256x256xbf16> to vector<256x256xbf16>
    %cst_63 = arith.constant dense<0.000000e+00> : vector<128x256xf32>
    %49 = tpu.matmul %46, %48, %cst_63 {dimension_numbers = #tpu.dot_dimension_numbers<[1], [0], [0], [1], [0, 0, 1, 1], [], []>} : vector<128x256xbf16>, vector<256x256xbf16>, vector<128x256xf32> -> vector<128x256xf32>
    %50 = arith.addf %44, %49 : vector<128x256xf32>
    %c0_64 = arith.constant 0 : index
    %c0_65 = arith.constant 0 : index
    %51 = vector.load %arg5[%c0_64, %c0_65] : memref<1x256xf32, #tpu.memory_space<vmem>>, vector<1x256xf32>
    %52 = vector.broadcast %51 : vector<1x256xf32> to vector<128x256xf32>
    %53 = arith.addf %50, %52 : vector<128x256xf32>
    %cst_66 = arith.constant 0.000000e+00 : f32
    %54 = vector.broadcast %cst_66 : f32 to vector<128x256xf32>
    %55 = arith.maximumf %53, %54 : vector<128x256xf32>
    %56 = vector.shape_cast %55 : vector<128x256xf32> to vector<16x8x256xf32>
    %57 = arith.truncf %56 : vector<16x8x256xf32> to vector<16x8x256xbf16>
    %c1_67 = arith.constant 1 : index
    %c0_68 = arith.constant 0 : index
    %c0_69 = arith.constant 0 : index
    %58 = vector.load %arg10[%c1_67, %c0_68, %c0_69] : memref<18x8x256xbf16, #tpu.memory_space<vmem>>, vector<16x8x256xbf16>
    tpu.vector_store %arg10[%c1_67, %c0_68, %c0_69], %57 {strides = array<i32>} : memref<18x8x256xbf16, #tpu.memory_space<vmem>>, vector<16x8x256xbf16>,
    %c0_70 = arith.constant 0 : index
    %c0_71 = arith.constant 0 : index
    %c0_72 = arith.constant 0 : index
    %59 = vector.load %arg10[%c0_70, %c0_71, %c0_72] : memref<18x8x256xbf16, #tpu.memory_space<vmem>>, vector<16x8x256xbf16>
    %60 = vector.shape_cast %59 : vector<16x8x256xbf16> to vector<128x256xbf16>
    %c0_73 = arith.constant 0 : index
    %c0_74 = arith.constant 0 : index
    %c0_75 = arith.constant 0 : index
    %61 = vector.load %arg6[%c0_73, %c0_74, %c0_75] : memref<3x256x256xbf16, #tpu.memory_space<vmem>>, vector<1x256x256xbf16>
    %62 = vector.shape_cast %61 : vector<1x256x256xbf16> to vector<256x256xbf16>
    %cst_76 = arith.constant dense<0.000000e+00> : vector<128x256xf32>
    %63 = tpu.matmul %60, %62, %cst_76 {dimension_numbers = #tpu.dot_dimension_numbers<[1], [0], [0], [1], [0, 0, 1, 1], [], []>} : vector<128x256xbf16>, vector<256x256xbf16>, vector<128x256xf32> -> vector<128x256xf32>
    %c1_77 = arith.constant 1 : index
    %c0_78 = arith.constant 0 : index
    %c0_79 = arith.constant 0 : index
    %64 = vector.load %arg10[%c1_77, %c0_78, %c0_79] : memref<18x8x256xbf16, #tpu.memory_space<vmem>>, vector<16x8x256xbf16>
    %65 = vector.shape_cast %64 : vector<16x8x256xbf16> to vector<128x256xbf16>
    %c1_80 = arith.constant 1 : index
    %c0_81 = arith.constant 0 : index
    %c0_82 = arith.constant 0 : index
    %66 = vector.load %arg6[%c1_80, %c0_81, %c0_82] : memref<3x256x256xbf16, #tpu.memory_space<vmem>>, vector<1x256x256xbf16>
    %67 = vector.shape_cast %66 : vector<1x256x256xbf16> to vector<256x256xbf16>
    %cst_83 = arith.constant dense<0.000000e+00> : vector<128x256xf32>
    %68 = tpu.matmul %65, %67, %cst_83 {dimension_numbers = #tpu.dot_dimension_numbers<[1], [0], [0], [1], [0, 0, 1, 1], [], []>} : vector<128x256xbf16>, vector<256x256xbf16>, vector<128x256xf32> -> vector<128x256xf32>
    %69 = arith.addf %63, %68 : vector<128x256xf32>
    %c2_84 = arith.constant 2 : index
    %c0_85 = arith.constant 0 : index
    %c0_86 = arith.constant 0 : index
    %70 = vector.load %arg10[%c2_84, %c0_85, %c0_86] : memref<18x8x256xbf16, #tpu.memory_space<vmem>>, vector<16x8x256xbf16>
    %71 = vector.shape_cast %70 : vector<16x8x256xbf16> to vector<128x256xbf16>
    %c2_87 = arith.constant 2 : index
    %c0_88 = arith.constant 0 : index
    %c0_89 = arith.constant 0 : index
    %72 = vector.load %arg6[%c2_87, %c0_88, %c0_89] : memref<3x256x256xbf16, #tpu.memory_space<vmem>>, vector<1x256x256xbf16>
    %73 = vector.shape_cast %72 : vector<1x256x256xbf16> to vector<256x256xbf16>
    %cst_90 = arith.constant dense<0.000000e+00> : vector<128x256xf32>
    %74 = tpu.matmul %71, %73, %cst_90 {dimension_numbers = #tpu.dot_dimension_numbers<[1], [0], [0], [1], [0, 0, 1, 1], [], []>} : vector<128x256xbf16>, vector<256x256xbf16>, vector<128x256xf32> -> vector<128x256xf32>
    %75 = arith.addf %69, %74 : vector<128x256xf32>
    %c0_91 = arith.constant 0 : index
    %c0_92 = arith.constant 0 : index
    %76 = vector.load %arg7[%c0_91, %c0_92] : memref<1x256xf32, #tpu.memory_space<vmem>>, vector<1x256xf32>
    %77 = vector.broadcast %76 : vector<1x256xf32> to vector<128x256xf32>
    %78 = arith.addf %75, %77 : vector<128x256xf32>
    %cst_93 = arith.constant 0.000000e+00 : f32
    %79 = vector.broadcast %cst_93 : f32 to vector<128x256xf32>
    %80 = arith.maximumf %78, %79 : vector<128x256xf32>
    %81 = vector.shape_cast %80 : vector<128x256xf32> to vector<16x8x256xf32>
    %c0_94 = arith.constant 0 : index
    %c0_95 = arith.constant 0 : index
    %c0_96 = arith.constant 0 : index
    %82 = vector.load %arg8[%c0_94, %c0_95, %c0_96] : memref<16x8x256xf32, #tpu.memory_space<vmem>>, vector<16x8x256xf32>
    tpu.vector_store %arg8[%c0_94, %c0_95, %c0_96], %81 {strides = array<i32>} : memref<16x8x256xf32, #tpu.memory_space<vmem>>, vector<16x8x256xf32>,
    return
  }
  func.func @transform_0(%arg0: i32) -> (i32, i32, i32) {
    %c0_i32 = arith.constant 0 : i32
    %c0_i32_0 = arith.constant 0 : i32
    %c0_i32_1 = arith.constant 0 : i32
    return %c0_i32, %arg0, %c0_i32_0 : i32, i32, i32
  }
  func.func @transform_1(%arg0: i32) -> (i32, i32, i32) {
    %c0_i32 = arith.constant 0 : i32
    %c0_i32_0 = arith.constant 0 : i32
    %c0_i32_1 = arith.constant 0 : i32
    %c0_i32_2 = arith.constant 0 : i32
    return %c0_i32, %c0_i32_0, %c0_i32_1 : i32, i32, i32
  }
  func.func @transform_2(%arg0: i32) -> (i32, i32) {
    %c0_i32 = arith.constant 0 : i32
    %c0_i32_0 = arith.constant 0 : i32
    %c0_i32_1 = arith.constant 0 : i32
    return %c0_i32, %c0_i32_0 : i32, i32
  }
  func.func @transform_3(%arg0: i32) -> (i32, i32, i32) {
    %c0_i32 = arith.constant 0 : i32
    %c0_i32_0 = arith.constant 0 : i32
    %c0_i32_1 = arith.constant 0 : i32
    %c0_i32_2 = arith.constant 0 : i32
    return %c0_i32, %c0_i32_0, %c0_i32_1 : i32, i32, i32
  }
  func.func @transform_4(%arg0: i32) -> (i32, i32) {
    %c0_i32 = arith.constant 0 : i32
    %c0_i32_0 = arith.constant 0 : i32
    %c0_i32_1 = arith.constant 0 : i32
    return %c0_i32, %c0_i32_0 : i32, i32
  }
  func.func @transform_5(%arg0: i32) -> (i32, i32, i32) {
    %c0_i32 = arith.constant 0 : i32
    %c0_i32_0 = arith.constant 0 : i32
    %c0_i32_1 = arith.constant 0 : i32
    %c0_i32_2 = arith.constant 0 : i32
    return %c0_i32, %c0_i32_0, %c0_i32_1 : i32, i32, i32
  }
  func.func @transform_6(%arg0: i32) -> (i32, i32) {
    %c0_i32 = arith.constant 0 : i32
    %c0_i32_0 = arith.constant 0 : i32
    %c0_i32_1 = arith.constant 0 : i32
    return %c0_i32, %c0_i32_0 : i32, i32
  }
  func.func @transform_7(%arg0: i32) -> (i32, i32, i32) {
    %c0_i32 = arith.constant 0 : i32
    %c0_i32_0 = arith.constant 0 : i32
    %c0_i32_1 = arith.constant 0 : i32
    return %c0_i32, %arg0, %c0_i32_0 : i32, i32, i32
  }
}

</mosaic_0001>

<bundles_post_ra>
// kernel: tpu_custom_call.1
= control target key start
LH: loop header
LB: loop body
LE: loop exit
PB: predicated region body
PF: predicated region fallthrough
CT: control target
= control target key end

     0   :  { %12 = vsyncpa [#allocation5], 0  ;;  %s8061_s0 = inlined_call_operand.hbm [shape: bf16[16,8,256], index: 0, kind: input, shape index: {}]   ;;  %s8062_s1 = inlined_call_operand.hbm [shape: bf16[3,256,256], index: 1, kind: input, shape index: {}]   ;;  %s8063_s2 = inlined_call_operand.hbm [shape: f32[1,256], index: 2, kind: input, shape index: {}]   ;;  %s8064_s3 = inlined_call_operand.hbm [shape: bf16[3,256,256], index: 3, kind: input, shape index: {}]   ;;  %s8065_s4 = inlined_call_operand.vmem [shape: f32[1,256], index: 4, kind: input, shape index: {}]   ;;  %s8066_s5 = inlined_call_operand.hbm [shape: bf16[3,256,256], index: 5, kind: input, shape index: {}]   ;;  %s8067_s6 = inlined_call_operand.vmem [shape: f32[1,256], index: 6, kind: input, shape index: {}]   ;;  %s8068_s7 = inlined_call_operand.hbm [shape: f32[16,8,256], index: 7, kind: output, shape index: {}]  }
   0x1   :  { %13 = vsyncpa [#allocation8], 0 }
   0x2   :  { %14 = vsyncpa [#allocation11], 0 }
   0x3   :  { %15 = vsyncpa [#allocation6], 0  ;;  %s33_s26 = sshll.u32 %s8062_s1, 4  ;;  %s7254_s27 = smov [#allocation7]   ;;  %s34_s26 = int_to_ptr.hbm [resolvable:$true] %s33_s26 }
   0x4   :  { %s35_s28 = sshll.u32 %s7254_s27, 4  ;;  %s57_s8 = sshll.u32 %s8064_s3, 4  ;;  %s36_s28 = int_to_ptr.vmem [resolvable:$true] %s35_s28  ;;  %s58_s8 = int_to_ptr.hbm [resolvable:$true] %s57_s8 }
   0x5   :  { %s7255_s9 = smov 128   ;;  %s7256_s10 = smov 8  }
   0x6   :  { %41 = dma.hbm_to_vmem [thread:$0]  %s34_s26, 12288, %s36_s28, [#allocation8], %s7255_s9, %s7255_s9, %s7256_s10  }
   0x7   :  { %s7257_s11 = smov [#allocation10]   ;;  %s20_s15 = sshll.u32 %s8061_s0, 4  ;;  %s21_s15 = int_to_ptr.hbm [resolvable:$true] %s20_s15 }
   0x8   :  { %s59_s12 = sshll.u32 %s7257_s11, 4  ;;  %s47_s17 = sshll.u32 %s8063_s2, 4  ;;  %s60_s12 = int_to_ptr.vmem [resolvable:$true] %s59_s12  ;;  %s48_s17 = int_to_ptr.hbm [resolvable:$true] %s47_s17 }
   0x9   :  { %65 = dma.hbm_to_vmem [thread:$0]  %s58_s8, 12288, %s60_s12, [#allocation11], %s7255_s9, %s7255_s9, %s7256_s10  }
   0xa   :  { %s7258_s18 = smov [#allocation4]   ;;  %s7259_s3 = smov [#allocation9]  }
   0xb   :  { %s22_s19 = sshll.u32 %s7258_s18, 4  ;;  %s49_s20 = sshll.u32 %s7259_s3, 4  ;;  %s23_s19 = int_to_ptr.vmem [resolvable:$true] %s22_s19  ;;  %s50_s20 = int_to_ptr.vmem [resolvable:$true] %s49_s20 }
   0xc   :  { %28 = dma.hbm_to_vmem [thread:$0]  %s21_s15, 2048, %s23_s19, [#allocation5], %s7255_s9, %s7255_s9, %s7256_s10  }
   0xd   :  { %s72_s23 = sshll.u32 %s8066_s5, 4  ;;  %s7260_s0 = smov [#allocation12]   ;;  %s73_s23 = int_to_ptr.hbm [resolvable:$true] %s72_s23 }
   0xe   :  { %52 = dma.hbm_to_vmem [thread:$0]  %s48_s17, 32, %s50_s20, [#allocation8]  }
   0xf   :  { %s74_s24 = sshll.u32 %s7260_s0, 4  ;;  %s75_s24 = int_to_ptr.vmem [resolvable:$true] %s74_s24 }
  0x10   :  { %80 = dma.hbm_to_vmem [thread:$0]  %s73_s23, 12288, %s75_s24, [#allocation11], %s7255_s9, %s7255_s9, %s7256_s10  }
  0x11   :  { %7246 = dma.done.wait [#allocation5], 2048  }
  0x12   :  { %7247 = vsyncadd [#allocation5], 4294965248 }
  0x13   :  { %7248 = dma.done.wait [#allocation8], 12320  }
  0x14   :  { %7249 = vsyncadd [#allocation8], 4294954976 }
  0x15   :  { %7250 = dma.done.wait [#allocation11], 24576  }
  0x16   :  { %7251 = vsyncadd [#allocation11], 4294942720  ;;  %v5053_v0 = vld [vmem:[#allocation7 + $0x170] sm:$0xf]  ;;  %v6738_v1 = vld [vmem:[#allocation7 + $0x174] sm:$0xf0] }
  0x17   :  { %v5117_v2 = vld [vmem:[#allocation7 + $0x1f0] sm:$0xf]  ;;  %v5054_v3 = vor.u32 %v6738_v1, %v5053_v0  ;;  %v6754_v4 = vld [vmem:[#allocation7 + $0x1f4] sm:$0xf0]  ;;  %v6737_v5 = vld [vmem:[#allocation7 + $0x174] sm:$0xf] }
  0x18   :  { %v5055_v6 = vld [vmem:[#allocation7 + $0x178] sm:$0xf0]  ;;  %v5118_v7 = vor.u32 %v6754_v4, %v5117_v2  ;;  %v6753_v9 = vld [vmem:[#allocation7 + $0x1f4] sm:$0xf]  ;;  %v5045_v11 = vld [vmem:[#allocation7 + $0x160] sm:$0xf] }
  0x19   :  { %v5058_v8 = vor.u32 %v6737_v5, %v5055_v6  ;;  %v5119_v10 = vld [vmem:[#allocation7 + $0x1f8] sm:$0xf0]  ;;  %477 = vmatpush.bf16.msra.mxu0 %v5054_v3  ;;  %v6736_v13 = vld [vmem:[#allocation7 + $0x164] sm:$0xf0]  ;;  %v5109_v14 = vld [vmem:[#allocation7 + $0x1e0] sm:$0xf] }
  0x1a   :  { %v5122_v12 = vor.u32 %v6753_v9, %v5119_v10  ;;  %v6752_v15 = vld [vmem:[#allocation7 + $0x1e4] sm:$0xf0]  ;;  %526 = vmatpush.bf16.msra.mxu1 %v5118_v7  ;;  %v5046_v16 = vor.u32 %v6736_v13, %v5045_v11  ;;  %v6735_v18 = vld [vmem:[#allocation7 + $0x164] sm:$0xf]  ;;  %v5047_v19 = vld [vmem:[#allocation7 + $0x168] sm:$0xf0] }
  0x1b   :  { %575 = vmatpush.bf16.msra.mxu2 %v5058_v8  ;;  %v5110_v17 = vor.u32 %v6752_v15, %v5109_v14  ;;  %v6751_v20 = vld [vmem:[#allocation7 + $0x1e4] sm:$0xf]  ;;  %v5050_v21 = vor.u32 %v6735_v18, %v5047_v19  ;;  %v5111_v22 = vld [vmem:[#allocation7 + $0x1e8] sm:$0xf0]  ;;  %v5037_v23 = vld [vmem:[#allocation7 + $0x150] sm:$0xf] }
  0x1c   :  { %624 = vmatpush.bf16.msra.mxu3 %v5122_v12  ;;  %v6734_v24 = vld [vmem:[#allocation7 + $0x154] sm:$0xf0]  ;;  %v5114_v25 = vor.u32 %v6751_v20, %v5111_v22  ;;  %v5101_v26 = vld [vmem:[#allocation7 + $0x1d0] sm:$0xf]  ;;  %v6733_v28 = vld [vmem:[#allocation7 + $0x154] sm:$0xf] }
  0x1d   :  { %v6750_v27 = vld [vmem:[#allocation7 + $0x1d4] sm:$0xf0]  ;;  %478 = vmatpush.bf16.msra.mxu0 %v5046_v16  ;;  %v5038_v29 = vor.u32 %v6734_v24, %v5037_v23  ;;  %v5039_v30 = vld [vmem:[#allocation7 + $0x158] sm:$0xf0]  ;;  %v6749_v31 = vld [vmem:[#allocation7 + $0x1d4] sm:$0xf] }
  0x1e   :  { %v5103_v32 = vld [vmem:[#allocation7 + $0x1d8] sm:$0xf0]  ;;  %527 = vmatpush.bf16.msra.mxu1 %v5110_v17  ;;  %v5102_v33 = vor.u32 %v6750_v27, %v5101_v26  ;;  %v5042_v34 = vor.u32 %v6733_v28, %v5039_v30  ;;  %v5029_v35 = vld [vmem:[#allocation7 + $0x140] sm:$0xf]  ;;  %v6732_v36 = vld [vmem:[#allocation7 + $0x144] sm:$0xf0] }
  0x1f   :  { %576 = vmatpush.bf16.msra.mxu2 %v5050_v21  ;;  %v5093_v37 = vld [vmem:[#allocation7 + $0x1c0] sm:$0xf]  ;;  %v5106_v38 = vor.u32 %v6749_v31, %v5103_v32  ;;  %v6748_v39 = vld [vmem:[#allocation7 + $0x1c4] sm:$0xf0]  ;;  %v6731_v40 = vld [vmem:[#allocation7 + $0x144] sm:$0xf]  ;;  %v5030_v44 = vor.u32 %v6732_v36, %v5029_v35 }
  0x20   :  { %625 = vmatpush.bf16.msra.mxu3 %v5114_v25  ;;  %v5031_v41 = vld [vmem:[#allocation7 + $0x148] sm:$0xf0]  ;;  %v6747_v42 = vld [vmem:[#allocation7 + $0x1c4] sm:$0xf]  ;;  %v5094_v45 = vor.u32 %v6748_v39, %v5093_v37  ;;  %v5021_v47 = vld [vmem:[#allocation7 + $0x130] sm:$0xf] }
  0x21   :  { %v5095_v43 = vld [vmem:[#allocation7 + $0x1c8] sm:$0xf0]  ;;  %479 = vmatpush.bf16.msra.mxu0 %v5038_v29  ;;  %v5034_v46 = vor.u32 %v6731_v40, %v5031_v41  ;;  %v6730_v48 = vld [vmem:[#allocation7 + $0x134] sm:$0xf0]  ;;  %v5085_v49 = vld [vmem:[#allocation7 + $0x1b0] sm:$0xf] }
  0x22   :  { %528 = vmatpush.bf16.msra.mxu1 %v5102_v33  ;;  %v5098_v50 = vor.u32 %v6747_v42, %v5095_v43  ;;  %v6746_v51 = vld [vmem:[#allocation7 + $0x1b4] sm:$0xf0]  ;;  %v6729_v52 = vld [vmem:[#allocation7 + $0x134] sm:$0xf]  ;;  %v5023_v53 = vld [vmem:[#allocation7 + $0x138] sm:$0xf0]  ;;  %v5022_v56 = vor.u32 %v6730_v48, %v5021_v47 }
  0x23   :  { %577 = vmatpush.bf16.msra.mxu2 %v5042_v34  ;;  %v6745_v54 = vld [vmem:[#allocation7 + $0x1b4] sm:$0xf]  ;;  %v5087_v55 = vld [vmem:[#allocation7 + $0x1b8] sm:$0xf0]  ;;  %v5086_v57 = vor.u32 %v6746_v51, %v5085_v49  ;;  %v5026_v58 = vor.u32 %v6729_v52, %v5023_v53  ;;  %v5013_v59 = vld [vmem:[#allocation7 + $0x120] sm:$0xf] }
  0x24   :  { %626 = vmatpush.bf16.msra.mxu3 %v5106_v38  ;;  %v6728_v60 = vld [vmem:[#allocation7 + $0x124] sm:$0xf0]  ;;  %v5077_v61 = vld [vmem:[#allocation7 + $0x1a0] sm:$0xf]  ;;  %v5090_v62 = vor.u32 %v6745_v54, %v5087_v55  ;;  %v6727_v0 = vld [vmem:[#allocation7 + $0x124] sm:$0xf] }
  0x25   :  { %480 = vmatpush.bf16.msra.mxu0 %v5030_v44  ;;  %v6744_v63 = vld [vmem:[#allocation7 + $0x1a4] sm:$0xf0]  ;;  %v5015_v1 = vld [vmem:[#allocation7 + $0x128] sm:$0xf0]  ;;  %v6743_v2 = vld [vmem:[#allocation7 + $0x1a4] sm:$0xf]  ;;  %v5014_v5 = vor.u32 %v6728_v60, %v5013_v59 }
  0x26   :  { %529 = vmatpush.bf16.msra.mxu1 %v5094_v45  ;;  %v5079_v3 = vld [vmem:[#allocation7 + $0x1a8] sm:$0xf0]  ;;  %v5005_v4 = vld [vmem:[#allocation7 + $0x110] sm:$0xf]  ;;  %v6726_v6 = vld [vmem:[#allocation7 + $0x114] sm:$0xf0]  ;;  %v5078_v9 = vor.u32 %v6744_v63, %v5077_v61  ;;  %v5018_v10 = vor.u32 %v6727_v0, %v5015_v1 }
  0x27   :  { %578 = vmatpush.bf16.msra.mxu2 %v5034_v46  ;;  %v5069_v7 = vld [vmem:[#allocation7 + $0x190] sm:$0xf]  ;;  %v6742_v8 = vld [vmem:[#allocation7 + $0x194] sm:$0xf0]  ;;  %v6725_v11 = vld [vmem:[#allocation7 + $0x114] sm:$0xf]  ;;  %v5082_v14 = vor.u32 %v6743_v2, %v5079_v3  ;;  %v5006_v21 = vor.u32 %v6726_v6, %v5005_v4 }
  0x28   :  { %627 = vmatpush.bf16.msra.mxu3 %v5098_v50  ;;  %v5007_v12 = vld [vmem:[#allocation7 + $0x118] sm:$0xf0]  ;;  %v6741_v13 = vld [vmem:[#allocation7 + $0x194] sm:$0xf]  ;;  %v107_v16 = vld [vmem:[#allocation4] sm:$0xff]  ;;  %v5070_v25 = vor.u32 %v6742_v8, %v5069_v7  ;;  %s4916_s29 = sshll.u32 %s8068_s7, 4  ;;  %s4917_s29 = int_to_ptr.hbm [resolvable:$true] %s4916_s29 }
  0x29   :  { %481 = vmatpush.bf16.msra.mxu0 %v5022_v56  ;;  %v5071_v15 = vld [vmem:[#allocation7 + $0x198] sm:$0xf0]  ;;  %v108_v17 = vld [vmem:[#allocation4 + $0x8] sm:$0xff]  ;;  %v4997_v18 = vld [vmem:[#allocation7 + $0x100] sm:$0xf]  ;;  %124 = vst [vmem:[#allocation2 + $0x8] sm:$0xff] %v107_v16  ;;  %v5010_v26 = vor.u32 %v6725_v11, %v5007_v12 }
  0x2a   :  { %530 = vmatpush.bf16.msra.mxu1 %v5086_v57  ;;  %v6724_v19 = vld [vmem:[#allocation7 + $0x104] sm:$0xf0]  ;;  %v109_v20 = vld [vmem:[#allocation4 + $0x10] sm:$0xff]  ;;  %v5061_v22 = vld [vmem:[#allocation7 + $0x180] sm:$0xf]  ;;  %125 = vst [vmem:[#allocation2 + $0x10] sm:$0xff] %v108_v17  ;;  %v5074_v30 = vor.u32 %v6741_v13, %v5071_v15 }
  0x2b   :  { %579 = vmatpush.bf16.msra.mxu2 %v5026_v58  ;;  %v6740_v23 = vld [vmem:[#allocation7 + $0x184] sm:$0xf0]  ;;  %v110_v24 = vld [vmem:[#allocation4 + $0x18] sm:$0xff]  ;;  %v6723_v27 = vld [vmem:[#allocation7 + $0x104] sm:$0xf]  ;;  %126 = vst [vmem:[#allocation2 + $0x18] sm:$0xff] %v109_v20  ;;  %v4998_v37 = vor.u32 %v6724_v19, %v4997_v18 }
  0x2c   :  { %628 = vmatpush.bf16.msra.mxu3 %v5090_v62  ;;  %v4999_v28 = vld [vmem:[#allocation7 + $0x108] sm:$0xf0]  ;;  %v6739_v29 = vld [vmem:[#allocation7 + $0x184] sm:$0xf]  ;;  %v6689_v32 = vld [vmem:[#allocation7 + $0x74] sm:$0xf]  ;;  %v5062_v41 = vor.u32 %v6740_v23, %v5061_v22 }
  0x2d   :  { %482 = vmatpush.bf16.msra.mxu0 %v5014_v5  ;;  %v5063_v31 = vld [vmem:[#allocation7 + $0x188] sm:$0xf0]  ;;  %v111_v33 = vld [vmem:[#allocation4 + $0x20] sm:$0xff]  ;;  %v5247_v34 = vld [vmem:[#allocation7 + $0x78] sm:$0xf0]  ;;  %127 = vst [vmem:[#allocation2 + $0x20] sm:$0xff] %v110_v24  ;;  %v5002_v42 = vor.u32 %v6723_v27, %v4999_v28 }
  0x2e   :  { %531 = vmatpush.bf16.msra.mxu1 %v5078_v9  ;;  %v6705_v35 = vld [vmem:[#allocation7 + $0xf4] sm:$0xf]  ;;  %v112_v36 = vld [vmem:[#allocation4 + $0x28] sm:$0xff]  ;;  %v5311_v38 = vld [vmem:[#allocation7 + $0xf8] sm:$0xf0]  ;;  %128 = vst [vmem:[#allocation2 + $0x28] sm:$0xff] %v111_v33  ;;  %v5066_v46 = vor.u32 %v6739_v29, %v5063_v31  ;;  %v5250_v49 = vor.u32 %v6689_v32, %v5247_v34 }
  0x2f   :  { %580 = vmatpush.bf16.msra.mxu2 %v5018_v10  ;;  %v5245_v39 = vld [vmem:[#allocation7 + $0x70] sm:$0xf]  ;;  %v6690_v40 = vld [vmem:[#allocation7 + $0x74] sm:$0xf0]  ;;  %v6687_v45 = vld [vmem:[#allocation7 + $0x64] sm:$0xf]  ;;  %v5314_v52 = vor.u32 %v6705_v35, %v5311_v38 }
  0x30   :  { %629 = vmatpush.bf16.msra.mxu3 %v5082_v14  ;;  %v5309_v43 = vld [vmem:[#allocation7 + $0xf0] sm:$0xf]  ;;  %v6706_v44 = vld [vmem:[#allocation7 + $0xf4] sm:$0xf0]  ;;  %v4933_v47 = vld [vmem:[#allocation2 + $0x8] sm:$0xf]  ;;  %v5246_v58 = vor.u32 %v6690_v40, %v5245_v39 }
  0x31   :  { %483 = vmatpush.bf16.msra.mxu0 %v5006_v21  ;;  %v6707_v48 = vld [vmem:[#allocation2 + $0xc] sm:$0xf]  ;;  %129 = vst [vmem:[#allocation2 + $0x30] sm:$0xff] %v112_v36  ;;  %v6708_v50 = vld [vmem:[#allocation2 + $0xc] sm:$0xf0]  ;;  %v5310_v59 = vor.u32 %v6706_v44, %v5309_v43  ;;  %v114_v15 = vld [vmem:[#allocation4 + $0x38] sm:$0xff] }
  0x32   :  { %532 = vmatpush.bf16.msra.mxu1 %v5070_v25  ;;  %v4935_v51 = vld [vmem:[#allocation2 + $0x10] sm:$0xf0]  ;;  %v5239_v53 = vld [vmem:[#allocation7 + $0x68] sm:$0xf0]  ;;  %v4934_v54 = vor.u32 %v6708_v50, %v4933_v47  ;;  %v6703_v56 = vld [vmem:[#allocation7 + $0xe4] sm:$0xf] }
  0x33   :  { %581 = vmatpush.bf16.msra.mxu2 %v5010_v26  ;;  %v4938_v55 = vor.u32 %v6707_v48, %v4935_v51  ;;  %v5303_v57 = vld [vmem:[#allocation7 + $0xe8] sm:$0xf0]  ;;  %v5242_v60 = vor.u32 %v6687_v45, %v5239_v53  ;;  %v5237_v61 = vld [vmem:[#allocation7 + $0x60] sm:$0xf]  ;;  %v6688_v62 = vld [vmem:[#allocation7 + $0x64] sm:$0xf0] }
  0x34   :  { %630 = vmatpush.bf16.msra.mxu3 %v5074_v30  ;;  %v5306_v63 = vor.u32 %v6703_v56, %v5303_v57  ;;  %v5301_v0 = vld [vmem:[#allocation7 + $0xe0] sm:$0xf]  ;;  %v6704_v1 = vld [vmem:[#allocation7 + $0xe4] sm:$0xf0]  ;;  %v5238_v2 = vor.u32 %v6688_v62, %v5237_v61  ;;  %v6685_v3 = vld [vmem:[#allocation7 + $0x54] sm:$0xf] }
  0x35   :  { %484 = vmatpush.bf16.msra.mxu0 %v4998_v37  ;;  %v5302_v4 = vor.u32 %v6704_v1, %v5301_v0  ;;  %v5231_v5 = vld [vmem:[#allocation7 + $0x58] sm:$0xf0]  ;;  %v6701_v6 = vld [vmem:[#allocation7 + $0xd4] sm:$0xf]  ;;  %v5229_v10 = vld [vmem:[#allocation7 + $0x50] sm:$0xf] }
  0x36   :  { %533 = vmatpush.bf16.msra.mxu1 %v5062_v41  ;;  %v5295_v7 = vld [vmem:[#allocation7 + $0xd8] sm:$0xf0]  ;;  %v5234_v8 = vor.u32 %v6685_v3, %v5231_v5  ;;  %v6686_v11 = vld [vmem:[#allocation7 + $0x54] sm:$0xf0]  ;;  %v5293_v12 = vld [vmem:[#allocation7 + $0xd0] sm:$0xf] }
  0x37   :  { %582 = vmatpush.bf16.msra.mxu2 %v5002_v42  ;;  %v5298_v9 = vor.u32 %v6701_v6, %v5295_v7  ;;  %v6702_v13 = vld [vmem:[#allocation7 + $0xd4] sm:$0xf0]  ;;  %v113_v14 = vld [vmem:[#allocation4 + $0x30] sm:$0xff]  ;;  %v5230_v16 = vor.u32 %v6686_v11, %v5229_v10  ;;  %131 = vst [vmem:[#allocation2 + $0x40] sm:$0xff] %v114_v15  ;;  %v6710_v19 = vld [vmem:[#allocation2 + $0x1c] sm:$0xf0] }
  0x38   :  { %631 = vmatpush.bf16.msra.mxu3 %v5066_v46  ;;  %485 = vmatmul.bf16.vlgmr.msra.gmra.mxu0 %v4934_v54  ;;  %130 = vst [vmem:[#allocation2 + $0x38] sm:$0xff] %v113_v14  ;;  %v5294_v17 = vor.u32 %v6702_v13, %v5293_v12  ;;  %v4941_v18 = vld [vmem:[#allocation2 + $0x18] sm:$0xf]  ;;  %v6709_v20 = vld [vmem:[#allocation2 + $0x1c] sm:$0xf]  ;;  %v115_v35 = vld [vmem:[#allocation4 + $0x40] sm:$0xff] }
  0x39   :  { %534 = vmatmul.bf16.vlgmr.msra.gmra.mxu1 %v4938_v55  ;;  %913 = vmatpush.bf16.msrb.mxu0 %v5246_v58  ;;  %v4943_v21 = vld [vmem:[#allocation2 + $0x20] sm:$0xf0]  ;;  %v4942_v22 = vor.u32 %v6710_v19, %v4941_v18  ;;  %v5223_v25 = vld [vmem:[#allocation7 + $0x48] sm:$0xf0]  ;;  %v5221_v29 = vld [vmem:[#allocation7 + $0x40] sm:$0xf] }
  0x3a   :  { %583 = vmatmul.bf16.vlgmr.msra.gmra.mxu2 %v4934_v54  ;;  %962 = vmatpush.bf16.msrb.mxu1 %v5310_v59  ;;  %v4946_v23 = vor.u32 %v6709_v20, %v4943_v21  ;;  %v6683_v24 = vld [vmem:[#allocation7 + $0x44] sm:$0xf]  ;;  %v5287_v28 = vld [vmem:[#allocation7 + $0xc8] sm:$0xf0]  ;;  %v6684_v30 = vld [vmem:[#allocation7 + $0x44] sm:$0xf0] }
  0x3b   :  { %1011 = vmatpush.bf16.msrb.mxu2 %v5250_v49  ;;  %632 = vmatmul.bf16.vlgmr.msra.gmra.mxu3 %v4938_v55  ;;  %v6699_v26 = vld [vmem:[#allocation7 + $0xc4] sm:$0xf]  ;;  %v5226_v27 = vor.u32 %v6683_v24, %v5223_v25  ;;  %v5222_v32 = vor.u32 %v6684_v30, %v5221_v29  ;;  %v5285_v33 = vld [vmem:[#allocation7 + $0xc0] sm:$0xf]  ;;  %v6700_v34 = vld [vmem:[#allocation7 + $0xc4] sm:$0xf0] }
  0x3c   :  { %1060 = vmatpush.bf16.msrb.mxu3 %v5314_v52  ;;  %v5290_v31 = vor.u32 %v6699_v26, %v5287_v28  ;;  %v5286_v36 = vor.u32 %v6700_v34, %v5285_v33  ;;  %v116_v37 = vld [vmem:[#allocation4 + $0x48] sm:$0xff]  ;;  %132 = vst [vmem:[#allocation2 + $0x48] sm:$0xff] %v115_v35  ;;  %v6712_v39 = vld [vmem:[#allocation2 + $0x2c] sm:$0xf0]  ;;  %v4951_v41 = vld [vmem:[#allocation2 + $0x30] sm:$0xf0] }
  0x3d   :  { %914 = vmatpush.bf16.msrb.mxu0 %v5238_v2  ;;  %133 = vst [vmem:[#allocation2 + $0x50] sm:$0xff] %v116_v37  ;;  %v4949_v38 = vld [vmem:[#allocation2 + $0x28] sm:$0xf]  ;;  %v6711_v40 = vld [vmem:[#allocation2 + $0x2c] sm:$0xf]  ;;  %v117_v55 = vld [vmem:[#allocation4 + $0x50] sm:$0xff] }
  0x3e   :  { %963 = vmatpush.bf16.msrb.mxu1 %v5302_v4  ;;  %v4950_v42 = vor.u32 %v6712_v39, %v4949_v38  ;;  %v4954_v43 = vor.u32 %v6711_v40, %v4951_v41  ;;  %v6681_v44 = vld [vmem:[#allocation7 + $0x34] sm:$0xf]  ;;  %v5215_v45 = vld [vmem:[#allocation7 + $0x38] sm:$0xf0]  ;;  %v5213_v49 = vld [vmem:[#allocation7 + $0x30] sm:$0xf] }
  0x3f   :  { %1012 = vmatpush.bf16.msrb.mxu2 %v5242_v60  ;;  %v6697_v46 = vld [vmem:[#allocation7 + $0xb4] sm:$0xf]  ;;  %v5218_v47 = vor.u32 %v6681_v44, %v5215_v45  ;;  %v5279_v48 = vld [vmem:[#allocation7 + $0xb8] sm:$0xf0]  ;;  %v6682_v50 = vld [vmem:[#allocation7 + $0x34] sm:$0xf0] }
  0x40   :  { %1061 = vmatpush.bf16.msrb.mxu3 %v5306_v63  ;;  %v5282_v51 = vor.u32 %v6697_v46, %v5279_v48  ;;  %v5214_v52 = vor.u32 %v6682_v50, %v5213_v49  ;;  %v5277_v53 = vld [vmem:[#allocation7 + $0xb0] sm:$0xf]  ;;  %v6698_v54 = vld [vmem:[#allocation7 + $0xb4] sm:$0xf0]  ;;  %134 = vst [vmem:[#allocation2 + $0x58] sm:$0xff] %v117_v55  ;;  %v119_v11 = vld [vmem:[#allocation4 + $0x60] sm:$0xff] }
  0x41   :  { %915 = vmatpush.bf16.msrb.mxu0 %v5230_v16  ;;  %v5278_v56 = vor.u32 %v6698_v54, %v5277_v53  ;;  %v118_v57 = vld [vmem:[#allocation4 + $0x58] sm:$0xff]  ;;  %v6714_v59 = vld [vmem:[#allocation2 + $0x3c] sm:$0xf0]  ;;  %v4959_v61 = vld [vmem:[#allocation2 + $0x40] sm:$0xf0]  ;;  %136 = vst [vmem:[#allocation2 + $0x68] sm:$0xff] %v119_v11 }
  0x42   :  { %964 = vmatpush.bf16.msrb.mxu1 %v5294_v17  ;;  %135 = vst [vmem:[#allocation2 + $0x60] sm:$0xff] %v118_v57  ;;  %v4957_v58 = vld [vmem:[#allocation2 + $0x38] sm:$0xf]  ;;  %v6713_v60 = vld [vmem:[#allocation2 + $0x3c] sm:$0xf]  ;;  %v120_v13 = vld [vmem:[#allocation4 + $0x68] sm:$0xff] }
  0x43   :  { %1013 = vmatpush.bf16.msrb.mxu2 %v5234_v8  ;;  %v4958_v62 = vor.u32 %v6714_v59, %v4957_v58  ;;  %v4962_v63 = vor.u32 %v6713_v60, %v4959_v61  ;;  %v6679_v0 = vld [vmem:[#allocation7 + $0x24] sm:$0xf]  ;;  %v5207_v1 = vld [vmem:[#allocation7 + $0x28] sm:$0xf0]  ;;  %v5205_v5 = vld [vmem:[#allocation7 + $0x20] sm:$0xf] }
  0x44   :  { %1062 = vmatpush.bf16.msrb.mxu3 %v5298_v9  ;;  %v6695_v2 = vld [vmem:[#allocation7 + $0xa4] sm:$0xf]  ;;  %v5210_v3 = vor.u32 %v6679_v0, %v5207_v1  ;;  %v5271_v4 = vld [vmem:[#allocation7 + $0xa8] sm:$0xf0]  ;;  %v6680_v6 = vld [vmem:[#allocation7 + $0x24] sm:$0xf0] }
  0x45   :  { %916 = vmatpush.bf16.msrb.mxu0 %v5222_v32  ;;  %v5274_v7 = vor.u32 %v6695_v2, %v5271_v4  ;;  %v5206_v8 = vor.u32 %v6680_v6, %v5205_v5  ;;  %v5269_v9 = vld [vmem:[#allocation7 + $0xa0] sm:$0xf]  ;;  %v6696_v10 = vld [vmem:[#allocation7 + $0xa4] sm:$0xf0]  ;;  %137 = vst [vmem:[#allocation2 + $0x70] sm:$0xff] %v120_v13  ;;  %v122_v33 = vld [vmem:[#allocation4 + $0x78] sm:$0xff] }
  0x46   :  { %965 = vmatpush.bf16.msrb.mxu1 %v5286_v36  ;;  %v5270_v12 = vor.u32 %v6696_v10, %v5269_v9  ;;  %v4965_v14 = vld [vmem:[#allocation2 + $0x48] sm:$0xf]  ;;  %v6716_v15 = vld [vmem:[#allocation2 + $0x4c] sm:$0xf0]  ;;  %v6715_v16 = vld [vmem:[#allocation2 + $0x4c] sm:$0xf] }
  0x47   :  { %1014 = vmatpush.bf16.msrb.mxu2 %v5226_v27  ;;  %v4967_v17 = vld [vmem:[#allocation2 + $0x50] sm:$0xf0]  ;;  %v4966_v18 = vor.u32 %v6716_v15, %v4965_v14  ;;  %v5199_v21 = vld [vmem:[#allocation7 + $0x18] sm:$0xf0]  ;;  %v5197_v25 = vld [vmem:[#allocation7 + $0x10] sm:$0xf] }
  0x48   :  { %490 = vmatmul.bf16.gmra.mxu0 %v4942_v22  ;;  %1063 = vmatpush.bf16.msrb.mxu3 %v5290_v31  ;;  %v4970_v19 = vor.u32 %v6715_v16, %v4967_v17  ;;  %v6677_v20 = vld [vmem:[#allocation7 + $0x14] sm:$0xf]  ;;  %v5263_v24 = vld [vmem:[#allocation7 + $0x98] sm:$0xf0]  ;;  %v6678_v26 = vld [vmem:[#allocation7 + $0x14] sm:$0xf0] }
  0x49   :  { %539 = vmatmul.bf16.gmra.mxu1 %v4946_v23  ;;  %917 = vmatpush.bf16.msrb.mxu0 %v5214_v52  ;;  %v5198_v28 = vor.u32 %v6678_v26, %v5197_v25  ;;  %v5261_v29 = vld [vmem:[#allocation7 + $0x90] sm:$0xf]  ;;  %v6694_v30 = vld [vmem:[#allocation7 + $0x94] sm:$0xf0]  ;;  %139 = vst [vmem:[#allocation2 + $0x80] sm:$0xff] %v122_v33  ;;  %v7261_v52 = vmov 0  }
  0x4a   :  { %588 = vmatmul.bf16.gmra.mxu2 %v4942_v22  ;;  %966 = vmatpush.bf16.msrb.mxu1 %v5278_v56  ;;  %v6693_v22 = vld [vmem:[#allocation7 + $0x94] sm:$0xf]  ;;  %v5262_v32 = vor.u32 %v6694_v30, %v5261_v29  ;;  %v4973_v34 = vld [vmem:[#allocation2 + $0x58] sm:$0xf]  ;;  %v6718_v35 = vld [vmem:[#allocation2 + $0x5c] sm:$0xf0] }
  0x4b   :  { %637 = vmatmul.bf16.gmra.mxu3 %v4946_v23  ;;  %1015 = vmatpush.bf16.msrb.mxu2 %v5218_v47  ;;  %v5202_v23 = vor.u32 %v6677_v20, %v5199_v21  ;;  %v5266_v27 = vor.u32 %v6693_v22, %v5263_v24  ;;  %v121_v31 = vld [vmem:[#allocation4 + $0x70] sm:$0xff]  ;;  %v6717_v36 = vld [vmem:[#allocation2 + $0x5c] sm:$0xf]  ;;  %v4975_v37 = vld [vmem:[#allocation2 + $0x60] sm:$0xf0]  ;;  %v4974_v38 = vor.u32 %v6718_v35, %v4973_v34  ;;  %s7263_s30 = smov 256  }
  0x4c   :  { %1064 = vmatpush.bf16.msrb.mxu3 %v5282_v51  ;;  %138 = vst [vmem:[#allocation2 + $0x78] sm:$0xff] %v121_v31  ;;  %v4978_v39 = vor.u32 %v6717_v36, %v4975_v37  ;;  %v6675_v40 = vld [vmem:[#allocation7 + $0x4] sm:$0xf]  ;;  %v5191_v41 = vld [vmem:[#allocation7 + $0x8] sm:$0xf0]  ;;  %s7264_s8 = smov 16  }
  0x4d   :  { %918 = vmatpush.bf16.msrb.mxu0 %v5206_v8  ;;  %v5255_v44 = vld [vmem:[#allocation7 + $0x88] sm:$0xf0]  ;;  %v5189_v45 = vld [vmem:[#allocation7] sm:$0xf]  ;;  %v6676_v46 = vld [vmem:[#allocation7 + $0x4] sm:$0xf0] }
  0x4e   :  { %967 = vmatpush.bf16.msrb.mxu1 %v5270_v12  ;;  %v5190_v48 = vor.u32 %v6676_v46, %v5189_v45  ;;  %v5253_v49 = vld [vmem:[#allocation7 + $0x80] sm:$0xf]  ;;  %v6692_v50 = vld [vmem:[#allocation7 + $0x84] sm:$0xf0]  ;;  %104 = vst [vmem:[#allocation2] sm:$0xff] %v7261_v52 }
  0x4f   :  { %1016 = vmatpush.bf16.msrb.mxu2 %v5210_v3  ;;  %v5254_v51 = vor.u32 %v6692_v50, %v5253_v49  ;;  %v4981_v53 = vld [vmem:[#allocation2 + $0x68] sm:$0xf]  ;;  %v6720_v54 = vld [vmem:[#allocation2 + $0x6c] sm:$0xf0]  ;;  %106 = vst [vmem:[#allocation2 + $0x88] sm:$0xff] %v7261_v52 }
  0x50   :  { %1065 = vmatpush.bf16.msrb.mxu3 %v5274_v7  ;;  %v6719_v55 = vld [vmem:[#allocation2 + $0x6c] sm:$0xf]  ;;  %v4983_v56 = vld [vmem:[#allocation2 + $0x70] sm:$0xf0]  ;;  %1697 = vst [vmem:[#allocation3] sm:$0xff] %v7261_v52  ;;  %v4982_v57 = vor.u32 %v6720_v54, %v4981_v53 }
  0x51   :  { %919 = vmatpush.bf16.msrb.mxu0 %v5198_v28  ;;  %1699 = vst [vmem:[#allocation3 + $0x88] sm:$0xff] %v7261_v52  ;;  %v4986_v58 = vor.u32 %v6719_v55, %v4983_v56  ;;  %v6785_v59 = vld [vmem:[#allocation7 + $0x274] sm:$0xf]  ;;  %v5439_v60 = vld [vmem:[#allocation7 + $0x278] sm:$0xf0] }
  0x52   :  { %968 = vmatpush.bf16.msrb.mxu1 %v5262_v32  ;;  %v6801_v61 = vld [vmem:[#allocation7 + $0x2f4] sm:$0xf]  ;;  %v5437_v1 = vld [vmem:[#allocation7 + $0x270] sm:$0xf]  ;;  %v6786_v2 = vld [vmem:[#allocation7 + $0x274] sm:$0xf0] }
  0x53   :  { %1017 = vmatpush.bf16.msrb.mxu2 %v5202_v23  ;;  %v5501_v3 = vld [vmem:[#allocation7 + $0x2f0] sm:$0xf]  ;;  %v5438_v4 = vor.u32 %v6786_v2, %v5437_v1  ;;  %v6802_v5 = vld [vmem:[#allocation7 + $0x2f4] sm:$0xf0]  ;;  %v6722_v7 = vld [vmem:[#allocation2 + $0x7c] sm:$0xf0] }
  0x54   :  { %1066 = vmatpush.bf16.msrb.mxu3 %v5266_v27  ;;  %v4989_v6 = vld [vmem:[#allocation2 + $0x78] sm:$0xf]  ;;  %v5502_v8 = vor.u32 %v6802_v5, %v5501_v3  ;;  %v6721_v9 = vld [vmem:[#allocation2 + $0x7c] sm:$0xf]  ;;  %v4991_v10 = vld [vmem:[#allocation2 + $0x80] sm:$0xf0] }
  0x55   :  { %920 = vmatpush.bf16.msrb.mxu0 %v5190_v48  ;;  %v4990_v11 = vor.u32 %v6722_v7, %v4989_v6  ;;  %v4994_v12 = vor.u32 %v6721_v9, %v4991_v10  ;;  %v6783_v13 = vld [vmem:[#allocation7 + $0x264] sm:$0xf]  ;;  %v5431_v14 = vld [vmem:[#allocation7 + $0x268] sm:$0xf0]  ;;  %v6784_v20 = vld [vmem:[#allocation7 + $0x264] sm:$0xf0] }
  0x56   :  { %969 = vmatpush.bf16.msrb.mxu1 %v5254_v51  ;;  %v6799_v15 = vld [vmem:[#allocation7 + $0x2e4] sm:$0xf]  ;;  %v5434_v16 = vor.u32 %v6783_v13, %v5431_v14  ;;  %v5495_v17 = vld [vmem:[#allocation7 + $0x2e8] sm:$0xf0]  ;;  %v5493_v21 = vld [vmem:[#allocation7 + $0x2e0] sm:$0xf] }
  0x57   :  { %v6800_v23 = vld [vmem:[#allocation7 + $0x2e4] sm:$0xf0]  ;;  %v5125_v24 = vld [vmem:[#allocation2] sm:$0xf]  ;;  %v6659_v27 = vld [vmem:[#allocation2 + $0x4] sm:$0xf] }
  0x58   :  { %495 = vmatmul.bf16.gmra.mxu0 %v4950_v42  ;;  %v6660_v25 = vld [vmem:[#allocation2 + $0x4] sm:$0xf0]  ;;  %v5494_v26 = vor.u32 %v6800_v23, %v5493_v21  ;;  %v5127_v28 = vld [vmem:[#allocation2 + $0x8] sm:$0xf0]  ;;  %v6781_v34 = vld [vmem:[#allocation7 + $0x254] sm:$0xf] }
  0x59   :  { %544 = vmatmul.bf16.gmra.mxu1 %v4954_v43  ;;  %1399 = vmatpush.bf16.msra.mxu0 %v5438_v4  ;;  %v5126_v29 = vor.u32 %v6660_v25, %v5125_v24  ;;  %v5130_v31 = vor.u32 %v6659_v27, %v5127_v28  ;;  %v5423_v35 = vld [vmem:[#allocation7 + $0x258] sm:$0xf0]  ;;  %v6797_v36 = vld [vmem:[#allocation7 + $0x2d4] sm:$0xf]  ;;  %v5421_v46 = vld [vmem:[#allocation7 + $0x250] sm:$0xf] }
  0x5a   :  { %593 = vmatmul.bf16.gmra.mxu2 %v4950_v42  ;;  %v6691_v42 = vld [vmem:[#allocation7 + $0x84] sm:$0xf]  ;;  %1448 = vmatpush.bf16.msra.mxu1 %v5502_v8  ;;  %v5426_v37 = vor.u32 %v6781_v34, %v5423_v35  ;;  %v5485_v48 = vld [vmem:[#allocation7 + $0x2d0] sm:$0xf]  ;;  %v6798_v50 = vld [vmem:[#allocation7 + $0x2d4] sm:$0xf0] }
  0x5b   :  { %642 = vmatmul.bf16.gmra.mxu3 %v4954_v43  ;;  %v5194_v43 = vor.u32 %v6675_v40, %v5191_v41  ;;  %v5258_v47 = vor.u32 %v6691_v42, %v5255_v44  ;;  %v5133_v51 = vld [vmem:[#allocation2 + $0x10] sm:$0xf]  ;;  %v6662_v52 = vld [vmem:[#allocation2 + $0x14] sm:$0xf0]  ;;  %v5486_v53 = vor.u32 %v6798_v50, %v5485_v48  ;;  %v6661_v54 = vld [vmem:[#allocation2 + $0x14] sm:$0xf] }
  0x5c   :  { %v5135_v55 = vld [vmem:[#allocation2 + $0x18] sm:$0xf0]  ;;  %v5415_v1 = vld [vmem:[#allocation7 + $0x248] sm:$0xf0]  ;;  %v6795_v2 = vld [vmem:[#allocation7 + $0x2c4] sm:$0xf] }
  0x5d   :  { %1018 = vmatpush.bf16.msrb.mxu2 %v5194_v43  ;;  %1067 = vmatpush.bf16.msrb.mxu3 %v5258_v47  ;;  %v6782_v47 = vld [vmem:[#allocation7 + $0x254] sm:$0xf0]  ;;  %v5479_v4 = vld [vmem:[#allocation7 + $0x2c8] sm:$0xf0]  ;;  %v6780_v13 = vld [vmem:[#allocation7 + $0x244] sm:$0xf0] }
  0x5e   :  { %1449 = vmatpush.bf16.msra.mxu1 %v5494_v26  ;;  %v5422_v49 = vor.u32 %v6782_v47, %v5421_v46  ;;  %v5482_v6 = vor.u32 %v6795_v2, %v5479_v4  ;;  %v5477_v14 = vld [vmem:[#allocation7 + $0x2c0] sm:$0xf]  ;;  %v5143_v21 = vld [vmem:[#allocation2 + $0x28] sm:$0xf0]  ;;  %v5471_v35 = vld [vmem:[#allocation7 + $0x2b8] sm:$0xf0] }
  0x5f   :  { %v6778_v46 = vld [vmem:[#allocation7 + $0x234] sm:$0xf0]  ;;  %v5469_v47 = vld [vmem:[#allocation7 + $0x2b0] sm:$0xf]  ;;  %v5399_v2 = vld [vmem:[#allocation7 + $0x228] sm:$0xf0] }
  0x60   :  { %v5149_v50 = vld [vmem:[#allocation2 + $0x30] sm:$0xf] }
  0x62   :  { %1450 = vmatpush.bf16.msra.mxu1 %v5486_v53  ;;  %v6665_v53 = vld [vmem:[#allocation2 + $0x34] sm:$0xf] }
  0x68   :  { %500 = vmatmul.bf16.gmra.mxu0 %v4958_v62 }
  0x69   :  { %549 = vmatmul.bf16.gmra.mxu1 %v4962_v63 }
  0x6a   :  { %598 = vmatmul.bf16.gmra.mxu2 %v4958_v62  ;;  %v5442_v62 = vor.u32 %v6785_v59, %v5439_v60  ;;  %v5138_v60 = vor.u32 %v6661_v54, %v5135_v55  ;;  %v5151_v54 = vld [vmem:[#allocation2 + $0x38] sm:$0xf0] }
  0x6b   :  { %647 = vmatmul.bf16.gmra.mxu3 %v4962_v63  ;;  %v5503_v63 = vld [vmem:[#allocation7 + $0x2f8] sm:$0xf0] }
  0x6c   :  { %v5506_v0 = vor.u32 %v6801_v61, %v5503_v63  ;;  %1497 = vmatpush.bf16.msra.mxu2 %v5442_v62 }
  0x6e   :  { %1546 = vmatpush.bf16.msra.mxu3 %v5506_v0  ;;  %v6779_v0 = vld [vmem:[#allocation7 + $0x244] sm:$0xf] }
  0x6f   :  { %v5418_v3 = vor.u32 %v6779_v0, %v5415_v1  ;;  %v6775_v1 = vld [vmem:[#allocation7 + $0x224] sm:$0xf] }
  0x70   :  { %1498 = vmatpush.bf16.msra.mxu2 %v5434_v16  ;;  %v6796_v16 = vld [vmem:[#allocation7 + $0x2c4] sm:$0xf0]  ;;  %v5402_v4 = vor.u32 %v6775_v1, %v5399_v2  ;;  %v5167_v1 = vld [vmem:[#allocation2 + $0x58] sm:$0xf0] }
  0x74   :  { %1499 = vmatpush.bf16.msra.mxu2 %v5426_v37 }
  0x78   :  { %505 = vmatmul.bf16.gmra.mxu0 %v4966_v18  ;;  %1500 = vmatpush.bf16.msra.mxu2 %v5418_v3  ;;  %v6791_v3 = vld [vmem:[#allocation7 + $0x2a4] sm:$0xf] }
  0x79   :  { %554 = vmatmul.bf16.gmra.mxu1 %v4970_v19 }
  0x7a   :  { %603 = vmatmul.bf16.gmra.mxu2 %v4966_v18  ;;  %v5498_v18 = vor.u32 %v6799_v15, %v5495_v17  ;;  %v5141_v17 = vld [vmem:[#allocation2 + $0x20] sm:$0xf] }
  0x7b   :  { %652 = vmatmul.bf16.gmra.mxu3 %v4970_v19  ;;  %v5429_v19 = vld [vmem:[#allocation7 + $0x260] sm:$0xf] }
  0x7c   :  { %1547 = vmatpush.bf16.msra.mxu3 %v5498_v18  ;;  %v5430_v22 = vor.u32 %v6784_v20, %v5429_v19  ;;  %v6664_v18 = vld [vmem:[#allocation2 + $0x24] sm:$0xf0]  ;;  %v5478_v19 = vor.u32 %v6796_v16, %v5477_v14  ;;  %v6663_v20 = vld [vmem:[#allocation2 + $0x24] sm:$0xf] }
  0x7d   :  { %v5142_v23 = vor.u32 %v6664_v18, %v5141_v17  ;;  %v5146_v26 = vor.u32 %v6663_v20, %v5143_v21  ;;  %v6776_v16 = vld [vmem:[#allocation7 + $0x224] sm:$0xf0]  ;;  %v5461_v17 = vld [vmem:[#allocation7 + $0x2a0] sm:$0xf] }
  0x7e   :  { %1400 = vmatpush.bf16.msra.mxu0 %v5430_v22  ;;  %1451 = vmatpush.bf16.msra.mxu1 %v5478_v19  ;;  %v6792_v19 = vld [vmem:[#allocation7 + $0x2a4] sm:$0xf0]  ;;  %v5157_v20 = vld [vmem:[#allocation2 + $0x40] sm:$0xf] }
  0x7f   :  { %v6668_v21 = vld [vmem:[#allocation2 + $0x44] sm:$0xf0] }
  0x82   :  { %1401 = vmatpush.bf16.msra.mxu0 %v5422_v49  ;;  %v6794_v49 = vld [vmem:[#allocation7 + $0x2b4] sm:$0xf0] }
  0x88   :  { %510 = vmatmul.bf16.gmra.mxu0 %v4974_v38 }
  0x89   :  { %559 = vmatmul.bf16.gmra.mxu1 %v4978_v39 }
  0x8a   :  { %608 = vmatmul.bf16.gmra.mxu2 %v4974_v38  ;;  %v5487_v38 = vld [vmem:[#allocation7 + $0x2d8] sm:$0xf0] }
  0x8b   :  { %657 = vmatmul.bf16.gmra.mxu3 %v4978_v39  ;;  %v5490_v40 = vor.u32 %v6797_v36, %v5487_v38 }
  0x8d   :  { %1548 = vmatpush.bf16.msra.mxu3 %v5490_v40 }
  0x91   :  { %1549 = vmatpush.bf16.msra.mxu3 %v5482_v6 }
  0x98   :  { %515 = vmatmul.bf16.gmra.mxu0 %v4982_v57 }
  0x99   :  { %564 = vmatmul.bf16.gmra.mxu1 %v4986_v58 }
  0x9a   :  { %613 = vmatmul.bf16.gmra.mxu2 %v4982_v57  ;;  %v5134_v57 = vor.u32 %v6662_v52, %v5133_v51  ;;  %v6666_v51 = vld [vmem:[#allocation2 + $0x34] sm:$0xf0]  ;;  %v5470_v52 = vor.u32 %v6794_v49, %v5469_v47 }
  0x9b   :  { %662 = vmatmul.bf16.gmra.mxu3 %v4986_v58 }
  0x9c   :  { %1452 = vmatpush.bf16.msra.mxu1 %v5470_v52  ;;  %v5389_v52 = vld [vmem:[#allocation7 + $0x210] sm:$0xf] }
  0xa8   :  { %520 = vmatmul.bf16.gmra.mxu0 %v4990_v11 }
  0xa9   :  { %569 = vmatmul.bf16.gmra.mxu1 %v4994_v12 }
  0xaa   :  { %618 = vmatmul.bf16.gmra.mxu2 %v4990_v11 }
  0xab   :  { %667 = vmatmul.bf16.gmra.mxu3 %v4994_v12  ;;  %v5413_v12 = vld [vmem:[#allocation7 + $0x240] sm:$0xf] }
  0xac   :  { %v5414_v15 = vor.u32 %v6780_v13, %v5413_v12 }
  0xae   :  { %1402 = vmatpush.bf16.msra.mxu0 %v5414_v15  ;;  %v5397_v15 = vld [vmem:[#allocation7 + $0x220] sm:$0xf] }
  0xaf   :  { %v5398_v18 = vor.u32 %v6776_v16, %v5397_v15  ;;  %v5383_v15 = vld [vmem:[#allocation7 + $0x208] sm:$0xf0]  ;;  %v6787_v16 = vld [vmem:[#allocation7 + $0x284] sm:$0xf] }
  0xb5   :  { %v486_v30 = vpop.f32.mrf.mxu0 }
  0xb6   :  { %v535_v32 = vpop.f32.mrf.mxu1 }
  0xb7   :  { %v7320_v33 = vadd.f32 %v535_v32, %v486_v30  ;;  %v6777_v30 = vld [vmem:[#allocation7 + $0x234] sm:$0xf] }
  0xb8   :  { %921 = vmatmul.bf16.vlgmr.msrb.gmra.mxu0 %v5126_v29  ;;  %v6793_v32 = vld [vmem:[#allocation7 + $0x2b4] sm:$0xf] }
  0xb9   :  { %970 = vmatmul.bf16.vlgmr.msrb.gmra.mxu1 %v5130_v31  ;;  %v5474_v37 = vor.u32 %v6793_v32, %v5471_v35 }
  0xba   :  { %1019 = vmatmul.bf16.vlgmr.msrb.gmra.mxu2 %v5126_v29 }
  0xbb   :  { %1068 = vmatmul.bf16.vlgmr.msrb.gmra.mxu3 %v5130_v31  ;;  %v5407_v31 = vld [vmem:[#allocation7 + $0x238] sm:$0xf0] }
  0xbc   :  { %v5410_v34 = vor.u32 %v6777_v30, %v5407_v31  ;;  %1550 = vmatpush.bf16.msra.mxu3 %v5474_v37  ;;  %v5391_v37 = vld [vmem:[#allocation7 + $0x218] sm:$0xf0] }
  0xbd   :  { %v584_v39 = vpop.f32.mrf.mxu2  ;;  %v488_v42 = vpop.f32.mrf.mxu0 }
  0xbe   :  { %v633_v41 = vpop.f32.mrf.mxu3  ;;  %v537_v44 = vpop.f32.mrf.mxu1  ;;  %1501 = vmatpush.bf16.msra.mxu2 %v5410_v34 }
  0xbf   :  { %v7322_v43 = vadd.f32 %v633_v41, %v584_v39  ;;  %v7324_v45 = vadd.f32 %v537_v44, %v488_v42  ;;  %v5405_v44 = vld [vmem:[#allocation7 + $0x230] sm:$0xf] }
  0xc0   :  { %v5406_v48 = vor.u32 %v6778_v46, %v5405_v44 }
  0xc2   :  { %1403 = vmatpush.bf16.msra.mxu0 %v5406_v48  ;;  %1502 = vmatpush.bf16.msra.mxu2 %v5402_v4 }
  0xc5   :  { %v586_v56 = vpop.f32.mrf.mxu2  ;;  %v491_v59 = vpop.f32.mrf.mxu0 }
  0xc6   :  { %v635_v58 = vpop.f32.mrf.mxu3  ;;  %v540_v62 = vpop.f32.mrf.mxu1  ;;  %1404 = vmatpush.bf16.msra.mxu0 %v5398_v18  ;;  %v5447_v18 = vld [vmem:[#allocation7 + $0x288] sm:$0xf0] }
  0xc7   :  { %v7326_v61 = vadd.f32 %v635_v58, %v586_v56  ;;  %v7328_v63 = vadd.f32 %v540_v62, %v491_v59  ;;  %v5150_v56 = vor.u32 %v6666_v51, %v5149_v50  ;;  %v5154_v59 = vor.u32 %v6665_v53, %v5151_v54  ;;  %v6774_v53 = vld [vmem:[#allocation7 + $0x214] sm:$0xf0]  ;;  %v5453_v54 = vld [vmem:[#allocation7 + $0x290] sm:$0xf] }
  0xc8   :  { %926 = vmatmul.bf16.gmra.mxu0 %v5134_v57 }
  0xc9   :  { %975 = vmatmul.bf16.gmra.mxu1 %v5138_v60 }
  0xca   :  { %1024 = vmatmul.bf16.gmra.mxu2 %v5134_v57 }
  0xcb   :  { %1073 = vmatmul.bf16.gmra.mxu3 %v5138_v60 }
  0xcd   :  { %v589_v5 = vpop.f32.mrf.mxu2  ;;  %v493_v8 = vpop.f32.mrf.mxu0 }
  0xce   :  { %v638_v7 = vpop.f32.mrf.mxu3  ;;  %v542_v10 = vpop.f32.mrf.mxu1 }
  0xcf   :  { %v7330_v9 = vadd.f32 %v638_v7, %v589_v5  ;;  %v7332_v11 = vadd.f32 %v542_v10, %v493_v8  ;;  %v5463_v5 = vld [vmem:[#allocation7 + $0x2a8] sm:$0xf0] }
  0xd0   :  { %v5466_v7 = vor.u32 %v6791_v3, %v5463_v5 }
  0xd2   :  { %1551 = vmatpush.bf16.msra.mxu3 %v5466_v7 }
  0xd5   :  { %v591_v22 = vpop.f32.mrf.mxu2  ;;  %v496_v25 = vpop.f32.mrf.mxu0 }
  0xd6   :  { %v640_v24 = vpop.f32.mrf.mxu3  ;;  %v545_v28 = vpop.f32.mrf.mxu1 }
  0xd7   :  { %v7334_v27 = vadd.f32 %v640_v24, %v591_v22  ;;  %v7336_v29 = vadd.f32 %v545_v28, %v496_v25  ;;  %v5462_v22 = vor.u32 %v6792_v19, %v5461_v17  ;;  %v5159_v24 = vld [vmem:[#allocation2 + $0x48] sm:$0xf0] }
  0xd8   :  { %931 = vmatmul.bf16.gmra.mxu0 %v5142_v23 }
  0xd9   :  { %980 = vmatmul.bf16.gmra.mxu1 %v5146_v26 }
  0xda   :  { %1029 = vmatmul.bf16.gmra.mxu2 %v5142_v23  ;;  %v6667_v23 = vld [vmem:[#allocation2 + $0x44] sm:$0xf]  ;;  %1453 = vmatpush.bf16.msra.mxu1 %v5462_v22 }
  0xdb   :  { %1078 = vmatmul.bf16.gmra.mxu3 %v5146_v26  ;;  %v5158_v26 = vor.u32 %v6668_v21, %v5157_v20  ;;  %v5162_v31 = vor.u32 %v6667_v23, %v5159_v24  ;;  %v5450_v20 = vor.u32 %v6787_v16, %v5447_v18 }
  0xdd   :  { %v594_v36 = vpop.f32.mrf.mxu2  ;;  %v498_v39 = vpop.f32.mrf.mxu0 }
  0xde   :  { %v643_v38 = vpop.f32.mrf.mxu3  ;;  %v547_v41 = vpop.f32.mrf.mxu1 }
  0xdf   :  { %v7338_v40 = vadd.f32 %v643_v38, %v594_v36  ;;  %v7340_v42 = vadd.f32 %v547_v41, %v498_v39  ;;  %v6773_v36 = vld [vmem:[#allocation7 + $0x214] sm:$0xf]  ;;  %v5455_v41 = vld [vmem:[#allocation7 + $0x298] sm:$0xf0] }
  0xe0   :  { %v6789_v38 = vld [vmem:[#allocation7 + $0x294] sm:$0xf]  ;;  %v5394_v39 = vor.u32 %v6773_v36, %v5391_v37  ;;  %v5173_v36 = vld [vmem:[#allocation2 + $0x60] sm:$0xf]  ;;  %v6672_v37 = vld [vmem:[#allocation2 + $0x64] sm:$0xf0] }
  0xe1   :  { %v5458_v46 = vor.u32 %v6789_v38, %v5455_v41  ;;  %v5175_v41 = vld [vmem:[#allocation2 + $0x68] sm:$0xf0] }
  0xe2   :  { %1503 = vmatpush.bf16.msra.mxu2 %v5394_v39  ;;  %v6671_v39 = vld [vmem:[#allocation2 + $0x64] sm:$0xf] }
  0xe3   :  { %1552 = vmatpush.bf16.msra.mxu3 %v5458_v46  ;;  %v5174_v46 = vor.u32 %v6672_v37, %v5173_v36 }
  0xe5   :  { %v596_v55 = vpop.f32.mrf.mxu2  ;;  %v501_v58 = vpop.f32.mrf.mxu0 }
  0xe6   :  { %v645_v57 = vpop.f32.mrf.mxu3  ;;  %v550_v62 = vpop.f32.mrf.mxu1 }
  0xe7   :  { %v7342_v60 = vadd.f32 %v645_v57, %v596_v55  ;;  %v7344_v0 = vadd.f32 %v550_v62, %v501_v58  ;;  %v5390_v55 = vor.u32 %v6774_v53, %v5389_v52  ;;  %v5165_v57 = vld [vmem:[#allocation2 + $0x50] sm:$0xf]  ;;  %v6670_v58 = vld [vmem:[#allocation2 + $0x54] sm:$0xf0]  ;;  %v6669_v62 = vld [vmem:[#allocation2 + $0x54] sm:$0xf]  ;;  %1553 = vmatpush.bf16.msra.mxu3 %v5450_v20 }
  0xe8   :  { %936 = vmatmul.bf16.gmra.mxu0 %v5150_v56  ;;  %v5166_v3 = vor.u32 %v6670_v58, %v5165_v57 }
  0xe9   :  { %985 = vmatmul.bf16.gmra.mxu1 %v5154_v59  ;;  %1405 = vmatpush.bf16.msra.mxu0 %v5390_v55 }
  0xea   :  { %1034 = vmatmul.bf16.gmra.mxu2 %v5150_v56  ;;  %v6790_v56 = vld [vmem:[#allocation7 + $0x294] sm:$0xf0] }
  0xeb   :  { %1083 = vmatmul.bf16.gmra.mxu3 %v5154_v59  ;;  %v5454_v59 = vor.u32 %v6790_v56, %v5453_v54 }
  0xed   :  { %v599_v6 = vpop.f32.mrf.mxu2  ;;  %v503_v10 = vpop.f32.mrf.mxu0  ;;  %1454 = vmatpush.bf16.msra.mxu1 %v5454_v59 }
  0xee   :  { %v648_v8 = vpop.f32.mrf.mxu3  ;;  %v552_v13 = vpop.f32.mrf.mxu1 }
  0xef   :  { %v7346_v12 = vadd.f32 %v648_v8, %v599_v6  ;;  %v7348_v14 = vadd.f32 %v552_v13, %v503_v10  ;;  %v5170_v6 = vor.u32 %v6669_v62, %v5167_v1  ;;  %v6771_v13 = vld [vmem:[#allocation7 + $0x204] sm:$0xf]  ;;  %v5181_v1 = vld [vmem:[#allocation2 + $0x70] sm:$0xf] }
  0xf0   :  { %v5386_v17 = vor.u32 %v6771_v13, %v5383_v15 }
  0xf2   :  { %1504 = vmatpush.bf16.msra.mxu2 %v5386_v17 }
  0xf5   :  { %v601_v25 = vpop.f32.mrf.mxu2  ;;  %v506_v30 = vpop.f32.mrf.mxu0 }
  0xf6   :  { %v650_v28 = vpop.f32.mrf.mxu3  ;;  %v555_v34 = vpop.f32.mrf.mxu1 }
  0xf7   :  { %v7350_v32 = vadd.f32 %v650_v28, %v601_v25  ;;  %v7352_v35 = vadd.f32 %v555_v34, %v506_v30  ;;  %v6772_v28 = vld [vmem:[#allocation7 + $0x204] sm:$0xf0]  ;;  %v5445_v30 = vld [vmem:[#allocation7 + $0x280] sm:$0xf] }
  0xf8   :  { %941 = vmatmul.bf16.gmra.mxu0 %v5158_v26  ;;  %v6788_v34 = vld [vmem:[#allocation7 + $0x284] sm:$0xf0] }
  0xf9   :  { %990 = vmatmul.bf16.gmra.mxu1 %v5162_v31  ;;  %v5446_v38 = vor.u32 %v6788_v34, %v5445_v30  ;;  %v6756_v30 = vld [vmem:[#allocation2 + $0x14] sm:$0xf0]  ;;  %v5319_v34 = vld [vmem:[#allocation2 + $0x18] sm:$0xf0] }
  0xfa   :  { %1039 = vmatmul.bf16.gmra.mxu2 %v5158_v26  ;;  %v5381_v26 = vld [vmem:[#allocation7 + $0x200] sm:$0xf] }
  0xfb   :  { %1088 = vmatmul.bf16.gmra.mxu3 %v5162_v31  ;;  %v5382_v31 = vor.u32 %v6772_v28, %v5381_v26  ;;  %1455 = vmatpush.bf16.msra.mxu1 %v5446_v38  ;;  %v5317_v28 = vld [vmem:[#allocation2 + $0x10] sm:$0xf] }
  0xfc   :  { %v5318_v37 = vor.u32 %v6756_v30, %v5317_v28  ;;  %v6757_v28 = vld [vmem:[#allocation2 + $0x24] sm:$0xf] }
  0xfd   :  { %v604_v44 = vpop.f32.mrf.mxu2  ;;  %v508_v48 = vpop.f32.mrf.mxu0  ;;  %1406 = vmatpush.bf16.msra.mxu0 %v5382_v31  ;;  %v6755_v31 = vld [vmem:[#allocation2 + $0x14] sm:$0xf] }
  0xfe   :  { %v653_v47 = vpop.f32.mrf.mxu3  ;;  %v557_v50 = vpop.f32.mrf.mxu1 }
  0xff   :  { %v7354_v49 = vadd.f32 %v653_v47, %v604_v44  ;;  %v7356_v51 = vadd.f32 %v557_v50, %v508_v48  ;;  %v5178_v50 = vor.u32 %v6671_v39, %v5175_v41  ;;  %v5322_v41 = vor.u32 %v6755_v31, %v5319_v34 }
 0x105   :  { %v606_v2 = vpop.f32.mrf.mxu2  ;;  %v511_v5 = vpop.f32.mrf.mxu0 }
 0x106   :  { %v655_v4 = vpop.f32.mrf.mxu3  ;;  %v560_v8 = vpop.f32.mrf.mxu1 }
 0x107   :  { %v7358_v7 = vadd.f32 %v655_v4, %v606_v2  ;;  %v7360_v10 = vadd.f32 %v560_v8, %v511_v5  ;;  %v6674_v2 = vld [vmem:[#allocation2 + $0x74] sm:$0xf0]  ;;  %v5183_v4 = vld [vmem:[#allocation2 + $0x78] sm:$0xf0] }
 0x108   :  { %946 = vmatmul.bf16.gmra.mxu0 %v5166_v3 }
 0x109   :  { %995 = vmatmul.bf16.gmra.mxu1 %v5170_v6 }
 0x10a   :  { %1044 = vmatmul.bf16.gmra.mxu2 %v5166_v3  ;;  %v6673_v3 = vld [vmem:[#allocation2 + $0x74] sm:$0xf] }
 0x10b   :  { %1093 = vmatmul.bf16.gmra.mxu3 %v5170_v6  ;;  %v5182_v6 = vor.u32 %v6674_v2, %v5181_v1  ;;  %v5186_v15 = vor.u32 %v6673_v3, %v5183_v4 }
 0x10d   :  { %v609_v19 = vpop.f32.mrf.mxu2  ;;  %v513_v22 = vpop.f32.mrf.mxu0 }
 0x10e   :  { %v658_v21 = vpop.f32.mrf.mxu3  ;;  %v562_v24 = vpop.f32.mrf.mxu1 }
 0x10f   :  { %v7362_v23 = vadd.f32 %v658_v21, %v609_v19  ;;  %v7364_v25 = vadd.f32 %v562_v24, %v513_v22 }
 0x115   :  { %v611_v44 = vpop.f32.mrf.mxu2  ;;  %v516_v48 = vpop.f32.mrf.mxu0 }
 0x116   :  { %v660_v47 = vpop.f32.mrf.mxu3  ;;  %v565_v53 = vpop.f32.mrf.mxu1 }
 0x117   :  { %v7366_v52 = vadd.f32 %v660_v47, %v611_v44  ;;  %v7368_v54 = vadd.f32 %v565_v53, %v516_v48  ;;  %v5631_v53 = vld [vmem:[#allocation10 + $0x178] sm:$0xf0] }
 0x118   :  { %951 = vmatmul.bf16.gmra.mxu0 %v5174_v46 }
 0x119   :  { %1000 = vmatmul.bf16.gmra.mxu1 %v5178_v50 }
 0x11a   :  { %1049 = vmatmul.bf16.gmra.mxu2 %v5174_v46 }
 0x11b   :  { %1098 = vmatmul.bf16.gmra.mxu3 %v5178_v50  ;;  %v6881_v50 = vld [vmem:[#allocation10 + $0x174] sm:$0xf] }
 0x11d   :  { %v614_v55 = vpop.f32.mrf.mxu2  ;;  %v518_v57 = vpop.f32.mrf.mxu0 }
 0x11e   :  { %v663_v56 = vpop.f32.mrf.mxu3  ;;  %v567_v59 = vpop.f32.mrf.mxu1 }
 0x11f   :  { %v7370_v58 = vadd.f32 %v663_v56, %v614_v55  ;;  %v7372_v62 = vadd.f32 %v567_v59, %v518_v57  ;;  %v6897_v55 = vld [vmem:[#allocation10 + $0x1f4] sm:$0xf]  ;;  %v5634_v56 = vor.u32 %v6881_v50, %v5631_v53  ;;  %v5695_v57 = vld [vmem:[#allocation10 + $0x1f8] sm:$0xf0]  ;;  %v6879_v50 = vld [vmem:[#allocation10 + $0x164] sm:$0xf] }
 0x120   :  { %v5698_v1 = vor.u32 %v6897_v55, %v5695_v57  ;;  %v5623_v53 = vld [vmem:[#allocation10 + $0x168] sm:$0xf0]  ;;  %v6895_v55 = vld [vmem:[#allocation10 + $0x1e4] sm:$0xf] }
 0x121   :  { %2168 = vmatpush.bf16.msrb.mxu2 %v5634_v56  ;;  %v5626_v56 = vor.u32 %v6879_v50, %v5623_v53  ;;  %v5687_v57 = vld [vmem:[#allocation10 + $0x1e8] sm:$0xf0]  ;;  %v6877_v50 = vld [vmem:[#allocation10 + $0x154] sm:$0xf]  ;;  %v5615_v53 = vld [vmem:[#allocation10 + $0x158] sm:$0xf0] }
 0x122   :  { %2217 = vmatpush.bf16.msrb.mxu3 %v5698_v1 }
 0x125   :  { %v616_v5 = vpop.f32.mrf.mxu2  ;;  %v521_v13 = vpop.f32.mrf.mxu0  ;;  %2169 = vmatpush.bf16.msrb.mxu2 %v5626_v56  ;;  %v5618_v56 = vor.u32 %v6877_v50, %v5615_v53  ;;  %v6875_v50 = vld [vmem:[#allocation10 + $0x144] sm:$0xf]  ;;  %v5607_v53 = vld [vmem:[#allocation10 + $0x148] sm:$0xf0] }
 0x126   :  { %v665_v8 = vpop.f32.mrf.mxu3  ;;  %v570_v17 = vpop.f32.mrf.mxu1 }
 0x127   :  { %v7374_v16 = vadd.f32 %v665_v8, %v616_v5  ;;  %v7376_v18 = vadd.f32 %v570_v17, %v521_v13  ;;  %v5629_v13 = vld [vmem:[#allocation10 + $0x170] sm:$0xf] }
 0x128   :  { %956 = vmatmul.bf16.gmra.mxu0 %v5182_v6  ;;  %v5693_v17 = vld [vmem:[#allocation10 + $0x1f0] sm:$0xf] }
 0x129   :  { %1005 = vmatmul.bf16.gmra.mxu1 %v5186_v15  ;;  %2170 = vmatpush.bf16.msrb.mxu2 %v5618_v56  ;;  %v5610_v56 = vor.u32 %v6875_v50, %v5607_v53  ;;  %v6873_v50 = vld [vmem:[#allocation10 + $0x134] sm:$0xf]  ;;  %v5599_v53 = vld [vmem:[#allocation10 + $0x138] sm:$0xf0] }
 0x12a   :  { %1054 = vmatmul.bf16.gmra.mxu2 %v5182_v6 }
 0x12b   :  { %1103 = vmatmul.bf16.gmra.mxu3 %v5186_v15  ;;  %v6882_v15 = vld [vmem:[#allocation10 + $0x174] sm:$0xf0] }
 0x12d   :  { %v619_v19 = vpop.f32.mrf.mxu2  ;;  %v523_v21 = vpop.f32.mrf.mxu0  ;;  %2171 = vmatpush.bf16.msrb.mxu2 %v5610_v56  ;;  %v5602_v56 = vor.u32 %v6873_v50, %v5599_v53  ;;  %v5655_v53 = vld [vmem:[#allocation10 + $0x1a8] sm:$0xf0] }
 0x12e   :  { %v668_v20 = vpop.f32.mrf.mxu3  ;;  %v572_v24 = vpop.f32.mrf.mxu1 }
 0x12f   :  { %v7378_v22 = vadd.f32 %v668_v20, %v619_v19  ;;  %v7380_v26 = vadd.f32 %v572_v24, %v523_v21  ;;  %v5325_v19 = vld [vmem:[#allocation2 + $0x20] sm:$0xf]  ;;  %v6758_v20 = vld [vmem:[#allocation2 + $0x24] sm:$0xf0]  ;;  %v5630_v21 = vor.u32 %v6882_v15, %v5629_v13  ;;  %v6898_v24 = vld [vmem:[#allocation10 + $0x1f4] sm:$0xf0] }
 0x130   :  { %v5694_v30 = vor.u32 %v6898_v24, %v5693_v17  ;;  %v5326_v34 = vor.u32 %v6758_v20, %v5325_v19  ;;  %v5621_v13 = vld [vmem:[#allocation10 + $0x160] sm:$0xf]  ;;  %v6880_v15 = vld [vmem:[#allocation10 + $0x164] sm:$0xf0]  ;;  %v5333_v19 = vld [vmem:[#allocation2 + $0x30] sm:$0xf] }
 0x131   :  { %2070 = vmatpush.bf16.msrb.mxu0 %v5630_v21  ;;  %v5685_v17 = vld [vmem:[#allocation10 + $0x1e0] sm:$0xf]  ;;  %v6760_v20 = vld [vmem:[#allocation2 + $0x34] sm:$0xf0]  ;;  %v5622_v21 = vor.u32 %v6880_v15, %v5621_v13  ;;  %v6896_v24 = vld [vmem:[#allocation10 + $0x1e4] sm:$0xf0]  ;;  %2172 = vmatpush.bf16.msrb.mxu2 %v5602_v56 }
 0x132   :  { %2119 = vmatpush.bf16.msrb.mxu1 %v5694_v30  ;;  %v5613_v13 = vld [vmem:[#allocation10 + $0x150] sm:$0xf]  ;;  %v6878_v15 = vld [vmem:[#allocation10 + $0x154] sm:$0xf0] }
 0x135   :  { %v621_v36 = vpop.f32.mrf.mxu2  ;;  %v922_v39 = vpop.f32.mrf.mxu0  ;;  %2071 = vmatpush.bf16.msrb.mxu0 %v5622_v21  ;;  %v5614_v21 = vor.u32 %v6878_v15, %v5613_v13  ;;  %v5605_v13 = vld [vmem:[#allocation10 + $0x140] sm:$0xf]  ;;  %v6876_v15 = vld [vmem:[#allocation10 + $0x144] sm:$0xf0] }
 0x136   :  { %v670_v38 = vpop.f32.mrf.mxu3  ;;  %v923_v46 = vadd.f32 %v922_v39, %v7320_v33  ;;  %v971_v47 = vpop.f32.mrf.mxu1 }
 0x137   :  { %v7382_v44 = vadd.f32 %v670_v38, %v621_v36 }
 0x138   :  { %v7385_v48 = vadd.f32 %v971_v47, %v923_v46  ;;  %1407 = vmatmul.bf16.vlgmr.msra.gmra.mxu0 %v5318_v37 }
 0x139   :  { %8069 = vst [vmem:[#allocation18_spill] sm:$0xff] %v7382_v44  ;;  %1456 = vmatmul.bf16.vlgmr.msra.gmra.mxu1 %v5322_v41  ;;  %2072 = vmatpush.bf16.msrb.mxu0 %v5614_v21  ;;  %v5606_v21 = vor.u32 %v6876_v15, %v5605_v13  ;;  %v5661_v13 = vld [vmem:[#allocation10 + $0x1b0] sm:$0xf]  ;;  %v5357_v15 = vld [vmem:[#allocation2 + $0x60] sm:$0xf] }
 0x13a   :  { %1505 = vmatmul.bf16.vlgmr.msra.gmra.mxu2 %v5318_v37 }
 0x13b   :  { %1554 = vmatmul.bf16.vlgmr.msra.gmra.mxu3 %v5322_v41 }
 0x13d   :  { %v1020_v59 = vpop.f32.mrf.mxu2  ;;  %v924_v4 = vpop.f32.mrf.mxu0  ;;  %2073 = vmatpush.bf16.msrb.mxu0 %v5606_v21  ;;  %v6765_v21 = vld [vmem:[#allocation2 + $0x64] sm:$0xf] }
 0x13e   :  { %v1021_v2 = vadd.f32 %v1020_v59, %v7322_v43  ;;  %v1069_v3 = vpop.f32.mrf.mxu3  ;;  %v925_v33 = vadd.f32 %v924_v4, %v7324_v45  ;;  %v973_v5 = vpop.f32.mrf.mxu1  ;;  %v5327_v43 = vld [vmem:[#allocation2 + $0x28] sm:$0xf0]  ;;  %v5690_v59 = vor.u32 %v6895_v55, %v5687_v57  ;;  %v6893_v55 = vld [vmem:[#allocation10 + $0x1d4] sm:$0xf]  ;;  %v5679_v57 = vld [vmem:[#allocation10 + $0x1d8] sm:$0xf0] }
 0x13f   :  { %v5330_v38 = vor.u32 %v6757_v28, %v5327_v43  ;;  %v6759_v28 = vld [vmem:[#allocation2 + $0x34] sm:$0xf]  ;;  %v5686_v43 = vor.u32 %v6896_v24, %v5685_v17  ;;  %v6894_v24 = vld [vmem:[#allocation10 + $0x1d4] sm:$0xf0] }
 0x140   :  { %v7389_v6 = vadd.f32 %v1069_v3, %v1021_v2  ;;  %v7391_v8 = vadd.f32 %v973_v5, %v925_v33  ;;  %2218 = vmatpush.bf16.msrb.mxu3 %v5690_v59  ;;  %v5677_v17 = vld [vmem:[#allocation10 + $0x1d0] sm:$0xf] }
 0x141   :  { %2120 = vmatpush.bf16.msrb.mxu1 %v5686_v43 }
 0x145   :  { %v1022_v31 = vpop.f32.mrf.mxu2  ;;  %v927_v37 = vpop.f32.mrf.mxu0 }
 0x146   :  { %v1023_v45 = vadd.f32 %v1022_v31, %v7326_v61  ;;  %v1071_v36 = vpop.f32.mrf.mxu3  ;;  %v928_v39 = vadd.f32 %v927_v37, %v7328_v63  ;;  %v976_v41 = vpop.f32.mrf.mxu1  ;;  %v5334_v31 = vor.u32 %v6760_v20, %v5333_v19  ;;  %v5341_v19 = vld [vmem:[#allocation2 + $0x40] sm:$0xf]  ;;  %v6762_v20 = vld [vmem:[#allocation2 + $0x44] sm:$0xf0] }
 0x148   :  { %v7395_v46 = vadd.f32 %v1071_v36, %v1023_v45  ;;  %v7397_v47 = vadd.f32 %v976_v41, %v928_v39  ;;  %1412 = vmatmul.bf16.gmra.mxu0 %v5326_v34 }
 0x149   :  { %1461 = vmatmul.bf16.gmra.mxu1 %v5330_v38 }
 0x14a   :  { %1510 = vmatmul.bf16.gmra.mxu2 %v5326_v34 }
 0x14b   :  { %1559 = vmatmul.bf16.gmra.mxu3 %v5330_v38 }
 0x14d   :  { %v1025_v61 = vpop.f32.mrf.mxu2  ;;  %v929_v63 = vpop.f32.mrf.mxu0 }
 0x14e   :  { %v1026_v1 = vadd.f32 %v1025_v61, %v7330_v9  ;;  %v1074_v2 = vpop.f32.mrf.mxu3  ;;  %v930_v3 = vadd.f32 %v929_v63, %v7332_v11  ;;  %v978_v4 = vpop.f32.mrf.mxu1  ;;  %v5335_v9 = vld [vmem:[#allocation2 + $0x38] sm:$0xf0]  ;;  %v5682_v61 = vor.u32 %v6893_v55, %v5679_v57  ;;  %v6891_v55 = vld [vmem:[#allocation10 + $0x1c4] sm:$0xf]  ;;  %v5671_v57 = vld [vmem:[#allocation10 + $0x1c8] sm:$0xf0] }
 0x14f   :  { %v5338_v36 = vor.u32 %v6759_v28, %v5335_v9  ;;  %v6761_v28 = vld [vmem:[#allocation2 + $0x44] sm:$0xf]  ;;  %v5678_v9 = vor.u32 %v6894_v24, %v5677_v17  ;;  %v6892_v24 = vld [vmem:[#allocation10 + $0x1c4] sm:$0xf0] }
 0x150   :  { %v7401_v33 = vadd.f32 %v1074_v2, %v1026_v1  ;;  %v7403_v5 = vadd.f32 %v978_v4, %v930_v3  ;;  %2219 = vmatpush.bf16.msrb.mxu3 %v5682_v61  ;;  %v5669_v17 = vld [vmem:[#allocation10 + $0x1c0] sm:$0xf] }
 0x151   :  { %2121 = vmatpush.bf16.msrb.mxu1 %v5678_v9 }
 0x155   :  { %v1027_v30 = vpop.f32.mrf.mxu2  ;;  %v932_v45 = vpop.f32.mrf.mxu0 }
 0x156   :  { %v1028_v11 = vadd.f32 %v1027_v30, %v7334_v27  ;;  %v1076_v34 = vpop.f32.mrf.mxu3  ;;  %v933_v37 = vadd.f32 %v932_v45, %v7336_v29  ;;  %v981_v38 = vpop.f32.mrf.mxu1  ;;  %v5342_v30 = vor.u32 %v6762_v20, %v5341_v19  ;;  %v5349_v19 = vld [vmem:[#allocation2 + $0x50] sm:$0xf]  ;;  %v6764_v20 = vld [vmem:[#allocation2 + $0x54] sm:$0xf0] }
 0x158   :  { %v7407_v39 = vadd.f32 %v1076_v34, %v1028_v11  ;;  %v7409_v41 = vadd.f32 %v981_v38, %v933_v37  ;;  %1417 = vmatmul.bf16.gmra.mxu0 %v5334_v31 }
 0x159   :  { %1466 = vmatmul.bf16.gmra.mxu1 %v5338_v36 }
 0x15a   :  { %1515 = vmatmul.bf16.gmra.mxu2 %v5334_v31 }
 0x15b   :  { %1564 = vmatmul.bf16.gmra.mxu3 %v5338_v36 }
 0x15d   :  { %v1030_v27 = vpop.f32.mrf.mxu2  ;;  %v934_v29 = vpop.f32.mrf.mxu0 }
 0x15e   :  { %v1031_v59 = vadd.f32 %v1030_v27, %v7338_v40  ;;  %v1079_v1 = vpop.f32.mrf.mxu3  ;;  %v935_v2 = vadd.f32 %v934_v29, %v7340_v42  ;;  %v983_v63 = vpop.f32.mrf.mxu1  ;;  %v5343_v40 = vld [vmem:[#allocation2 + $0x48] sm:$0xf0]  ;;  %v5674_v27 = vor.u32 %v6891_v55, %v5671_v57  ;;  %v6889_v55 = vld [vmem:[#allocation10 + $0x1b4] sm:$0xf]  ;;  %v5663_v57 = vld [vmem:[#allocation10 + $0x1b8] sm:$0xf0] }
 0x15f   :  { %v5346_v34 = vor.u32 %v6761_v28, %v5343_v40  ;;  %v6763_v28 = vld [vmem:[#allocation2 + $0x54] sm:$0xf]  ;;  %v5670_v40 = vor.u32 %v6892_v24, %v5669_v17  ;;  %v6766_v17 = vld [vmem:[#allocation2 + $0x64] sm:$0xf0]  ;;  %v5359_v24 = vld [vmem:[#allocation2 + $0x68] sm:$0xf0] }
 0x160   :  { %v7413_v3 = vadd.f32 %v1079_v1, %v1031_v59  ;;  %v7415_v4 = vadd.f32 %v983_v63, %v935_v2  ;;  %2220 = vmatpush.bf16.msrb.mxu3 %v5674_v27 }
 0x161   :  { %2122 = vmatpush.bf16.msrb.mxu1 %v5670_v40 }
 0x165   :  { %v1032_v43 = vpop.f32.mrf.mxu2  ;;  %v937_v11 = vpop.f32.mrf.mxu0 }
 0x166   :  { %v1033_v42 = vadd.f32 %v1032_v43, %v7342_v60  ;;  %v1081_v31 = vpop.f32.mrf.mxu3  ;;  %v938_v45 = vadd.f32 %v937_v11, %v7344_v0  ;;  %v986_v36 = vpop.f32.mrf.mxu1  ;;  %v5350_v43 = vor.u32 %v6764_v20, %v5349_v19  ;;  %v6890_v20 = vld [vmem:[#allocation10 + $0x1b4] sm:$0xf0] }
 0x168   :  { %v7419_v37 = vadd.f32 %v1081_v31, %v1033_v42  ;;  %v7421_v38 = vadd.f32 %v986_v36, %v938_v45  ;;  %1422 = vmatmul.bf16.gmra.mxu0 %v5342_v30 }
 0x169   :  { %1471 = vmatmul.bf16.gmra.mxu1 %v5346_v34 }
 0x16a   :  { %1520 = vmatmul.bf16.gmra.mxu2 %v5342_v30 }
 0x16b   :  { %1569 = vmatmul.bf16.gmra.mxu3 %v5346_v34 }
 0x16d   :  { %v1035_v60 = vpop.f32.mrf.mxu2  ;;  %v939_v0 = vpop.f32.mrf.mxu0 }
 0x16e   :  { %v1036_v61 = vadd.f32 %v1035_v60, %v7346_v12  ;;  %v1084_v59 = vpop.f32.mrf.mxu3  ;;  %v940_v1 = vadd.f32 %v939_v0, %v7348_v14  ;;  %v988_v29 = vpop.f32.mrf.mxu1  ;;  %v5351_v12 = vld [vmem:[#allocation2 + $0x58] sm:$0xf0]  ;;  %v5666_v60 = vor.u32 %v6889_v55, %v5663_v57 }
 0x16f   :  { %v5354_v31 = vor.u32 %v6763_v28, %v5351_v12  ;;  %v5662_v28 = vor.u32 %v6890_v20, %v5661_v13  ;;  %v5358_v12 = vor.u32 %v6766_v17, %v5357_v15  ;;  %v5365_v13 = vld [vmem:[#allocation2 + $0x70] sm:$0xf]  ;;  %v6768_v15 = vld [vmem:[#allocation2 + $0x74] sm:$0xf0]  ;;  %v6767_v20 = vld [vmem:[#allocation2 + $0x74] sm:$0xf] }
 0x170   :  { %v7425_v2 = vadd.f32 %v1084_v59, %v1036_v61  ;;  %v7427_v63 = vadd.f32 %v988_v29, %v940_v1  ;;  %2221 = vmatpush.bf16.msrb.mxu3 %v5666_v60  ;;  %v5597_v1 = vld [vmem:[#allocation10 + $0x130] sm:$0xf]  ;;  %v6874_v29 = vld [vmem:[#allocation10 + $0x134] sm:$0xf0] }
 0x171   :  { %v5598_v19 = vor.u32 %v6874_v29, %v5597_v1  ;;  %2123 = vmatpush.bf16.msrb.mxu1 %v5662_v28  ;;  %v6872_v1 = vld [vmem:[#allocation10 + $0x124] sm:$0xf0]  ;;  %v5653_v29 = vld [vmem:[#allocation10 + $0x1a0] sm:$0xf]  ;;  %v5366_v28 = vor.u32 %v6768_v15, %v5365_v13 }
 0x172   :  { %v5373_v13 = vld [vmem:[#allocation2 + $0x80] sm:$0xf]  ;;  %v6770_v15 = vld [vmem:[#allocation2 + $0x84] sm:$0xf0] }
 0x173   :  { %2074 = vmatpush.bf16.msrb.mxu0 %v5598_v19  ;;  %v6888_v19 = vld [vmem:[#allocation10 + $0x1a4] sm:$0xf0] }
 0x175   :  { %v1037_v9 = vpop.f32.mrf.mxu2  ;;  %v942_v42 = vpop.f32.mrf.mxu0 }
 0x176   :  { %v1038_v14 = vadd.f32 %v1037_v9, %v7350_v32  ;;  %v1086_v30 = vpop.f32.mrf.mxu3  ;;  %v943_v11 = vadd.f32 %v942_v42, %v7352_v35  ;;  %v991_v34 = vpop.f32.mrf.mxu1 }
 0x178   :  { %v7431_v45 = vadd.f32 %v1086_v30, %v1038_v14  ;;  %v7433_v36 = vadd.f32 %v991_v34, %v943_v11  ;;  %1427 = vmatmul.bf16.gmra.mxu0 %v5350_v43  ;;  %v5591_v11 = vld [vmem:[#allocation10 + $0x128] sm:$0xf0]  ;;  %v6887_v34 = vld [vmem:[#allocation10 + $0x1a4] sm:$0xf] }
 0x179   :  { %1476 = vmatmul.bf16.gmra.mxu1 %v5354_v31  ;;  %v5658_v56 = vor.u32 %v6887_v34, %v5655_v53 }
 0x17a   :  { %1525 = vmatmul.bf16.gmra.mxu2 %v5350_v43  ;;  %v5362_v43 = vor.u32 %v6765_v21, %v5359_v24  ;;  %v5367_v21 = vld [vmem:[#allocation2 + $0x78] sm:$0xf0]  ;;  %v5654_v24 = vor.u32 %v6888_v19, %v5653_v29  ;;  %v5375_v19 = vld [vmem:[#allocation2 + $0x88] sm:$0xf0] }
 0x17b   :  { %1574 = vmatmul.bf16.gmra.mxu3 %v5354_v31  ;;  %v6871_v31 = vld [vmem:[#allocation10 + $0x124] sm:$0xf] }
 0x17c   :  { %v5594_v50 = vor.u32 %v6871_v31, %v5591_v11  ;;  %2222 = vmatpush.bf16.msrb.mxu3 %v5658_v56  ;;  %2124 = vmatpush.bf16.msrb.mxu1 %v5654_v24  ;;  %v5583_v56 = vld [vmem:[#allocation10 + $0x118] sm:$0xf0] }
 0x17d   :  { %v1040_v32 = vpop.f32.mrf.mxu2  ;;  %v7436_v35 = vpop.f32.mrf.mxu0 }
 0x17e   :  { %v1041_v27 = vadd.f32 %v1040_v32, %v7354_v49  ;;  %v1089_v61 = vpop.f32.mrf.mxu3  ;;  %v7438_v59 = vpop.f32.mrf.mxu1  ;;  %2173 = vmatpush.bf16.msrb.mxu2 %v5594_v50 }
 0x180   :  { %v7440_v0 = vadd.f32 %v1089_v61, %v1041_v27  ;;  %v5589_v61 = vld [vmem:[#allocation10 + $0x120] sm:$0xf] }
 0x181   :  { %v5590_v17 = vor.u32 %v6872_v1, %v5589_v61 }
 0x183   :  { %2075 = vmatpush.bf16.msrb.mxu0 %v5590_v17  ;;  %v6769_v17 = vld [vmem:[#allocation2 + $0x84] sm:$0xf] }
 0x185   :  { %v7442_v49 = vpop.f32.mrf.mxu2  ;;  %v947_v9 = vpop.f32.mrf.mxu0 }
 0x186   :  { %v7444_v40 = vpop.f32.mrf.mxu3  ;;  %v948_v14 = vadd.f32 %v947_v9, %v7360_v10  ;;  %v996_v30 = vpop.f32.mrf.mxu1 }
 0x188   :  { %v7447_v42 = vadd.f32 %v996_v30, %v948_v14  ;;  %1432 = vmatmul.bf16.gmra.mxu0 %v5358_v12 }
 0x189   :  { %1481 = vmatmul.bf16.gmra.mxu1 %v5362_v43 }
 0x18a   :  { %1530 = vmatmul.bf16.gmra.mxu2 %v5358_v12 }
 0x18b   :  { %1579 = vmatmul.bf16.gmra.mxu3 %v5362_v43  ;;  %v5370_v43 = vor.u32 %v6767_v20, %v5367_v21  ;;  %v5374_v20 = vor.u32 %v6770_v15, %v5373_v13  ;;  %v6867_v15 = vld [vmem:[#allocation10 + $0x104] sm:$0xf] }
 0x18d   :  { %v1045_v55 = vpop.f32.mrf.mxu2  ;;  %v7450_v60 = vpop.f32.mrf.mxu0 }
 0x18e   :  { %v1046_v57 = vadd.f32 %v1045_v55, %v7362_v23  ;;  %v1094_v32 = vpop.f32.mrf.mxu3  ;;  %v7452_v10 = vpop.f32.mrf.mxu1  ;;  %v6869_v55 = vld [vmem:[#allocation10 + $0x114] sm:$0xf] }
 0x18f   :  { %v5586_v61 = vor.u32 %v6869_v55, %v5583_v56  ;;  %v6886_v55 = vld [vmem:[#allocation10 + $0x194] sm:$0xf0] }
 0x190   :  { %v7454_v27 = vadd.f32 %v1094_v32, %v1046_v57  ;;  %v6885_v57 = vld [vmem:[#allocation10 + $0x194] sm:$0xf] }
 0x191   :  { %2174 = vmatpush.bf16.msrb.mxu2 %v5586_v61 }
 0x195   :  { %v7456_v23 = vpop.f32.mrf.mxu2  ;;  %v952_v9 = vpop.f32.mrf.mxu0 }
 0x196   :  { %v7458_v12 = vpop.f32.mrf.mxu3  ;;  %v953_v14 = vadd.f32 %v952_v9, %v7368_v54  ;;  %v1001_v30 = vpop.f32.mrf.mxu1  ;;  %v5647_v54 = vld [vmem:[#allocation10 + $0x198] sm:$0xf0] }
 0x197   :  { %v5650_v29 = vor.u32 %v6885_v57, %v5647_v54 }
 0x198   :  { %v7461_v31 = vadd.f32 %v1001_v30, %v953_v14  ;;  %1437 = vmatmul.bf16.gmra.mxu0 %v5366_v28  ;;  %v5581_v30 = vld [vmem:[#allocation10 + $0x110] sm:$0xf] }
 0x199   :  { %1486 = vmatmul.bf16.gmra.mxu1 %v5370_v43  ;;  %2223 = vmatpush.bf16.msrb.mxu3 %v5650_v29 }
 0x19a   :  { %1535 = vmatmul.bf16.gmra.mxu2 %v5366_v28  ;;  %v5378_v28 = vor.u32 %v6769_v17, %v5375_v19  ;;  %v5575_v17 = vld [vmem:[#allocation10 + $0x108] sm:$0xf0]  ;;  %v6883_v19 = vld [vmem:[#allocation10 + $0x184] sm:$0xf] }
 0x19b   :  { %1584 = vmatmul.bf16.gmra.mxu3 %v5370_v43 }
 0x19d   :  { %v1050_v11 = vpop.f32.mrf.mxu2  ;;  %v7464_v53 = vpop.f32.mrf.mxu0 }
 0x19e   :  { %v1051_v34 = vadd.f32 %v1050_v11, %v7370_v58  ;;  %v1099_v50 = vpop.f32.mrf.mxu3  ;;  %v7466_v32 = vpop.f32.mrf.mxu1  ;;  %v6870_v11 = vld [vmem:[#allocation10 + $0x114] sm:$0xf0] }
 0x1a0   :  { %v7468_v1 = vadd.f32 %v1099_v50, %v1051_v34  ;;  %v5645_v34 = vld [vmem:[#allocation10 + $0x190] sm:$0xf]  ;;  %v5582_v50 = vor.u32 %v6870_v11, %v5581_v30  ;;  %v6868_v30 = vld [vmem:[#allocation10 + $0x104] sm:$0xf0] }
 0x1a1   :  { %v5646_v56 = vor.u32 %v6886_v55, %v5645_v34  ;;  %v6884_v55 = vld [vmem:[#allocation10 + $0x184] sm:$0xf0] }
 0x1a2   :  { %2076 = vmatpush.bf16.msrb.mxu0 %v5582_v50 }
 0x1a3   :  { %2125 = vmatpush.bf16.msrb.mxu1 %v5646_v56 }
 0x1a5   :  { %v7470_v58 = vpop.f32.mrf.mxu2  ;;  %v957_v24 = vpop.f32.mrf.mxu0 }
 0x1a6   :  { %v7472_v21 = vpop.f32.mrf.mxu3  ;;  %v958_v9 = vadd.f32 %v957_v24, %v7376_v18  ;;  %v1006_v43 = vpop.f32.mrf.mxu1  ;;  %v5639_v24 = vld [vmem:[#allocation10 + $0x188] sm:$0xf0] }
 0x1a8   :  { %v7475_v14 = vadd.f32 %v1006_v43, %v958_v9  ;;  %1442 = vmatmul.bf16.gmra.mxu0 %v5374_v20  ;;  %v5642_v9 = vor.u32 %v6883_v19, %v5639_v24  ;;  %v5573_v43 = vld [vmem:[#allocation10 + $0x100] sm:$0xf] }
 0x1a9   :  { %1491 = vmatmul.bf16.gmra.mxu1 %v5378_v28  ;;  %v5574_v50 = vor.u32 %v6868_v30, %v5573_v43 }
 0x1aa   :  { %1540 = vmatmul.bf16.gmra.mxu2 %v5374_v20  ;;  %v5578_v20 = vor.u32 %v6867_v15, %v5575_v17  ;;  %2224 = vmatpush.bf16.msrb.mxu3 %v5642_v9 }
 0x1ab   :  { %1589 = vmatmul.bf16.gmra.mxu3 %v5378_v28  ;;  %2077 = vmatpush.bf16.msrb.mxu0 %v5574_v50  ;;  %v6833_v50 = vld [vmem:[#allocation10 + $0x74] sm:$0xf] }
 0x1ac   :  { %2175 = vmatpush.bf16.msrb.mxu2 %v5578_v20 }
 0x1ad   :  { %v1055_v57 = vpop.f32.mrf.mxu2  ;;  %v7478_v18 = vpop.f32.mrf.mxu0 }
 0x1ae   :  { %v1056_v61 = vadd.f32 %v1055_v57, %v7378_v22  ;;  %v1104_v54 = vpop.f32.mrf.mxu3  ;;  %v7480_v29 = vpop.f32.mrf.mxu1  ;;  %v5637_v22 = vld [vmem:[#allocation10 + $0x180] sm:$0xf] }
 0x1af   :  { %8070 = vst [vmem:[#allocation19_spill] sm:$0xff] %v7480_v29  ;;  %v5638_v57 = vor.u32 %v6884_v55, %v5637_v22  ;;  %v6849_v55 = vld [vmem:[#allocation10 + $0xf4] sm:$0xf] }
 0x1b0   :  { %v7482_v13 = vadd.f32 %v1104_v54, %v1056_v61  ;;  %v1627_v54 = vld [vmem:[#allocation9] sm:$0x3] }
 0x1b1   :  { %2126 = vmatpush.bf16.msrb.mxu1 %v5638_v57  ;;  %v7489_v17 = vperm.slane %v1627_v54, 0  ;;  %v5887_v57 = vld [vmem:[#allocation10 + $0xf8] sm:$0xf0] }
 0x1b2   :  { %8071 = vst [vmem:[#allocation20_spill] sm:$0xff] %v7482_v13 }
 0x1b5   :  { %v7484_v28 = vpop.f32.mrf.mxu2  ;;  %v1408_v34 = vpop.f32.mrf.mxu0 }
 0x1b6   :  { %8072 = vst [vmem:[#allocation21_spill] sm:$0xff] %v7484_v28  ;;  %v7486_v11 = vpop.f32.mrf.mxu3  ;;  %v1457_v56 = vpop.f32.mrf.mxu1  ;;  %v7491_v28 = vperm.slane %v1627_v54, 1 }
 0x1b7   :  { %8073 = vst [vmem:[#allocation22_spill] sm:$0xff] %v7486_v11  ;;  %v1458_v61 = vadd.f32 %v1457_v56, %v1408_v34  ;;  %v5823_v34 = vld [vmem:[#allocation10 + $0x78] sm:$0xf0] }
 0x1b8   :  { %v5826_v56 = vor.u32 %v6833_v50, %v5823_v34  ;;  %v6834_v34 = vld [vmem:[#allocation10 + $0x74] sm:$0xf0] }
 0x1b9   :  { %v1595_v15 = vadd.f32 %v1458_v61, %v7385_v48  ;;  %v5890_v61 = vor.u32 %v6849_v55, %v5887_v57 }
 0x1ba   :  { %2604 = vmatpush.bf16.msra.mxu2 %v5826_v56  ;;  %v6850_v56 = vld [vmem:[#allocation10 + $0xf4] sm:$0xf0] }
 0x1bb   :  { %v1633_v43 = vadd.f32 %v7489_v17, %v1595_v15  ;;  %2653 = vmatpush.bf16.msra.mxu3 %v5890_v61 }
 0x1bd   :  { %v1506_v19 = vpop.f32.mrf.mxu2  ;;  %v1410_v24 = vpop.f32.mrf.mxu0  ;;  %v1665_v44 = vmax.f32 %v1633_v43, 0.0  ;;  %v5885_v43 = vld [vmem:[#allocation10 + $0xf0] sm:$0xf] }
 0x1be   :  { %v1555_v20 = vpop.f32.mrf.mxu3  ;;  %v1459_v11 = vpop.f32.mrf.mxu1 }
 0x1bf   :  { %v1556_v9 = vadd.f32 %v1555_v20, %v1506_v19  ;;  %v1460_v22 = vadd.f32 %v1459_v11, %v1410_v24 }
 0x1c1   :  { %v1596_v30 = vadd.f32 %v1556_v9, %v7389_v6  ;;  %v1597_v54 = vadd.f32 %v1460_v22, %v7391_v8  ;;  %v5886_v22 = vor.u32 %v6850_v56, %v5885_v43 }
 0x1c3   :  { %v1634_v48 = vadd.f32 %v7491_v28, %v1596_v30  ;;  %v1635_v24 = vadd.f32 %v7489_v17, %v1597_v54  ;;  %v5821_v30 = vld [vmem:[#allocation10 + $0x70] sm:$0xf]  ;;  %2555 = vmatpush.bf16.msra.mxu1 %v5886_v22 }
 0x1c4   :  { %v5822_v55 = vor.u32 %v6834_v34, %v5821_v30  ;;  %v5879_v34 = vld [vmem:[#allocation10 + $0xe8] sm:$0xf0] }
 0x1c5   :  { %v1666_v29 = vmax.f32 %v1634_v48, 0.0  ;;  %v1508_v19 = vpop.f32.mrf.mxu2  ;;  %v1413_v15 = vpop.f32.mrf.mxu0  ;;  %v1667_v57 = vmax.f32 %v1635_v24, 0.0  ;;  %v6847_v24 = vld [vmem:[#allocation10 + $0xe4] sm:$0xf] }
 0x1c6   :  { %v1557_v20 = vpop.f32.mrf.mxu3  ;;  %v1462_v11 = vpop.f32.mrf.mxu1  ;;  %2506 = vmatpush.bf16.msra.mxu0 %v5822_v55 }
 0x1c7   :  { %v1700_v13 = vpack.c.bf16 %v1666_v29, %v1665_v44  ;;  %v1558_v6 = vadd.f32 %v1557_v20, %v1508_v19  ;;  %v1463_v50 = vadd.f32 %v1462_v11, %v1413_v15  ;;  %v6831_v11 = vld [vmem:[#allocation10 + $0x64] sm:$0xf] }
 0x1c9   :  { %1717 = vst [vmem:[#allocation3 + $0x8] sm:$0xff] %v1700_v13  ;;  %v1598_v9 = vadd.f32 %v1558_v6, %v7395_v46  ;;  %v1599_v44 = vadd.f32 %v1463_v50, %v7397_v47  ;;  %v5882_v50 = vor.u32 %v6847_v24, %v5879_v34  ;;  %v6848_v24 = vld [vmem:[#allocation10 + $0xe4] sm:$0xf0] }
 0x1cb   :  { %v1636_v8 = vadd.f32 %v7491_v28, %v1598_v9  ;;  %v1637_v15 = vadd.f32 %v7489_v17, %v1599_v44  ;;  %v5815_v9 = vld [vmem:[#allocation10 + $0x68] sm:$0xf0]  ;;  %2654 = vmatpush.bf16.msra.mxu3 %v5882_v50 }
 0x1cc   :  { %v5818_v30 = vor.u32 %v6831_v11, %v5815_v9  ;;  %v6832_v11 = vld [vmem:[#allocation10 + $0x64] sm:$0xf0] }
 0x1cd   :  { %v1668_v48 = vmax.f32 %v1636_v8, 0.0  ;;  %v1511_v29 = vpop.f32.mrf.mxu2  ;;  %v1415_v61 = vpop.f32.mrf.mxu0  ;;  %v1669_v43 = vmax.f32 %v1637_v15, 0.0 }
 0x1ce   :  { %v1560_v13 = vpop.f32.mrf.mxu3  ;;  %v1464_v19 = vpop.f32.mrf.mxu1  ;;  %2605 = vmatpush.bf16.msra.mxu2 %v5818_v30  ;;  %v5877_v30 = vld [vmem:[#allocation10 + $0xe0] sm:$0xf] }
 0x1cf   :  { %v1701_v54 = vpack.c.bf16 %v1668_v48, %v1667_v57  ;;  %v1561_v46 = vadd.f32 %v1560_v13, %v1511_v29  ;;  %v1465_v20 = vadd.f32 %v1464_v19, %v1415_v61 }
 0x1d0   :  { %v5509_v29 = vld [vmem:[#allocation3 + $0x8] sm:$0xf] }
 0x1d1   :  { %1718 = vst [vmem:[#allocation3 + $0x10] sm:$0xff] %v1701_v54  ;;  %v1600_v6 = vadd.f32 %v1561_v46, %v7401_v33  ;;  %v1601_v55 = vadd.f32 %v1465_v20, %v7403_v5  ;;  %v6851_v54 = vld [vmem:[#allocation3 + $0xc] sm:$0xf] }
 0x1d3   :  { %v1638_v47 = vadd.f32 %v7491_v28, %v1600_v6  ;;  %v1639_v13 = vadd.f32 %v7489_v17, %v1601_v55  ;;  %v5813_v6 = vld [vmem:[#allocation10 + $0x60] sm:$0xf] }
 0x1d4   :  { %v5814_v9 = vor.u32 %v6832_v11, %v5813_v6 }
 0x1d5   :  { %v1670_v56 = vmax.f32 %v1638_v47, 0.0  ;;  %v1513_v8 = vpop.f32.mrf.mxu2  ;;  %v1418_v57 = vpop.f32.mrf.mxu0  ;;  %v5878_v47 = vor.u32 %v6848_v24, %v5877_v30  ;;  %v1671_v50 = vmax.f32 %v1639_v13, 0.0 }
 0x1d6   :  { %v1562_v22 = vpop.f32.mrf.mxu3  ;;  %v1467_v33 = vpop.f32.mrf.mxu1  ;;  %2507 = vmatpush.bf16.msra.mxu0 %v5814_v9 }
 0x1d7   :  { %v1702_v48 = vpack.c.bf16 %v1670_v56, %v1669_v43  ;;  %v1563_v44 = vadd.f32 %v1562_v22, %v1513_v8  ;;  %v1468_v5 = vadd.f32 %v1467_v33, %v1418_v57  ;;  %2556 = vmatpush.bf16.msra.mxu1 %v5878_v47 }
 0x1d8   :  { %v6852_v61 = vld [vmem:[#allocation3 + $0xc] sm:$0xf0]  ;;  %v5511_v46 = vld [vmem:[#allocation3 + $0x10] sm:$0xf0] }
 0x1d9   :  { %1719 = vst [vmem:[#allocation3 + $0x18] sm:$0xff] %v1702_v48  ;;  %v1602_v19 = vadd.f32 %v1563_v44, %v7407_v39  ;;  %v5510_v20 = vor.u32 %v6852_v61, %v5509_v29  ;;  %v5514_v15 = vor.u32 %v6851_v54, %v5511_v46  ;;  %v1603_v43 = vadd.f32 %v1468_v5, %v7409_v41  ;;  %v6829_v61 = vld [vmem:[#allocation10 + $0x54] sm:$0xf]  ;;  %v5807_v54 = vld [vmem:[#allocation10 + $0x58] sm:$0xf0] }
 0x1da   :  { %v5810_v13 = vor.u32 %v6829_v61, %v5807_v54  ;;  %v6845_v46 = vld [vmem:[#allocation10 + $0xd4] sm:$0xf] }
 0x1db   :  { %v1640_v34 = vadd.f32 %v7491_v28, %v1602_v19  ;;  %2078 = vmatmul.bf16.vlgmr.msrb.gmra.mxu0 %v5510_v20  ;;  %2127 = vmatmul.bf16.vlgmr.msrb.gmra.mxu1 %v5514_v15  ;;  %v1641_v33 = vadd.f32 %v7489_v17, %v1603_v43  ;;  %v5871_v19 = vld [vmem:[#allocation10 + $0xd8] sm:$0xf0] }
 0x1dc   :  { %2176 = vmatmul.bf16.vlgmr.msrb.gmra.mxu2 %v5510_v20  ;;  %2225 = vmatmul.bf16.vlgmr.msrb.gmra.mxu3 %v5514_v15  ;;  %v5874_v5 = vor.u32 %v6845_v46, %v5871_v19 }
 0x1dd   :  { %v1672_v55 = vmax.f32 %v1640_v34, 0.0  ;;  %v1516_v39 = vpop.f32.mrf.mxu2  ;;  %v1420_v8 = vpop.f32.mrf.mxu0  ;;  %2606 = vmatpush.bf16.msra.mxu2 %v5810_v13  ;;  %v1673_v15 = vmax.f32 %v1641_v33, 0.0  ;;  %v5869_v33 = vld [vmem:[#allocation10 + $0xd0] sm:$0xf] }
 0x1de   :  { %v1565_v56 = vpop.f32.mrf.mxu3  ;;  %v1469_v48 = vpop.f32.mrf.mxu1  ;;  %2655 = vmatpush.bf16.msra.mxu3 %v5874_v5 }
 0x1df   :  { %v1703_v22 = vpack.c.bf16 %v1672_v55, %v1671_v50  ;;  %v1566_v57 = vadd.f32 %v1565_v56, %v1516_v39  ;;  %v1470_v44 = vadd.f32 %v1469_v48, %v1420_v8  ;;  %v6830_v48 = vld [vmem:[#allocation10 + $0x54] sm:$0xf0] }
 0x1e0   :  { %v5517_v47 = vld [vmem:[#allocation3 + $0x18] sm:$0xf]  ;;  %v6853_v43 = vld [vmem:[#allocation3 + $0x1c] sm:$0xf] }
 0x1e1   :  { %1720 = vst [vmem:[#allocation3 + $0x20] sm:$0xff] %v1703_v22  ;;  %v1604_v29 = vadd.f32 %v1566_v57, %v7413_v3  ;;  %v1605_v20 = vadd.f32 %v1470_v44, %v7415_v4  ;;  %v5805_v57 = vld [vmem:[#allocation10 + $0x50] sm:$0xf] }
 0x1e2   :  { %v5806_v44 = vor.u32 %v6830_v48, %v5805_v57 }
 0x1e3   :  { %v1642_v41 = vadd.f32 %v7491_v28, %v1604_v29  ;;  %v1643_v50 = vadd.f32 %v7489_v17, %v1605_v20  ;;  %v6846_v29 = vld [vmem:[#allocation10 + $0xd4] sm:$0xf0] }
 0x1e4   :  { %v5870_v54 = vor.u32 %v6846_v29, %v5869_v33  ;;  %2508 = vmatpush.bf16.msra.mxu0 %v5806_v44 }
 0x1e5   :  { %v1674_v6 = vmax.f32 %v1642_v41, 0.0  ;;  %v1518_v11 = vpop.f32.mrf.mxu2  ;;  %v1423_v30 = vpop.f32.mrf.mxu0  ;;  %v1675_v13 = vmax.f32 %v1643_v50, 0.0  ;;  %v5863_v50 = vld [vmem:[#allocation10 + $0xc8] sm:$0xf0] }
 0x1e6   :  { %v1567_v9 = vpop.f32.mrf.mxu3  ;;  %v1472_v3 = vpop.f32.mrf.mxu1  ;;  %2557 = vmatpush.bf16.msra.mxu1 %v5870_v54 }
 0x1e7   :  { %v1704_v24 = vpack.c.bf16 %v1674_v6, %v1673_v15  ;;  %v1568_v34 = vadd.f32 %v1567_v9, %v1518_v11  ;;  %v1473_v4 = vadd.f32 %v1472_v3, %v1423_v30 }
 0x1e8   :  { %v6854_v55 = vld [vmem:[#allocation3 + $0x1c] sm:$0xf0]  ;;  %v5519_v39 = vld [vmem:[#allocation3 + $0x20] sm:$0xf0] }
 0x1e9   :  { %1721 = vst [vmem:[#allocation3 + $0x28] sm:$0xff] %v1704_v24  ;;  %v1606_v56 = vadd.f32 %v1568_v34, %v7419_v37  ;;  %v5518_v8 = vor.u32 %v6854_v55, %v5517_v47  ;;  %v5522_v22 = vor.u32 %v6853_v43, %v5519_v39  ;;  %v1607_v19 = vadd.f32 %v1473_v4, %v7421_v38  ;;  %v6827_v24 = vld [vmem:[#allocation10 + $0x44] sm:$0xf]  ;;  %v5799_v34 = vld [vmem:[#allocation10 + $0x48] sm:$0xf0] }
 0x1ea   :  { %v5802_v3 = vor.u32 %v6827_v24, %v5799_v34  ;;  %v6843_v47 = vld [vmem:[#allocation10 + $0xc4] sm:$0xf]  ;;  %v945_v34 = vadd.f32 %v7436_v35, %v7356_v51  ;;  %v1043_v51 = vadd.f32 %v7442_v49, %v7358_v7 }
 0x1eb   :  { %v1644_v61 = vadd.f32 %v7491_v28, %v1606_v56  ;;  %2083 = vmatmul.bf16.gmra.mxu0 %v5518_v8  ;;  %2132 = vmatmul.bf16.gmra.mxu1 %v5522_v22  ;;  %v1645_v9 = vadd.f32 %v7489_v17, %v1607_v19  ;;  %v5866_v55 = vor.u32 %v6843_v47, %v5863_v50 }
 0x1ec   :  { %2181 = vmatmul.bf16.gmra.mxu2 %v5518_v8  ;;  %2230 = vmatmul.bf16.gmra.mxu3 %v5522_v22 }
 0x1ed   :  { %v1676_v46 = vmax.f32 %v1644_v61, 0.0  ;;  %v1521_v37 = vpop.f32.mrf.mxu2  ;;  %v1425_v5 = vpop.f32.mrf.mxu0  ;;  %2607 = vmatpush.bf16.msra.mxu2 %v5802_v3  ;;  %v1677_v39 = vmax.f32 %v1645_v9, 0.0  ;;  %2656 = vmatpush.bf16.msra.mxu3 %v5866_v55 }
 0x1ee   :  { %v1570_v41 = vpop.f32.mrf.mxu3  ;;  %v1474_v6 = vpop.f32.mrf.mxu1 }
 0x1ef   :  { %v1705_v20 = vpack.c.bf16 %v1676_v46, %v1675_v13  ;;  %v1571_v15 = vadd.f32 %v1570_v41, %v1521_v37  ;;  %v1475_v11 = vadd.f32 %v1474_v6, %v1425_v5  ;;  %v5797_v37 = vld [vmem:[#allocation10 + $0x40] sm:$0xf]  ;;  %v6828_v41 = vld [vmem:[#allocation10 + $0x44] sm:$0xf0] }
 0x1f0   :  { %v5525_v44 = vld [vmem:[#allocation3 + $0x28] sm:$0xf]  ;;  %v6855_v61 = vld [vmem:[#allocation3 + $0x2c] sm:$0xf]  ;;  %v5798_v5 = vor.u32 %v6828_v41, %v5797_v37 }
 0x1f1   :  { %1722 = vst [vmem:[#allocation3 + $0x30] sm:$0xff] %v1705_v20  ;;  %v1608_v30 = vadd.f32 %v1571_v15, %v7425_v2  ;;  %v1609_v43 = vadd.f32 %v1475_v11, %v7427_v63  ;;  %v5861_v20 = vld [vmem:[#allocation10 + $0xc0] sm:$0xf]  ;;  %v6844_v15 = vld [vmem:[#allocation10 + $0xc4] sm:$0xf0] }
 0x1f2   :  { %v5862_v11 = vor.u32 %v6844_v15, %v5861_v20  ;;  %2509 = vmatpush.bf16.msra.mxu0 %v5798_v5 }
 0x1f3   :  { %v1646_v38 = vadd.f32 %v7491_v28, %v1608_v30  ;;  %v1647_v33 = vadd.f32 %v7489_v17, %v1609_v43 }
 0x1f4   :  { %2558 = vmatpush.bf16.msra.mxu1 %v5862_v11  ;;  %v5789_v11 = vld [vmem:[#allocation10 + $0x30] sm:$0xf] }
 0x1f5   :  { %v1678_v56 = vmax.f32 %v1646_v38, 0.0  ;;  %v1523_v4 = vpop.f32.mrf.mxu2  ;;  %v1428_v22 = vpop.f32.mrf.mxu0  ;;  %v1679_v9 = vmax.f32 %v1647_v33, 0.0 }
 0x1f6   :  { %v1572_v8 = vpop.f32.mrf.mxu3  ;;  %v1477_v2 = vpop.f32.mrf.mxu1 }
 0x1f7   :  { %v1706_v57 = vpack.c.bf16 %v1678_v56, %v1677_v39  ;;  %v1573_v48 = vadd.f32 %v1572_v8, %v1523_v4  ;;  %v1478_v63 = vadd.f32 %v1477_v2, %v1428_v22  ;;  %v6825_v4 = vld [vmem:[#allocation10 + $0x34] sm:$0xf]  ;;  %v5791_v8 = vld [vmem:[#allocation10 + $0x38] sm:$0xf0] }
 0x1f8   :  { %v6856_v29 = vld [vmem:[#allocation3 + $0x2c] sm:$0xf0]  ;;  %v5527_v54 = vld [vmem:[#allocation3 + $0x30] sm:$0xf0]  ;;  %v5794_v22 = vor.u32 %v6825_v4, %v5791_v8 }
 0x1f9   :  { %1723 = vst [vmem:[#allocation3 + $0x38] sm:$0xff] %v1706_v57  ;;  %v1610_v13 = vadd.f32 %v1573_v48, %v7431_v45  ;;  %v5526_v46 = vor.u32 %v6856_v29, %v5525_v44  ;;  %v5530_v19 = vor.u32 %v6855_v61, %v5527_v54  ;;  %v1611_v24 = vadd.f32 %v1478_v63, %v7433_v36  ;;  %v6841_v57 = vld [vmem:[#allocation10 + $0xb4] sm:$0xf]  ;;  %v5855_v48 = vld [vmem:[#allocation10 + $0xb8] sm:$0xf0] }
 0x1fa   :  { %v994_v36 = vadd.f32 %v7438_v59, %v945_v34  ;;  %v5858_v2 = vor.u32 %v6841_v57, %v5855_v48  ;;  %2608 = vmatpush.bf16.msra.mxu2 %v5794_v22  ;;  %v6823_v48 = vld [vmem:[#allocation10 + $0x24] sm:$0xf] }
 0x1fb   :  { %v1648_v6 = vadd.f32 %v7491_v28, %v1610_v13  ;;  %2088 = vmatmul.bf16.gmra.mxu0 %v5526_v46  ;;  %2137 = vmatmul.bf16.gmra.mxu1 %v5530_v19  ;;  %v1649_v39 = vadd.f32 %v7489_v17, %v1611_v24  ;;  %v1092_v13 = vadd.f32 %v7444_v40, %v1043_v51  ;;  %v5853_v24 = vld [vmem:[#allocation10 + $0xb0] sm:$0xf]  ;;  %v5783_v51 = vld [vmem:[#allocation10 + $0x28] sm:$0xf0] }
 0x1fc   :  { %2186 = vmatmul.bf16.gmra.mxu2 %v5526_v46  ;;  %2235 = vmatmul.bf16.gmra.mxu3 %v5530_v19 }
 0x1fd   :  { %v1680_v30 = vmax.f32 %v1648_v6, 0.0  ;;  %v1526_v45 = vpop.f32.mrf.mxu2  ;;  %v1430_v47 = vpop.f32.mrf.mxu0  ;;  %v1681_v33 = vmax.f32 %v1649_v39, 0.0  ;;  %2657 = vmatpush.bf16.msra.mxu3 %v5858_v2  ;;  %v6839_v2 = vld [vmem:[#allocation10 + $0xa4] sm:$0xf] }
 0x1fe   :  { %v1575_v3 = vpop.f32.mrf.mxu3  ;;  %v1479_v55 = vpop.f32.mrf.mxu1 }
 0x1ff   :  { %v1707_v50 = vpack.c.bf16 %v1680_v30, %v1679_v9  ;;  %v1576_v38 = vadd.f32 %v1575_v3, %v1526_v45  ;;  %v1480_v43 = vadd.f32 %v1479_v55, %v1430_v47  ;;  %v6826_v9 = vld [vmem:[#allocation10 + $0x34] sm:$0xf0]  ;;  %v950_v55 = vadd.f32 %v7450_v60, %v7364_v25 }
 0x200   :  { %v5533_v19 = vld [vmem:[#allocation3 + $0x38] sm:$0xf]  ;;  %v6857_v49 = vld [vmem:[#allocation3 + $0x3c] sm:$0xf]  ;;  %v5790_v30 = vor.u32 %v6826_v9, %v5789_v11  ;;  %v6842_v45 = vld [vmem:[#allocation10 + $0xb4] sm:$0xf0]  ;;  %v1048_v25 = vadd.f32 %v7456_v23, %v7366_v52 }
 0x201   :  { %1724 = vst [vmem:[#allocation3 + $0x40] sm:$0xff] %v1707_v50  ;;  %v1612_v56 = vadd.f32 %v1576_v38, %v7440_v0  ;;  %v1613_v44 = vadd.f32 %v1480_v43, %v994_v36  ;;  %v5854_v34 = vor.u32 %v6842_v45, %v5853_v24  ;;  %v5845_v9 = vld [vmem:[#allocation10 + $0xa0] sm:$0xf] }
 0x202   :  { %2510 = vmatpush.bf16.msra.mxu0 %v5790_v30  ;;  %v6840_v30 = vld [vmem:[#allocation10 + $0xa4] sm:$0xf0] }
 0x203   :  { %v1650_v35 = vadd.f32 %v7491_v28, %v1612_v56  ;;  %v1651_v37 = vadd.f32 %v7489_v17, %v1613_v44  ;;  %2559 = vmatpush.bf16.msra.mxu1 %v5854_v34  ;;  %v5847_v44 = vld [vmem:[#allocation10 + $0xa8] sm:$0xf0]  ;;  %v5846_v24 = vor.u32 %v6840_v30, %v5845_v9 }
 0x204   :  { %v5831_v30 = vld [vmem:[#allocation10 + $0x88] sm:$0xf0] }
 0x205   :  { %v1682_v29 = vmax.f32 %v1650_v35, 0.0  ;;  %v1528_v61 = vpop.f32.mrf.mxu2  ;;  %v1433_v54 = vpop.f32.mrf.mxu0  ;;  %v1683_v3 = vmax.f32 %v1651_v37, 0.0  ;;  %v5786_v35 = vor.u32 %v6823_v48, %v5783_v51  ;;  %v6837_v48 = vld [vmem:[#allocation10 + $0x94] sm:$0xf]  ;;  %v5839_v51 = vld [vmem:[#allocation10 + $0x98] sm:$0xf0] }
 0x206   :  { %v1577_v0 = vpop.f32.mrf.mxu3  ;;  %v1482_v46 = vpop.f32.mrf.mxu1 }
 0x207   :  { %v1708_v59 = vpack.c.bf16 %v1682_v29, %v1681_v33  ;;  %v1578_v63 = vadd.f32 %v1577_v0, %v1528_v61  ;;  %v1483_v20 = vadd.f32 %v1482_v46, %v1433_v54  ;;  %v5850_v33 = vor.u32 %v6839_v2, %v5847_v44  ;;  %2609 = vmatpush.bf16.msra.mxu2 %v5786_v35  ;;  %v6822_v2 = vld [vmem:[#allocation10 + $0x14] sm:$0xf0]  ;;  %v5837_v44 = vld [vmem:[#allocation10 + $0x90] sm:$0xf] }
 0x208   :  { %v6858_v7 = vld [vmem:[#allocation3 + $0x3c] sm:$0xf0]  ;;  %v5535_v41 = vld [vmem:[#allocation3 + $0x40] sm:$0xf0]  ;;  %2560 = vmatpush.bf16.msra.mxu1 %v5846_v24  ;;  %v5842_v35 = vor.u32 %v6837_v48, %v5839_v51 }
 0x209   :  { %1725 = vst [vmem:[#allocation3 + $0x48] sm:$0xff] %v1708_v59  ;;  %v1614_v5 = vadd.f32 %v1578_v63, %v1092_v13  ;;  %v5534_v15 = vor.u32 %v6858_v7, %v5533_v19  ;;  %v5538_v6 = vor.u32 %v6857_v49, %v5535_v41  ;;  %v1615_v50 = vadd.f32 %v1483_v20, %v7447_v42 }
 0x20a   :  { %v999_v42 = vadd.f32 %v7452_v10, %v950_v55  ;;  %2658 = vmatpush.bf16.msra.mxu3 %v5850_v33  ;;  %v1097_v59 = vadd.f32 %v7458_v12, %v1048_v25  ;;  %v6838_v25 = vld [vmem:[#allocation10 + $0x94] sm:$0xf0] }
 0x20b   :  { %v1652_v40 = vadd.f32 %v7491_v28, %v1614_v5  ;;  %2093 = vmatmul.bf16.gmra.mxu0 %v5534_v15  ;;  %2142 = vmatmul.bf16.gmra.mxu1 %v5538_v6  ;;  %v1653_v22 = vadd.f32 %v7489_v17, %v1615_v50  ;;  %v5838_v33 = vor.u32 %v6838_v25, %v5837_v44 }
 0x20c   :  { %2191 = vmatmul.bf16.gmra.mxu2 %v5534_v15  ;;  %2240 = vmatmul.bf16.gmra.mxu3 %v5538_v6  ;;  %v5781_v15 = vld [vmem:[#allocation10 + $0x20] sm:$0xf]  ;;  %v6824_v6 = vld [vmem:[#allocation10 + $0x24] sm:$0xf0] }
 0x20d   :  { %v1684_v47 = vmax.f32 %v1652_v40, 0.0  ;;  %v1531_v38 = vpop.f32.mrf.mxu2  ;;  %v1435_v39 = vpop.f32.mrf.mxu0  ;;  %v1685_v61 = vmax.f32 %v1653_v22, 0.0  ;;  %v5782_v11 = vor.u32 %v6824_v6, %v5781_v15  ;;  %v5775_v22 = vld [vmem:[#allocation10 + $0x18] sm:$0xf0]  ;;  %2561 = vmatpush.bf16.msra.mxu1 %v5838_v33 }
 0x20e   :  { %v1580_v43 = vpop.f32.mrf.mxu3  ;;  %v1484_v8 = vpop.f32.mrf.mxu1  ;;  %2659 = vmatpush.bf16.msra.mxu3 %v5842_v35 }
 0x20f   :  { %v1709_v56 = vpack.c.bf16 %v1684_v47, %v1683_v3  ;;  %v1581_v4 = vadd.f32 %v1580_v43, %v1531_v38  ;;  %v1485_v36 = vadd.f32 %v1484_v8, %v1435_v39  ;;  %2511 = vmatpush.bf16.msra.mxu0 %v5782_v11  ;;  %v955_v47 = vadd.f32 %v7464_v53, %v7372_v62 }
 0x210   :  { %v5541_v19 = vld [vmem:[#allocation3 + $0x48] sm:$0xf]  ;;  %v6859_v23 = vld [vmem:[#allocation3 + $0x4c] sm:$0xf]  ;;  %v1053_v62 = vadd.f32 %v7470_v58, %v7374_v16 }
 0x211   :  { %1726 = vst [vmem:[#allocation3 + $0x50] sm:$0xff] %v1709_v56  ;;  %v1616_v57 = vadd.f32 %v1581_v4, %v7454_v27  ;;  %v1617_v29 = vadd.f32 %v1485_v36, %v999_v42  ;;  %v6821_v36 = vld [vmem:[#allocation10 + $0x14] sm:$0xf]  ;;  %v5773_v42 = vld [vmem:[#allocation10 + $0x10] sm:$0xf] }
 0x212   :  { %v1102_v16 = vadd.f32 %v7472_v21, %v1053_v62  ;;  %v6819_v21 = vld [vmem:[#allocation10 + $0x4] sm:$0xf] }
 0x213   :  { %v1654_v60 = vadd.f32 %v7491_v28, %v1616_v57  ;;  %v1655_v37 = vadd.f32 %v7489_v17, %v1617_v29  ;;  %v5778_v57 = vor.u32 %v6821_v36, %v5775_v22  ;;  %v8075_v22 = vld [vmem:[#allocation19_spill] sm:$0xff] }
 0x215   :  { %v1686_v0 = vmax.f32 %v1654_v60, 0.0  ;;  %v1533_v54 = vpop.f32.mrf.mxu2  ;;  %v1438_v13 = vpop.f32.mrf.mxu0  ;;  %v1687_v45 = vmax.f32 %v1655_v37, 0.0  ;;  %2610 = vmatpush.bf16.msra.mxu2 %v5778_v57  ;;  %v8076_v57 = vld [vmem:[#allocation18_spill] sm:$0xff] }
 0x216   :  { %v1582_v27 = vpop.f32.mrf.mxu3  ;;  %v1487_v46 = vpop.f32.mrf.mxu1 }
 0x217   :  { %v1710_v10 = vpack.c.bf16 %v1686_v0, %v1685_v61  ;;  %v1583_v63 = vadd.f32 %v1582_v27, %v1533_v54  ;;  %v1488_v41 = vadd.f32 %v1487_v46, %v1438_v13 }
 0x218   :  { %v6860_v52 = vld [vmem:[#allocation3 + $0x4c] sm:$0xf0]  ;;  %v5543_v7 = vld [vmem:[#allocation3 + $0x50] sm:$0xf0] }
 0x219   :  { %1727 = vst [vmem:[#allocation3 + $0x58] sm:$0xff] %v1710_v10  ;;  %v1618_v49 = vadd.f32 %v1583_v63, %v1097_v59  ;;  %v5542_v5 = vor.u32 %v6860_v52, %v5541_v19  ;;  %v5546_v20 = vor.u32 %v6859_v23, %v5543_v7  ;;  %v1619_v34 = vadd.f32 %v1488_v41, %v7461_v31  ;;  %v5767_v41 = vld [vmem:[#allocation10 + $0x8] sm:$0xf0] }
 0x21a   :  { %v1004_v31 = vadd.f32 %v7466_v32, %v955_v47  ;;  %v5770_v9 = vor.u32 %v6819_v21, %v5767_v41  ;;  %v960_v47 = vadd.f32 %v7478_v18, %v7380_v26  ;;  %v8077_v26 = vld [vmem:[#allocation21_spill] sm:$0xff] }
 0x21b   :  { %v1656_v12 = vadd.f32 %v7491_v28, %v1618_v49  ;;  %2098 = vmatmul.bf16.gmra.mxu0 %v5542_v5  ;;  %2147 = vmatmul.bf16.gmra.mxu1 %v5546_v20  ;;  %v1657_v4 = vadd.f32 %v7489_v17, %v1619_v34  ;;  %v6820_v34 = vld [vmem:[#allocation10 + $0x4] sm:$0xf0]  ;;  %v1058_v18 = vadd.f32 %v8077_v26, %v8076_v57  ;;  %v6925_v57 = vld [vmem:[#allocation10 + $0x254] sm:$0xf]  ;;  %v5999_v26 = vld [vmem:[#allocation10 + $0x258] sm:$0xf0] }
 0x21c   :  { %2196 = vmatmul.bf16.gmra.mxu2 %v5542_v5  ;;  %2245 = vmatmul.bf16.gmra.mxu3 %v5546_v20  ;;  %v6835_v5 = vld [vmem:[#allocation10 + $0x84] sm:$0xf] }
 0x21d   :  { %v1688_v40 = vmax.f32 %v1656_v12, 0.0  ;;  %v1536_v3 = vpop.f32.mrf.mxu2  ;;  %v1440_v38 = vpop.f32.mrf.mxu0  ;;  %v1689_v29 = vmax.f32 %v1657_v4, 0.0  ;;  %v5765_v12 = vld [vmem:[#allocation10] sm:$0xf]  ;;  %2611 = vmatpush.bf16.msra.mxu2 %v5770_v9  ;;  %v8074_v4 = vld [vmem:[#allocation20_spill] sm:$0xff] }
 0x21e   :  { %v1585_v50 = vpop.f32.mrf.mxu3  ;;  %v1489_v39 = vpop.f32.mrf.mxu1  ;;  %v6927_v9 = vld [vmem:[#allocation10 + $0x264] sm:$0xf] }
 0x21f   :  { %v1711_v55 = vpack.c.bf16 %v1688_v40, %v1687_v45  ;;  %v1586_v43 = vadd.f32 %v1585_v50, %v1536_v3  ;;  %v1490_v56 = vadd.f32 %v1489_v39, %v1440_v38  ;;  %v5834_v40 = vor.u32 %v6835_v5, %v5831_v30  ;;  %v5829_v3 = vld [vmem:[#allocation10 + $0x80] sm:$0xf]  ;;  %v6836_v39 = vld [vmem:[#allocation10 + $0x84] sm:$0xf0]  ;;  %v6007_v30 = vld [vmem:[#allocation10 + $0x268] sm:$0xf0] }
 0x220   :  { %v5549_v59 = vld [vmem:[#allocation3 + $0x58] sm:$0xf]  ;;  %v6861_v46 = vld [vmem:[#allocation3 + $0x5c] sm:$0xf] }
 0x221   :  { %1728 = vst [vmem:[#allocation3 + $0x60] sm:$0xff] %v1711_v55  ;;  %v1620_v8 = vadd.f32 %v1586_v43, %v7468_v1  ;;  %v1621_v60 = vadd.f32 %v1490_v56, %v1004_v31  ;;  %v5774_v1 = vor.u32 %v6822_v2, %v5773_v42  ;;  %v5766_v43 = vor.u32 %v6820_v34, %v5765_v12  ;;  %v8078_v2 = vld [vmem:[#allocation22_spill] sm:$0xff] }
 0x222   :  { %2660 = vmatpush.bf16.msra.mxu3 %v5834_v40  ;;  %v1009_v31 = vadd.f32 %v8075_v22, %v960_v47  ;;  %v1107_v44 = vadd.f32 %v8078_v2, %v1058_v18  ;;  %v6943_v12 = vld [vmem:[#allocation10 + $0x2e4] sm:$0xf]  ;;  %v6005_v34 = vld [vmem:[#allocation10 + $0x260] sm:$0xf]  ;;  %v6941_v18 = vld [vmem:[#allocation10 + $0x2d4] sm:$0xf] }
 0x223   :  { %v1658_v53 = vadd.f32 %v7491_v28, %v1620_v8  ;;  %2512 = vmatpush.bf16.msra.mxu0 %v5774_v1  ;;  %v1659_v10 = vadd.f32 %v7489_v17, %v1621_v60  ;;  %v6069_v47 = vld [vmem:[#allocation10 + $0x2e0] sm:$0xf] }
 0x225   :  { %v1690_v61 = vmax.f32 %v1658_v53, 0.0  ;;  %v1538_v32 = vpop.f32.mrf.mxu2  ;;  %v1443_v54 = vpop.f32.mrf.mxu0  ;;  %v1691_v20 = vmax.f32 %v1659_v10, 0.0 }
 0x226   :  { %v1587_v0 = vpop.f32.mrf.mxu3  ;;  %v1492_v13 = vpop.f32.mrf.mxu1 }
 0x227   :  { %v1712_v58 = vpack.c.bf16 %v1690_v61, %v1689_v29  ;;  %v1588_v27 = vadd.f32 %v1587_v0, %v1538_v32  ;;  %v1493_v52 = vadd.f32 %v1492_v13, %v1443_v54  ;;  %2513 = vmatpush.bf16.msra.mxu0 %v5766_v43  ;;  %v6015_v13 = vld [vmem:[#allocation10 + $0x278] sm:$0xf0]  ;;  %v5701_v43 = vld [vmem:[#allocation3] sm:$0xf] }
 0x228   :  { %v6862_v63 = vld [vmem:[#allocation3 + $0x5c] sm:$0xf0]  ;;  %v5551_v19 = vld [vmem:[#allocation3 + $0x60] sm:$0xf0] }
 0x229   :  { %1729 = vst [vmem:[#allocation3 + $0x68] sm:$0xff] %v1712_v58  ;;  %v1622_v37 = vadd.f32 %v1588_v27, %v1102_v16  ;;  %v5550_v23 = vor.u32 %v6862_v63, %v5549_v59  ;;  %v5554_v7 = vor.u32 %v6861_v46, %v5551_v19  ;;  %v1623_v6 = vadd.f32 %v1493_v52, %v7475_v14  ;;  %v6929_v27 = vld [vmem:[#allocation10 + $0x274] sm:$0xf]  ;;  %v6079_v19 = vld [vmem:[#allocation10 + $0x2f8] sm:$0xf0] }
 0x22a   :  { %v5830_v14 = vor.u32 %v6836_v39, %v5829_v3  ;;  %v6945_v59 = vld [vmem:[#allocation10 + $0x2f4] sm:$0xf]  ;;  %v6018_v46 = vor.u32 %v6929_v27, %v6015_v13  ;;  %v6928_v3 = vld [vmem:[#allocation10 + $0x264] sm:$0xf0] }
 0x22b   :  { %v1660_v49 = vadd.f32 %v7491_v28, %v1622_v37  ;;  %2103 = vmatmul.bf16.gmra.mxu0 %v5550_v23  ;;  %2152 = vmatmul.bf16.gmra.mxu1 %v5554_v7  ;;  %v1661_v56 = vadd.f32 %v7489_v17, %v1623_v6  ;;  %v6082_v37 = vor.u32 %v6945_v59, %v6079_v19  ;;  %v6804_v39 = vld [vmem:[#allocation3 + $0x4] sm:$0xf0] }
 0x22c   :  { %2201 = vmatmul.bf16.gmra.mxu2 %v5550_v23  ;;  %2250 = vmatmul.bf16.gmra.mxu3 %v5554_v7  ;;  %v6930_v23 = vld [vmem:[#allocation10 + $0x274] sm:$0xf0]  ;;  %v5702_v22 = vor.u32 %v6804_v39, %v5701_v43  ;;  %v5717_v43 = vld [vmem:[#allocation3 + $0x20] sm:$0xf]  ;;  %v6807_v39 = vld [vmem:[#allocation3 + $0x24] sm:$0xf] }
 0x22d   :  { %v1692_v15 = vmax.f32 %v1660_v49, 0.0  ;;  %v1541_v11 = vpop.f32.mrf.mxu2  ;;  %v1445_v45 = vpop.f32.mrf.mxu0  ;;  %2562 = vmatpush.bf16.msra.mxu1 %v5830_v14  ;;  %v1693_v51 = vmax.f32 %v1661_v56, 0.0  ;;  %3090 = vmatpush.bf16.msrb.mxu2 %v6018_v46  ;;  %v6946_v49 = vld [vmem:[#allocation10 + $0x2f4] sm:$0xf0]  ;;  %v6803_v14 = vld [vmem:[#allocation3 + $0x4] sm:$0xf] }
 0x22e   :  { %v1590_v24 = vpop.f32.mrf.mxu3  ;;  %v1494_v55 = vpop.f32.mrf.mxu1  ;;  %3139 = vmatpush.bf16.msrb.mxu3 %v6082_v37  ;;  %v5703_v56 = vld [vmem:[#allocation3 + $0x8] sm:$0xf0] }
 0x22f   :  { %v1713_v50 = vpack.c.bf16 %v1692_v15, %v1691_v20  ;;  %v1591_v38 = vadd.f32 %v1590_v24, %v1541_v11  ;;  %v1495_v36 = vadd.f32 %v1494_v55, %v1445_v45  ;;  %v6010_v24 = vor.u32 %v6927_v9, %v6007_v30  ;;  %v6071_v45 = vld [vmem:[#allocation10 + $0x2e8] sm:$0xf0]  ;;  %v6924_v9 = vld [vmem:[#allocation10 + $0x244] sm:$0xf0]  ;;  %v6053_v30 = vld [vmem:[#allocation10 + $0x2c0] sm:$0xf] }
 0x230   :  { %v5557_v1 = vld [vmem:[#allocation3 + $0x68] sm:$0xf]  ;;  %v6863_v29 = vld [vmem:[#allocation3 + $0x6c] sm:$0xf]  ;;  %v6074_v40 = vor.u32 %v6943_v12, %v6071_v45 }
 0x231   :  { %1730 = vst [vmem:[#allocation3 + $0x70] sm:$0xff] %v1713_v50  ;;  %v1624_v8 = vadd.f32 %v1591_v38, %v8074_v4  ;;  %v1625_v62 = vadd.f32 %v1495_v36, %v1009_v31  ;;  %3091 = vmatpush.bf16.msrb.mxu2 %v6010_v24  ;;  %v6006_v50 = vor.u32 %v6928_v3, %v6005_v34  ;;  %v6944_v38 = vld [vmem:[#allocation10 + $0x2e4] sm:$0xf0]  ;;  %v5719_v34 = vld [vmem:[#allocation3 + $0x28] sm:$0xf0] }
 0x232   :  { %3140 = vmatpush.bf16.msrb.mxu3 %v6074_v40  ;;  %v6070_v55 = vor.u32 %v6944_v38, %v6069_v47  ;;  %v5706_v31 = vor.u32 %v6803_v14, %v5703_v56  ;;  %v6940_v24 = vld [vmem:[#allocation10 + $0x2c4] sm:$0xf0]  ;;  %v6808_v40 = vld [vmem:[#allocation3 + $0x24] sm:$0xf0] }
 0x233   :  { %v1662_v48 = vadd.f32 %v7491_v28, %v1624_v8  ;;  %v1663_v32 = vadd.f32 %v7489_v17, %v1625_v62  ;;  %v6013_v17 = vld [vmem:[#allocation10 + $0x270] sm:$0xf]  ;;  %v6054_v45 = vor.u32 %v6940_v24, %v6053_v30  ;;  %v5718_v56 = vor.u32 %v6808_v40, %v5717_v43  ;;  %v6920_v24 = vld [vmem:[#allocation10 + $0x224] sm:$0xf0] }
 0x234   :  { %v6014_v7 = vor.u32 %v6930_v23, %v6013_v17  ;;  %v5991_v17 = vld [vmem:[#allocation10 + $0x248] sm:$0xf0]  ;;  %v6939_v23 = vld [vmem:[#allocation10 + $0x2c4] sm:$0xf] }
 0x235   :  { %v1694_v42 = vmax.f32 %v1662_v48, 0.0  ;;  %v1543_v53 = vpop.f32.mrf.mxu2  ;;  %v1695_v10 = vmax.f32 %v1663_v32, 0.0  ;;  %v6002_v48 = vor.u32 %v6925_v57, %v5999_v26  ;;  %v6047_v26 = vld [vmem:[#allocation10 + $0x2b8] sm:$0xf0] }
 0x236   :  { %v1592_v35 = vpop.f32.mrf.mxu3  ;;  %2992 = vmatpush.bf16.msrb.mxu0 %v6014_v7 }
 0x237   :  { %v1714_v25 = vpack.c.bf16 %v1694_v42, %v1693_v51  ;;  %v1593_v60 = vadd.f32 %v1592_v35, %v1543_v53  ;;  %v6063_v51 = vld [vmem:[#allocation10 + $0x2d8] sm:$0xf0]  ;;  %3092 = vmatpush.bf16.msrb.mxu2 %v6002_v48 }
 0x238   :  { %v6864_v33 = vld [vmem:[#allocation3 + $0x6c] sm:$0xf0]  ;;  %v5559_v61 = vld [vmem:[#allocation3 + $0x70] sm:$0xf0]  ;;  %v6066_v42 = vor.u32 %v6941_v18, %v6063_v51 }
 0x239   :  { %1731 = vst [vmem:[#allocation3 + $0x78] sm:$0xff] %v1714_v25  ;;  %v1626_v0 = vadd.f32 %v1593_v60, %v1107_v44  ;;  %v5558_v54 = vor.u32 %v6864_v33, %v5557_v1  ;;  %v5562_v16 = vor.u32 %v6863_v29, %v5559_v61  ;;  %v5997_v60 = vld [vmem:[#allocation10 + $0x250] sm:$0xf]  ;;  %v6926_v1 = vld [vmem:[#allocation10 + $0x254] sm:$0xf0] }
 0x23a   :  { %2993 = vmatpush.bf16.msrb.mxu0 %v6006_v50  ;;  %3141 = vmatpush.bf16.msrb.mxu3 %v6066_v42  ;;  %v6061_v33 = vld [vmem:[#allocation10 + $0x2d0] sm:$0xf]  ;;  %v5998_v29 = vor.u32 %v6926_v1, %v5997_v60  ;;  %v6942_v61 = vld [vmem:[#allocation10 + $0x2d4] sm:$0xf0] }
 0x23b   :  { %v1664_v58 = vadd.f32 %v7491_v28, %v1626_v0  ;;  %2108 = vmatmul.bf16.gmra.mxu0 %v5558_v54  ;;  %2157 = vmatmul.bf16.gmra.mxu1 %v5562_v16  ;;  %v6077_v28 = vld [vmem:[#allocation10 + $0x2f0] sm:$0xf]  ;;  %v6062_v32 = vor.u32 %v6942_v61, %v6061_v33  ;;  %v6806_v0 = vld [vmem:[#allocation3 + $0x14] sm:$0xf0]  ;;  %v6922_v60 = vld [vmem:[#allocation10 + $0x234] sm:$0xf0] }
 0x23c   :  { %2206 = vmatmul.bf16.gmra.mxu2 %v5558_v54  ;;  %2255 = vmatmul.bf16.gmra.mxu3 %v5562_v16  ;;  %v6078_v21 = vor.u32 %v6946_v49, %v6077_v28  ;;  %v5711_v54 = vld [vmem:[#allocation3 + $0x18] sm:$0xf0]  ;;  %v6045_v1 = vld [vmem:[#allocation10 + $0x2b0] sm:$0xf] }
 0x23d   :  { %v1696_v63 = vmax.f32 %v1664_v58, 0.0  ;;  %v6055_v28 = vld [vmem:[#allocation10 + $0x2c8] sm:$0xf0] }
 0x23e   :  { %3041 = vmatpush.bf16.msrb.mxu1 %v6078_v21  ;;  %2994 = vmatpush.bf16.msrb.mxu0 %v5998_v29  ;;  %v6058_v49 = vor.u32 %v6939_v23, %v6055_v28  ;;  %v6938_v29 = vld [vmem:[#allocation10 + $0x2b4] sm:$0xf0]  ;;  %v5975_v23 = vld [vmem:[#allocation10 + $0x228] sm:$0xf0] }
 0x23f   :  { %v1715_v52 = vpack.c.bf16 %v1696_v63, %v1695_v10  ;;  %v5709_v10 = vld [vmem:[#allocation3 + $0x10] sm:$0xf]  ;;  %v6805_v63 = vld [vmem:[#allocation3 + $0x14] sm:$0xf]  ;;  %v6046_v61 = vor.u32 %v6938_v29, %v6045_v1 }
 0x240   :  { %v5565_v41 = vld [vmem:[#allocation3 + $0x78] sm:$0xf]  ;;  %v6865_v20 = vld [vmem:[#allocation3 + $0x7c] sm:$0xf]  ;;  %v5710_v19 = vor.u32 %v6806_v0, %v5709_v10  ;;  %v5714_v37 = vor.u32 %v6805_v63, %v5711_v54  ;;  %3142 = vmatpush.bf16.msrb.mxu3 %v6058_v49  ;;  %v5725_v10 = vld [vmem:[#allocation3 + $0x30] sm:$0xf] }
 0x241   :  { %1732 = vst [vmem:[#allocation3 + $0x80] sm:$0xff] %v1715_v52  ;;  %v6923_v52 = vld [vmem:[#allocation10 + $0x244] sm:$0xf]  ;;  %v5727_v0 = vld [vmem:[#allocation3 + $0x38] sm:$0xf0] }
 0x242   :  { %3042 = vmatpush.bf16.msrb.mxu1 %v6070_v55  ;;  %v5994_v7 = vor.u32 %v6923_v52, %v5991_v17  ;;  %v6809_v63 = vld [vmem:[#allocation3 + $0x34] sm:$0xf]  ;;  %v6039_v49 = vld [vmem:[#allocation10 + $0x2a8] sm:$0xf0] }
 0x243   :  { %v5730_v52 = vor.u32 %v6809_v63, %v5727_v0  ;;  %v6919_v17 = vld [vmem:[#allocation10 + $0x224] sm:$0xf]  ;;  %v5965_v0 = vld [vmem:[#allocation10 + $0x210] sm:$0xf] }
 0x244   :  { %3093 = vmatpush.bf16.msrb.mxu2 %v5994_v7  ;;  %v6935_v7 = vld [vmem:[#allocation10 + $0x2a4] sm:$0xf]  ;;  %v5978_v28 = vor.u32 %v6919_v17, %v5975_v23 }
 0x245   :  { %v6814_v63 = vld [vmem:[#allocation3 + $0x54] sm:$0xf0] }
 0x246   :  { %3043 = vmatpush.bf16.msrb.mxu1 %v6062_v32  ;;  %v6810_v32 = vld [vmem:[#allocation3 + $0x34] sm:$0xf0] }
 0x248   :  { %v6866_v5 = vld [vmem:[#allocation3 + $0x7c] sm:$0xf0]  ;;  %v5567_v15 = vld [vmem:[#allocation3 + $0x80] sm:$0xf0] }
 0x249   :  { %v5566_v6 = vor.u32 %v6866_v5, %v5565_v41  ;;  %v5570_v11 = vor.u32 %v6865_v20, %v5567_v15 }
 0x24a   :  { %3044 = vmatpush.bf16.msrb.mxu1 %v6054_v45  ;;  %v6037_v45 = vld [vmem:[#allocation10 + $0x2a0] sm:$0xf] }
 0x24b   :  { %2113 = vmatmul.bf16.gmra.mxu0 %v5566_v6  ;;  %2162 = vmatmul.bf16.gmra.mxu1 %v5570_v11 }
 0x24c   :  { %2211 = vmatmul.bf16.gmra.mxu2 %v5566_v6  ;;  %2260 = vmatmul.bf16.gmra.mxu3 %v5570_v11  ;;  %v5989_v11 = vld [vmem:[#allocation10 + $0x240] sm:$0xf] }
 0x24d   :  { %v5990_v12 = vor.u32 %v6924_v9, %v5989_v11 }
 0x24e   :  { %3045 = vmatpush.bf16.msrb.mxu1 %v6046_v61 }
 0x24f   :  { %2995 = vmatpush.bf16.msrb.mxu0 %v5990_v12  ;;  %v5973_v12 = vld [vmem:[#allocation10 + $0x220] sm:$0xf] }
 0x250   :  { %v5974_v40 = vor.u32 %v6920_v24, %v5973_v12  ;;  %v5959_v12 = vld [vmem:[#allocation10 + $0x208] sm:$0xf0]  ;;  %v6931_v24 = vld [vmem:[#allocation10 + $0x284] sm:$0xf] }
 0x258   :  { %v2079_v4 = vpop.f32.mrf.mxu0  ;;  %v2128_v8 = vpop.f32.mrf.mxu1 }
 0x259   :  { %v7572_v36 = vadd.f32 %v2128_v8, %v2079_v4  ;;  %v5722_v4 = vor.u32 %v6807_v39, %v5719_v34  ;;  %v6921_v8 = vld [vmem:[#allocation10 + $0x234] sm:$0xf]  ;;  %v6936_v34 = vld [vmem:[#allocation10 + $0x2a4] sm:$0xf0] }
 0x25b   :  { %2514 = vmatmul.bf16.vlgmr.msra.gmra.mxu0 %v5702_v22  ;;  %2563 = vmatmul.bf16.vlgmr.msra.gmra.mxu1 %v5706_v31 }
 0x25c   :  { %2612 = vmatmul.bf16.vlgmr.msra.gmra.mxu2 %v5702_v22  ;;  %2661 = vmatmul.bf16.vlgmr.msra.gmra.mxu3 %v5706_v31  ;;  %v5983_v22 = vld [vmem:[#allocation10 + $0x238] sm:$0xf0]  ;;  %v6937_v31 = vld [vmem:[#allocation10 + $0x2b4] sm:$0xf] }
 0x25d   :  { %v5986_v57 = vor.u32 %v6921_v8, %v5983_v22  ;;  %v6050_v18 = vor.u32 %v6937_v31, %v6047_v26  ;;  %v5733_v8 = vld [vmem:[#allocation3 + $0x40] sm:$0xf]  ;;  %v6811_v22 = vld [vmem:[#allocation3 + $0x44] sm:$0xf] }
 0x25f   :  { %v2177_v62 = vpop.f32.mrf.mxu2  ;;  %v2226_v53 = vpop.f32.mrf.mxu3  ;;  %3094 = vmatpush.bf16.msrb.mxu2 %v5986_v57  ;;  %3143 = vmatpush.bf16.msrb.mxu3 %v6050_v18  ;;  %v6917_v18 = vld [vmem:[#allocation10 + $0x214] sm:$0xf] }
 0x260   :  { %v7574_v35 = vadd.f32 %v2226_v53, %v2177_v62  ;;  %v2081_v2 = vpop.f32.mrf.mxu0  ;;  %v2130_v44 = vpop.f32.mrf.mxu1 }
 0x261   :  { %v7576_v25 = vadd.f32 %v2130_v44, %v2081_v2  ;;  %v5981_v44 = vld [vmem:[#allocation10 + $0x230] sm:$0xf] }
 0x262   :  { %v5982_v33 = vor.u32 %v6922_v60, %v5981_v44 }
 0x263   :  { %3095 = vmatpush.bf16.msrb.mxu2 %v5978_v28 }
 0x264   :  { %2996 = vmatpush.bf16.msrb.mxu0 %v5982_v33 }
 0x267   :  { %v2179_v16 = vpop.f32.mrf.mxu2  ;;  %v2228_v58 = vpop.f32.mrf.mxu3 }
 0x268   :  { %v7578_v27 = vadd.f32 %v2228_v58, %v2179_v16  ;;  %v2084_v13 = vpop.f32.mrf.mxu0  ;;  %v2133_v59 = vpop.f32.mrf.mxu1  ;;  %2997 = vmatpush.bf16.msrb.mxu0 %v5974_v40  ;;  %v6023_v40 = vld [vmem:[#allocation10 + $0x288] sm:$0xf0] }
 0x269   :  { %v7580_v46 = vadd.f32 %v2133_v59, %v2084_v13 }
 0x26b   :  { %2519 = vmatmul.bf16.gmra.mxu0 %v5710_v19  ;;  %2568 = vmatmul.bf16.gmra.mxu1 %v5714_v37 }
 0x26c   :  { %2617 = vmatmul.bf16.gmra.mxu2 %v5710_v19  ;;  %2666 = vmatmul.bf16.gmra.mxu3 %v5714_v37  ;;  %v5726_v37 = vor.u32 %v6810_v32, %v5725_v10 }
 0x26f   :  { %v2182_v21 = vpop.f32.mrf.mxu2  ;;  %v2231_v41 = vpop.f32.mrf.mxu3 }
 0x270   :  { %v7582_v5 = vadd.f32 %v2231_v41, %v2182_v21  ;;  %v2086_v20 = vpop.f32.mrf.mxu0  ;;  %v2135_v15 = vpop.f32.mrf.mxu1  ;;  %v6042_v21 = vor.u32 %v6935_v7, %v6039_v49  ;;  %v5741_v49 = vld [vmem:[#allocation3 + $0x50] sm:$0xf] }
 0x271   :  { %v7584_v6 = vadd.f32 %v2135_v15, %v2086_v20 }
 0x272   :  { %3144 = vmatpush.bf16.msrb.mxu3 %v6042_v21  ;;  %v6813_v21 = vld [vmem:[#allocation3 + $0x54] sm:$0xf] }
 0x277   :  { %v2184_v3 = vpop.f32.mrf.mxu2  ;;  %v2233_v47 = vpop.f32.mrf.mxu3 }
 0x278   :  { %v7586_v50 = vadd.f32 %v2233_v47, %v2184_v3  ;;  %v2089_v38 = vpop.f32.mrf.mxu0  ;;  %v2138_v55 = vpop.f32.mrf.mxu1  ;;  %v6038_v3 = vor.u32 %v6936_v34, %v6037_v45  ;;  %v6812_v47 = vld [vmem:[#allocation3 + $0x44] sm:$0xf0]  ;;  %v6026_v34 = vor.u32 %v6931_v24, %v6023_v40 }
 0x279   :  { %v7588_v14 = vadd.f32 %v2138_v55, %v2089_v38  ;;  %v5735_v38 = vld [vmem:[#allocation3 + $0x48] sm:$0xf0]  ;;  %v5734_v57 = vor.u32 %v6812_v47, %v5733_v8  ;;  %v6916_v8 = vld [vmem:[#allocation10 + $0x204] sm:$0xf0] }
 0x27a   :  { %3046 = vmatpush.bf16.msrb.mxu1 %v6038_v3  ;;  %v5738_v26 = vor.u32 %v6811_v22, %v5735_v38  ;;  %v6021_v22 = vld [vmem:[#allocation10 + $0x280] sm:$0xf] }
 0x27b   :  { %2524 = vmatmul.bf16.gmra.mxu0 %v5718_v56  ;;  %2573 = vmatmul.bf16.gmra.mxu1 %v5722_v4 }
 0x27c   :  { %2622 = vmatmul.bf16.gmra.mxu2 %v5718_v56  ;;  %2671 = vmatmul.bf16.gmra.mxu3 %v5722_v4 }
 0x27f   :  { %v2187_v48 = vpop.f32.mrf.mxu2  ;;  %v2236_v51 = vpop.f32.mrf.mxu3 }
 0x280   :  { %v7590_v42 = vadd.f32 %v2236_v51, %v2187_v48  ;;  %v2091_v62 = vpop.f32.mrf.mxu0  ;;  %v2140_v53 = vpop.f32.mrf.mxu1  ;;  %v5967_v48 = vld [vmem:[#allocation10 + $0x218] sm:$0xf0]  ;;  %v6933_v51 = vld [vmem:[#allocation10 + $0x294] sm:$0xf] }
 0x281   :  { %v7592_v2 = vadd.f32 %v2140_v53, %v2091_v62  ;;  %v5970_v62 = vor.u32 %v6917_v18, %v5967_v48  ;;  %v6031_v53 = vld [vmem:[#allocation10 + $0x298] sm:$0xf0]  ;;  %v6816_v48 = vld [vmem:[#allocation3 + $0x64] sm:$0xf0] }
 0x282   :  { %v6034_v44 = vor.u32 %v6933_v51, %v6031_v53  ;;  %v5751_v51 = vld [vmem:[#allocation3 + $0x68] sm:$0xf0] }
 0x283   :  { %3096 = vmatpush.bf16.msrb.mxu2 %v5970_v62 }
 0x284   :  { %3145 = vmatpush.bf16.msrb.mxu3 %v6034_v44 }
 0x287   :  { %v2189_v54 = vpop.f32.mrf.mxu2  ;;  %v2238_v16 = vpop.f32.mrf.mxu3 }
 0x288   :  { %v7594_v58 = vadd.f32 %v2238_v16, %v2189_v54  ;;  %v2094_v13 = vpop.f32.mrf.mxu0  ;;  %v2143_v59 = vpop.f32.mrf.mxu1  ;;  %v6918_v54 = vld [vmem:[#allocation10 + $0x214] sm:$0xf0]  ;;  %v6029_v16 = vld [vmem:[#allocation10 + $0x290] sm:$0xf]  ;;  %3146 = vmatpush.bf16.msrb.mxu3 %v6026_v34 }
 0x289   :  { %v7596_v19 = vadd.f32 %v2143_v59, %v2094_v13  ;;  %v5966_v13 = vor.u32 %v6918_v54, %v5965_v0  ;;  %v6934_v59 = vld [vmem:[#allocation10 + $0x294] sm:$0xf0] }
 0x28a   :  { %v6030_v10 = vor.u32 %v6934_v59, %v6029_v16 }
 0x28b   :  { %2529 = vmatmul.bf16.gmra.mxu0 %v5726_v37  ;;  %2578 = vmatmul.bf16.gmra.mxu1 %v5730_v52 }
 0x28c   :  { %2627 = vmatmul.bf16.gmra.mxu2 %v5726_v37  ;;  %2676 = vmatmul.bf16.gmra.mxu3 %v5730_v52  ;;  %v5743_v37 = vld [vmem:[#allocation3 + $0x58] sm:$0xf0] }
 0x28d   :  { %2998 = vmatpush.bf16.msrb.mxu0 %v5966_v13  ;;  %3047 = vmatpush.bf16.msrb.mxu1 %v6030_v10 }
 0x28f   :  { %v2192_v41 = vpop.f32.mrf.mxu2  ;;  %v2241_v20 = vpop.f32.mrf.mxu3 }
 0x290   :  { %v7598_v15 = vadd.f32 %v2241_v20, %v2192_v41  ;;  %v2096_v11 = vpop.f32.mrf.mxu0  ;;  %v2145_v9 = vpop.f32.mrf.mxu1  ;;  %v5742_v20 = vor.u32 %v6814_v63, %v5741_v49 }
 0x291   :  { %v7600_v30 = vadd.f32 %v2145_v9, %v2096_v11  ;;  %v5746_v11 = vor.u32 %v6813_v21, %v5743_v37  ;;  %v6915_v9 = vld [vmem:[#allocation10 + $0x204] sm:$0xf] }
 0x292   :  { %v5962_v45 = vor.u32 %v6915_v9, %v5959_v12  ;;  %v5757_v9 = vld [vmem:[#allocation3 + $0x70] sm:$0xf]  ;;  %v6817_v12 = vld [vmem:[#allocation3 + $0x74] sm:$0xf] }
 0x294   :  { %3097 = vmatpush.bf16.msrb.mxu2 %v5962_v45 }
 0x297   :  { %v2194_v55 = vpop.f32.mrf.mxu2  ;;  %v2243_v43 = vpop.f32.mrf.mxu3 }
 0x298   :  { %v7602_v39 = vadd.f32 %v2243_v43, %v2194_v55  ;;  %v2099_v56 = vpop.f32.mrf.mxu0  ;;  %v2148_v4 = vpop.f32.mrf.mxu1 }
 0x299   :  { %v7604_v31 = vadd.f32 %v2148_v4, %v2099_v56  ;;  %v5957_v4 = vld [vmem:[#allocation10 + $0x200] sm:$0xf] }
 0x29b   :  { %2534 = vmatmul.bf16.gmra.mxu0 %v5734_v57  ;;  %2583 = vmatmul.bf16.gmra.mxu1 %v5738_v26 }
 0x29c   :  { %2632 = vmatmul.bf16.gmra.mxu2 %v5734_v57  ;;  %2681 = vmatmul.bf16.gmra.mxu3 %v5738_v26  ;;  %v5958_v57 = vor.u32 %v6916_v8, %v5957_v4  ;;  %v6932_v26 = vld [vmem:[#allocation10 + $0x284] sm:$0xf0] }
 0x29d   :  { %v6022_v18 = vor.u32 %v6932_v26, %v6021_v22  ;;  %v6900_v8 = vld [vmem:[#allocation3 + $0x14] sm:$0xf0]  ;;  %v5895_v22 = vld [vmem:[#allocation3 + $0x18] sm:$0xf0] }
 0x29e   :  { %2999 = vmatpush.bf16.msrb.mxu0 %v5958_v57 }
 0x29f   :  { %v2197_v60 = vpop.f32.mrf.mxu2  ;;  %v2246_v1 = vpop.f32.mrf.mxu3  ;;  %3048 = vmatpush.bf16.msrb.mxu1 %v6022_v18 }
 0x2a0   :  { %v7606_v33 = vadd.f32 %v2246_v1, %v2197_v60  ;;  %v2101_v29 = vpop.f32.mrf.mxu0  ;;  %v2150_v61 = vpop.f32.mrf.mxu1 }
 0x2a1   :  { %v7608_v32 = vadd.f32 %v2150_v61, %v2101_v29  ;;  %v5749_v29 = vld [vmem:[#allocation3 + $0x60] sm:$0xf]  ;;  %v6815_v61 = vld [vmem:[#allocation3 + $0x64] sm:$0xf] }
 0x2a2   :  { %v5750_v54 = vor.u32 %v6816_v48, %v5749_v29  ;;  %v5754_v16 = vor.u32 %v6815_v61, %v5751_v51 }
 0x2a7   :  { %v2199_v52 = vpop.f32.mrf.mxu2  ;;  %v2248_v17 = vpop.f32.mrf.mxu3 }
 0x2a8   :  { %v7610_v23 = vadd.f32 %v2248_v17, %v2199_v52  ;;  %v2104_v7 = vpop.f32.mrf.mxu0  ;;  %v2153_v28 = vpop.f32.mrf.mxu1  ;;  %v6818_v17 = vld [vmem:[#allocation3 + $0x74] sm:$0xf0] }
 0x2a9   :  { %v7612_v41 = vadd.f32 %v2153_v28, %v2104_v7  ;;  %v5759_v7 = vld [vmem:[#allocation3 + $0x78] sm:$0xf0]  ;;  %v5758_v45 = vor.u32 %v6818_v17, %v5757_v9 }
 0x2aa   :  { %v5762_v40 = vor.u32 %v6817_v12, %v5759_v7  ;;  %v6205_v12 = vld [vmem:[#allocation12 + $0x170] sm:$0xf] }
 0x2ab   :  { %2539 = vmatmul.bf16.gmra.mxu0 %v5742_v20  ;;  %2588 = vmatmul.bf16.gmra.mxu1 %v5746_v11 }
 0x2ac   :  { %2637 = vmatmul.bf16.gmra.mxu2 %v5742_v20  ;;  %2686 = vmatmul.bf16.gmra.mxu3 %v5746_v11 }
 0x2af   :  { %v2202_v3 = vpop.f32.mrf.mxu2  ;;  %v2251_v47 = vpop.f32.mrf.mxu3 }
 0x2b0   :  { %v7614_v38 = vadd.f32 %v2251_v47, %v2202_v3  ;;  %v2106_v55 = vpop.f32.mrf.mxu0  ;;  %v2155_v43 = vpop.f32.mrf.mxu1 }
 0x2b1   :  { %v7616_v56 = vadd.f32 %v2155_v43, %v2106_v55 }
 0x2b7   :  { %v2204_v62 = vpop.f32.mrf.mxu2  ;;  %v2253_v53 = vpop.f32.mrf.mxu3 }
 0x2b8   :  { %v7618_v44 = vadd.f32 %v2253_v53, %v2204_v62  ;;  %v2109_v60 = vpop.f32.mrf.mxu0  ;;  %v2158_v1 = vpop.f32.mrf.mxu1  ;;  %v5893_v62 = vld [vmem:[#allocation3 + $0x10] sm:$0xf]  ;;  %v6899_v53 = vld [vmem:[#allocation3 + $0x14] sm:$0xf] }
 0x2b9   :  { %v7620_v0 = vadd.f32 %v2158_v1, %v2109_v60  ;;  %v5894_v1 = vor.u32 %v6900_v8, %v5893_v62  ;;  %v5898_v29 = vor.u32 %v6899_v53, %v5895_v22  ;;  %v5903_v8 = vld [vmem:[#allocation3 + $0x28] sm:$0xf0] }
 0x2bb   :  { %2544 = vmatmul.bf16.gmra.mxu0 %v5750_v54  ;;  %2593 = vmatmul.bf16.gmra.mxu1 %v5754_v16 }
 0x2bc   :  { %2642 = vmatmul.bf16.gmra.mxu2 %v5750_v54  ;;  %2691 = vmatmul.bf16.gmra.mxu3 %v5754_v16  ;;  %v7025_v54 = vld [vmem:[#allocation12 + $0x174] sm:$0xf]  ;;  %v6207_v16 = vld [vmem:[#allocation12 + $0x178] sm:$0xf0] }
 0x2bf   :  { %v2207_v13 = vpop.f32.mrf.mxu2  ;;  %v2256_v59 = vpop.f32.mrf.mxu3 }
 0x2c0   :  { %v7622_v10 = vadd.f32 %v2256_v59, %v2207_v13  ;;  %v2111_v63 = vpop.f32.mrf.mxu0  ;;  %v2160_v37 = vpop.f32.mrf.mxu1  ;;  %v7041_v13 = vld [vmem:[#allocation12 + $0x1f4] sm:$0xf]  ;;  %v6210_v59 = vor.u32 %v7025_v54, %v6207_v16  ;;  %v7023_v54 = vld [vmem:[#allocation12 + $0x164] sm:$0xf]  ;;  %v6199_v16 = vld [vmem:[#allocation12 + $0x168] sm:$0xf0] }
 0x2c1   :  { %v7624_v52 = vadd.f32 %v2160_v37, %v2111_v63  ;;  %v6271_v63 = vld [vmem:[#allocation12 + $0x1f8] sm:$0xf0] }
 0x2c2   :  { %v6274_v37 = vor.u32 %v7041_v13, %v6271_v63  ;;  %3757 = vmatpush.bf16.msra.mxu2 %v6210_v59  ;;  %v7039_v13 = vld [vmem:[#allocation12 + $0x1e4] sm:$0xf]  ;;  %v6263_v59 = vld [vmem:[#allocation12 + $0x1e8] sm:$0xf0] }
 0x2c3   :  { %v6266_v63 = vor.u32 %v7039_v13, %v6263_v59  ;;  %v7037_v13 = vld [vmem:[#allocation12 + $0x1d4] sm:$0xf] }
 0x2c4   :  { %3806 = vmatpush.bf16.msra.mxu3 %v6274_v37 }
 0x2c7   :  { %v2209_v28 = vpop.f32.mrf.mxu2  ;;  %v2258_v49 = vpop.f32.mrf.mxu3 }
 0x2c8   :  { %v7626_v21 = vadd.f32 %v2258_v49, %v2209_v28  ;;  %v2114_v20 = vpop.f32.mrf.mxu0  ;;  %v2163_v11 = vpop.f32.mrf.mxu1  ;;  %3807 = vmatpush.bf16.msra.mxu3 %v6266_v63 }
 0x2c9   :  { %v7628_v24 = vadd.f32 %v2163_v11, %v2114_v20 }
 0x2cb   :  { %2549 = vmatmul.bf16.gmra.mxu0 %v5758_v45  ;;  %2598 = vmatmul.bf16.gmra.mxu1 %v5762_v40 }
 0x2cc   :  { %2647 = vmatmul.bf16.gmra.mxu2 %v5758_v45  ;;  %2696 = vmatmul.bf16.gmra.mxu3 %v5762_v40  ;;  %v7026_v45 = vld [vmem:[#allocation12 + $0x174] sm:$0xf0]  ;;  %v6269_v40 = vld [vmem:[#allocation12 + $0x1f0] sm:$0xf] }
 0x2cf   :  { %v2212_v34 = vpop.f32.mrf.mxu2  ;;  %v2261_v3 = vpop.f32.mrf.mxu3 }
 0x2d0   :  { %v7630_v47 = vadd.f32 %v2261_v3, %v2212_v34  ;;  %v2116_v55 = vpop.f32.mrf.mxu0  ;;  %v2165_v43 = vpop.f32.mrf.mxu1  ;;  %v6206_v34 = vor.u32 %v7026_v45, %v6205_v12  ;;  %v7042_v3 = vld [vmem:[#allocation12 + $0x1f4] sm:$0xf0]  ;;  %v6197_v12 = vld [vmem:[#allocation12 + $0x160] sm:$0xf]  ;;  %v7024_v45 = vld [vmem:[#allocation12 + $0x164] sm:$0xf0] }
 0x2d1   :  { %v7632_v4 = vadd.f32 %v2165_v43, %v2116_v55  ;;  %v6270_v55 = vor.u32 %v7042_v3, %v6269_v40  ;;  %v6902_v43 = vld [vmem:[#allocation3 + $0x24] sm:$0xf0]  ;;  %v6261_v40 = vld [vmem:[#allocation12 + $0x1e0] sm:$0xf]  ;;  %v7040_v3 = vld [vmem:[#allocation12 + $0x1e4] sm:$0xf0] }
 0x2d2   :  { %3659 = vmatpush.bf16.msra.mxu0 %v6206_v34  ;;  %v6198_v34 = vor.u32 %v7024_v45, %v6197_v12  ;;  %v6189_v12 = vld [vmem:[#allocation12 + $0x150] sm:$0xf]  ;;  %v7022_v45 = vld [vmem:[#allocation12 + $0x154] sm:$0xf0] }
 0x2d3   :  { %3708 = vmatpush.bf16.msra.mxu1 %v6270_v55  ;;  %v6262_v55 = vor.u32 %v7040_v3, %v6261_v40  ;;  %v6253_v40 = vld [vmem:[#allocation12 + $0x1d0] sm:$0xf]  ;;  %v7038_v3 = vld [vmem:[#allocation12 + $0x1d4] sm:$0xf0] }
 0x2d6   :  { %3660 = vmatpush.bf16.msra.mxu0 %v6198_v34  ;;  %v6190_v34 = vor.u32 %v7022_v45, %v6189_v12  ;;  %v6181_v12 = vld [vmem:[#allocation12 + $0x140] sm:$0xf]  ;;  %v7020_v45 = vld [vmem:[#allocation12 + $0x144] sm:$0xf0] }
 0x2d7   :  { %v2214_v57 = vpop.f32.mrf.mxu2  ;;  %v2263_v26 = vpop.f32.mrf.mxu3  ;;  %3709 = vmatpush.bf16.msra.mxu1 %v6262_v55  ;;  %v6254_v55 = vor.u32 %v7038_v3, %v6253_v40  ;;  %v6245_v40 = vld [vmem:[#allocation12 + $0x1c0] sm:$0xf]  ;;  %v7036_v3 = vld [vmem:[#allocation12 + $0x1c4] sm:$0xf0] }
 0x2d8   :  { %v7634_v18 = vadd.f32 %v2263_v26, %v2214_v57  ;;  %v2515_v48 = vpop.f32.mrf.mxu0  ;;  %v2564_v51 = vpop.f32.mrf.mxu1 }
 0x2d9   :  { %v2516_v60 = vadd.f32 %v2515_v48, %v7572_v36  ;;  %v5901_v48 = vld [vmem:[#allocation3 + $0x20] sm:$0xf] }
 0x2da   :  { %8079 = vst [vmem:[#allocation20_spill] sm:$0xff] %v7634_v18  ;;  %v5902_v53 = vor.u32 %v6902_v43, %v5901_v48  ;;  %v6904_v43 = vld [vmem:[#allocation3 + $0x34] sm:$0xf0]  ;;  %3661 = vmatpush.bf16.msra.mxu0 %v6190_v34  ;;  %v6182_v34 = vor.u32 %v7020_v45, %v6181_v12  ;;  %v6237_v12 = vld [vmem:[#allocation12 + $0x1b0] sm:$0xf] }
 0x2db   :  { %v7637_v61 = vadd.f32 %v2564_v51, %v2516_v60  ;;  %3000 = vmatmul.bf16.vlgmr.msrb.gmra.mxu0 %v5894_v1  ;;  %3049 = vmatmul.bf16.vlgmr.msrb.gmra.mxu1 %v5898_v29  ;;  %v6901_v51 = vld [vmem:[#allocation3 + $0x24] sm:$0xf] }
 0x2dc   :  { %3098 = vmatmul.bf16.vlgmr.msrb.gmra.mxu2 %v5894_v1  ;;  %3147 = vmatmul.bf16.vlgmr.msrb.gmra.mxu3 %v5898_v29  ;;  %v5906_v60 = vor.u32 %v6901_v51, %v5903_v8  ;;  %v5911_v8 = vld [vmem:[#allocation3 + $0x38] sm:$0xf0] }
 0x2dd   :  { %3710 = vmatpush.bf16.msra.mxu1 %v6254_v55  ;;  %v6246_v55 = vor.u32 %v7036_v3, %v6245_v40  ;;  %v7034_v40 = vld [vmem:[#allocation12 + $0x1b4] sm:$0xf0] }
 0x2de   :  { %3662 = vmatpush.bf16.msra.mxu0 %v6182_v34  ;;  %v6238_v34 = vor.u32 %v7034_v40, %v6237_v12  ;;  %v6910_v3 = vld [vmem:[#allocation3 + $0x64] sm:$0xf0] }
 0x2df   :  { %v2613_v17 = vpop.f32.mrf.mxu2  ;;  %v2662_v7 = vpop.f32.mrf.mxu3 }
 0x2e0   :  { %v2614_v28 = vadd.f32 %v2613_v17, %v7574_v35  ;;  %v2517_v36 = vpop.f32.mrf.mxu0  ;;  %v2566_v49 = vpop.f32.mrf.mxu1 }
 0x2e1   :  { %v2518_v20 = vadd.f32 %v2517_v36, %v7576_v25  ;;  %3711 = vmatpush.bf16.msra.mxu1 %v6246_v55  ;;  %v5935_v55 = vld [vmem:[#allocation3 + $0x68] sm:$0xf0] }
 0x2e2   :  { %v7641_v11 = vadd.f32 %v2662_v7, %v2614_v28 }
 0x2e3   :  { %v7643_v9 = vadd.f32 %v2566_v49, %v2518_v20 }
 0x2e5   :  { %3712 = vmatpush.bf16.msra.mxu1 %v6238_v34  ;;  %v6912_v34 = vld [vmem:[#allocation3 + $0x74] sm:$0xf0] }
 0x2e7   :  { %v2615_v22 = vpop.f32.mrf.mxu2  ;;  %v2664_v35 = vpop.f32.mrf.mxu3 }
 0x2e8   :  { %v2616_v57 = vadd.f32 %v2615_v22, %v7578_v27  ;;  %v2520_v26 = vpop.f32.mrf.mxu0  ;;  %v2569_v25 = vpop.f32.mrf.mxu1  ;;  %v6202_v27 = vor.u32 %v7023_v54, %v6199_v16  ;;  %v7021_v54 = vld [vmem:[#allocation12 + $0x154] sm:$0xf]  ;;  %v6191_v16 = vld [vmem:[#allocation12 + $0x158] sm:$0xf0] }
 0x2e9   :  { %v2521_v62 = vadd.f32 %v2520_v26, %v7580_v46  ;;  %v5909_v26 = vld [vmem:[#allocation3 + $0x30] sm:$0xf] }
 0x2ea   :  { %v7647_v1 = vadd.f32 %v2664_v35, %v2616_v57  ;;  %3758 = vmatpush.bf16.msra.mxu2 %v6202_v27  ;;  %v5910_v51 = vor.u32 %v6904_v43, %v5909_v26  ;;  %v6255_v27 = vld [vmem:[#allocation12 + $0x1d8] sm:$0xf0]  ;;  %v6906_v43 = vld [vmem:[#allocation3 + $0x44] sm:$0xf0] }
 0x2eb   :  { %v7649_v29 = vadd.f32 %v2569_v25, %v2521_v62  ;;  %3005 = vmatmul.bf16.gmra.mxu0 %v5902_v53  ;;  %3054 = vmatmul.bf16.gmra.mxu1 %v5906_v60  ;;  %v6903_v25 = vld [vmem:[#allocation3 + $0x34] sm:$0xf]  ;;  %v6258_v59 = vor.u32 %v7037_v13, %v6255_v27 }
 0x2ec   :  { %3103 = vmatmul.bf16.gmra.mxu2 %v5902_v53  ;;  %3152 = vmatmul.bf16.gmra.mxu3 %v5906_v60  ;;  %v5914_v62 = vor.u32 %v6903_v25, %v5911_v8  ;;  %v5919_v8 = vld [vmem:[#allocation3 + $0x48] sm:$0xf0]  ;;  %v7035_v13 = vld [vmem:[#allocation12 + $0x1c4] sm:$0xf] }
 0x2ed   :  { %3808 = vmatpush.bf16.msra.mxu3 %v6258_v59 }
 0x2ef   :  { %v2618_v37 = vpop.f32.mrf.mxu2  ;;  %v2667_v17 = vpop.f32.mrf.mxu3 }
 0x2f0   :  { %v2619_v46 = vadd.f32 %v2618_v37, %v7582_v5  ;;  %v2522_v7 = vpop.f32.mrf.mxu0  ;;  %v2571_v28 = vpop.f32.mrf.mxu1 }
 0x2f1   :  { %v2523_v36 = vadd.f32 %v2522_v7, %v7584_v6 }
 0x2f2   :  { %v7653_v49 = vadd.f32 %v2667_v17, %v2619_v46 }
 0x2f3   :  { %v7655_v20 = vadd.f32 %v2571_v28, %v2523_v36 }
 0x2f7   :  { %v2620_v22 = vpop.f32.mrf.mxu2  ;;  %v2669_v5 = vpop.f32.mrf.mxu3 }
 0x2f8   :  { %v2621_v35 = vadd.f32 %v2620_v22, %v7586_v50  ;;  %v2525_v57 = vpop.f32.mrf.mxu0  ;;  %v2574_v6 = vpop.f32.mrf.mxu1  ;;  %v6194_v50 = vor.u32 %v7021_v54, %v6191_v16  ;;  %v7019_v54 = vld [vmem:[#allocation12 + $0x144] sm:$0xf]  ;;  %v6183_v16 = vld [vmem:[#allocation12 + $0x148] sm:$0xf0] }
 0x2f9   :  { %v2526_v48 = vadd.f32 %v2525_v57, %v7588_v14  ;;  %v5917_v57 = vld [vmem:[#allocation3 + $0x40] sm:$0xf] }
 0x2fa   :  { %v7659_v53 = vadd.f32 %v2669_v5, %v2621_v35  ;;  %3759 = vmatpush.bf16.msra.mxu2 %v6194_v50  ;;  %v5918_v25 = vor.u32 %v6906_v43, %v5917_v57  ;;  %v6247_v50 = vld [vmem:[#allocation12 + $0x1c8] sm:$0xf0]  ;;  %v6908_v43 = vld [vmem:[#allocation3 + $0x54] sm:$0xf0] }
 0x2fb   :  { %v7661_v60 = vadd.f32 %v2574_v6, %v2526_v48  ;;  %3010 = vmatmul.bf16.gmra.mxu0 %v5910_v51  ;;  %3059 = vmatmul.bf16.gmra.mxu1 %v5914_v62  ;;  %v6905_v6 = vld [vmem:[#allocation3 + $0x44] sm:$0xf]  ;;  %v6250_v27 = vor.u32 %v7035_v13, %v6247_v50 }
 0x2fc   :  { %3108 = vmatmul.bf16.gmra.mxu2 %v5910_v51  ;;  %3157 = vmatmul.bf16.gmra.mxu3 %v5914_v62  ;;  %v5922_v48 = vor.u32 %v6905_v6, %v5919_v8  ;;  %v5927_v8 = vld [vmem:[#allocation3 + $0x58] sm:$0xf0]  ;;  %v7033_v13 = vld [vmem:[#allocation12 + $0x1b4] sm:$0xf] }
 0x2fd   :  { %3809 = vmatpush.bf16.msra.mxu3 %v6250_v27 }
 0x2ff   :  { %v2623_v63 = vpop.f32.mrf.mxu2  ;;  %v2672_v37 = vpop.f32.mrf.mxu3 }
 0x300   :  { %v2624_v14 = vadd.f32 %v2623_v63, %v7590_v42  ;;  %v2527_v17 = vpop.f32.mrf.mxu0  ;;  %v2576_v46 = vpop.f32.mrf.mxu1 }
 0x301   :  { %v2528_v7 = vadd.f32 %v2527_v17, %v7592_v2 }
 0x302   :  { %v7665_v28 = vadd.f32 %v2672_v37, %v2624_v14 }
 0x303   :  { %v7667_v36 = vadd.f32 %v2576_v46, %v2528_v7 }
 0x307   :  { %v2625_v22 = vpop.f32.mrf.mxu2  ;;  %v2674_v42 = vpop.f32.mrf.mxu3 }
 0x308   :  { %v2626_v5 = vadd.f32 %v2625_v22, %v7594_v58  ;;  %v2530_v35 = vpop.f32.mrf.mxu0  ;;  %v2579_v2 = vpop.f32.mrf.mxu1  ;;  %v6186_v58 = vor.u32 %v7019_v54, %v6183_v16  ;;  %v7017_v54 = vld [vmem:[#allocation12 + $0x134] sm:$0xf]  ;;  %v6175_v16 = vld [vmem:[#allocation12 + $0x138] sm:$0xf0] }
 0x309   :  { %v2531_v26 = vadd.f32 %v2530_v35, %v7596_v19  ;;  %v5925_v35 = vld [vmem:[#allocation3 + $0x50] sm:$0xf] }
 0x30a   :  { %v7671_v51 = vadd.f32 %v2674_v42, %v2626_v5  ;;  %3760 = vmatpush.bf16.msra.mxu2 %v6186_v58  ;;  %v5926_v6 = vor.u32 %v6908_v43, %v5925_v35  ;;  %v6239_v58 = vld [vmem:[#allocation12 + $0x1b8] sm:$0xf0] }
 0x30b   :  { %v7673_v62 = vadd.f32 %v2579_v2, %v2531_v26  ;;  %3015 = vmatmul.bf16.gmra.mxu0 %v5918_v25  ;;  %3064 = vmatmul.bf16.gmra.mxu1 %v5922_v48  ;;  %v6907_v2 = vld [vmem:[#allocation3 + $0x54] sm:$0xf]  ;;  %v6242_v50 = vor.u32 %v7033_v13, %v6239_v58 }
 0x30c   :  { %3113 = vmatmul.bf16.gmra.mxu2 %v5918_v25  ;;  %3162 = vmatmul.bf16.gmra.mxu3 %v5922_v48  ;;  %v5930_v26 = vor.u32 %v6907_v2, %v5927_v8 }
 0x30d   :  { %3810 = vmatpush.bf16.msra.mxu3 %v6242_v50 }
 0x30f   :  { %v2628_v59 = vpop.f32.mrf.mxu2  ;;  %v2677_v63 = vpop.f32.mrf.mxu3 }
 0x310   :  { %v2629_v19 = vadd.f32 %v2628_v59, %v7598_v15  ;;  %v2532_v37 = vpop.f32.mrf.mxu0  ;;  %v2581_v14 = vpop.f32.mrf.mxu1 }
 0x311   :  { %v2533_v17 = vadd.f32 %v2532_v37, %v7600_v30 }
 0x312   :  { %v7677_v46 = vadd.f32 %v2677_v63, %v2629_v19 }
 0x313   :  { %v7679_v7 = vadd.f32 %v2581_v14, %v2533_v17  ;;  %v6173_v14 = vld [vmem:[#allocation12 + $0x130] sm:$0xf]  ;;  %v7018_v17 = vld [vmem:[#allocation12 + $0x134] sm:$0xf0] }
 0x314   :  { %v6174_v45 = vor.u32 %v7018_v17, %v6173_v14  ;;  %v7016_v14 = vld [vmem:[#allocation12 + $0x124] sm:$0xf0]  ;;  %v6229_v17 = vld [vmem:[#allocation12 + $0x1a0] sm:$0xf] }
 0x316   :  { %3663 = vmatpush.bf16.msra.mxu0 %v6174_v45  ;;  %v7032_v45 = vld [vmem:[#allocation12 + $0x1a4] sm:$0xf0] }
 0x317   :  { %v2630_v22 = vpop.f32.mrf.mxu2  ;;  %v2679_v15 = vpop.f32.mrf.mxu3  ;;  %v6230_v40 = vor.u32 %v7032_v45, %v6229_v17  ;;  %v5949_v45 = vld [vmem:[#allocation3 + $0x80] sm:$0xf] }
 0x318   :  { %v2631_v42 = vadd.f32 %v2630_v22, %v7602_v39  ;;  %v2535_v5 = vpop.f32.mrf.mxu0  ;;  %v2584_v30 = vpop.f32.mrf.mxu1  ;;  %v6178_v39 = vor.u32 %v7017_v54, %v6175_v16  ;;  %v6231_v16 = vld [vmem:[#allocation12 + $0x1a8] sm:$0xf0] }
 0x319   :  { %v2536_v57 = vadd.f32 %v2535_v5, %v7604_v31  ;;  %3713 = vmatpush.bf16.msra.mxu1 %v6230_v40  ;;  %v6913_v40 = vld [vmem:[#allocation3 + $0x84] sm:$0xf] }
 0x31a   :  { %v7683_v25 = vadd.f32 %v2679_v15, %v2631_v42  ;;  %3761 = vmatpush.bf16.msra.mxu2 %v6178_v39  ;;  %v5933_v15 = vld [vmem:[#allocation3 + $0x60] sm:$0xf]  ;;  %v6909_v42 = vld [vmem:[#allocation3 + $0x64] sm:$0xf] }
 0x31b   :  { %v7685_v48 = vadd.f32 %v2584_v30, %v2536_v57  ;;  %3020 = vmatmul.bf16.gmra.mxu0 %v5926_v6  ;;  %3069 = vmatmul.bf16.gmra.mxu1 %v5930_v26  ;;  %v5934_v30 = vor.u32 %v6910_v3, %v5933_v15  ;;  %v5938_v35 = vor.u32 %v6909_v42, %v5935_v55  ;;  %v7015_v57 = vld [vmem:[#allocation12 + $0x124] sm:$0xf]  ;;  %v5943_v3 = vld [vmem:[#allocation3 + $0x78] sm:$0xf0]  ;;  %v5941_v15 = vld [vmem:[#allocation3 + $0x70] sm:$0xf] }
 0x31c   :  { %3118 = vmatmul.bf16.gmra.mxu2 %v5926_v6  ;;  %3167 = vmatmul.bf16.gmra.mxu3 %v5930_v26  ;;  %v6167_v6 = vld [vmem:[#allocation12 + $0x128] sm:$0xf0]  ;;  %v7031_v26 = vld [vmem:[#allocation12 + $0x1a4] sm:$0xf] }
 0x31d   :  { %v6170_v54 = vor.u32 %v7015_v57, %v6167_v6  ;;  %v6234_v13 = vor.u32 %v7031_v26, %v6231_v16  ;;  %v6911_v42 = vld [vmem:[#allocation3 + $0x74] sm:$0xf]  ;;  %v6159_v16 = vld [vmem:[#allocation12 + $0x118] sm:$0xf0] }
 0x31f   :  { %v2633_v27 = vpop.f32.mrf.mxu2  ;;  %v2682_v59 = vpop.f32.mrf.mxu3  ;;  %3762 = vmatpush.bf16.msra.mxu2 %v6170_v54  ;;  %3811 = vmatpush.bf16.msra.mxu3 %v6234_v13  ;;  %v7013_v54 = vld [vmem:[#allocation12 + $0x114] sm:$0xf] }
 0x320   :  { %v2634_v31 = vadd.f32 %v2633_v27, %v7606_v33  ;;  %v7688_v63 = vpop.f32.mrf.mxu0  ;;  %v7690_v19 = vpop.f32.mrf.mxu1  ;;  %v7029_v13 = vld [vmem:[#allocation12 + $0x194] sm:$0xf] }
 0x322   :  { %v7692_v37 = vadd.f32 %v2682_v59, %v2634_v31  ;;  %v6165_v31 = vld [vmem:[#allocation12 + $0x120] sm:$0xf] }
 0x323   :  { %v6166_v12 = vor.u32 %v7016_v14, %v6165_v31  ;;  %v6223_v31 = vld [vmem:[#allocation12 + $0x198] sm:$0xf0] }
 0x324   :  { %v6226_v14 = vor.u32 %v7029_v13, %v6223_v31 }
 0x325   :  { %3664 = vmatpush.bf16.msra.mxu0 %v6166_v12  ;;  %v6914_v12 = vld [vmem:[#allocation3 + $0x84] sm:$0xf0] }
 0x326   :  { %3812 = vmatpush.bf16.msra.mxu3 %v6226_v14 }
 0x327   :  { %v7694_v43 = vpop.f32.mrf.mxu2  ;;  %v7696_v8 = vpop.f32.mrf.mxu3 }
 0x328   :  { %v2540_v33 = vpop.f32.mrf.mxu0  ;;  %v2589_v22 = vpop.f32.mrf.mxu1 }
 0x329   :  { %v2541_v5 = vadd.f32 %v2540_v33, %v7612_v41 }
 0x32b   :  { %v7699_v2 = vadd.f32 %v2589_v22, %v2541_v5  ;;  %3025 = vmatmul.bf16.gmra.mxu0 %v5934_v30  ;;  %3074 = vmatmul.bf16.gmra.mxu1 %v5938_v35 }
 0x32c   :  { %3123 = vmatmul.bf16.gmra.mxu2 %v5934_v30  ;;  %3172 = vmatmul.bf16.gmra.mxu3 %v5938_v35  ;;  %v5942_v30 = vor.u32 %v6912_v34, %v5941_v15  ;;  %v5946_v35 = vor.u32 %v6911_v42, %v5943_v3  ;;  %v5951_v34 = vld [vmem:[#allocation3 + $0x88] sm:$0xf0]  ;;  %v5950_v42 = vor.u32 %v6914_v12, %v5949_v45  ;;  %v7011_v45 = vld [vmem:[#allocation12 + $0x104] sm:$0xf] }
 0x32f   :  { %v2638_v39 = vpop.f32.mrf.mxu2  ;;  %v2687_v58 = vpop.f32.mrf.mxu3 }
 0x330   :  { %v2639_v50 = vadd.f32 %v2638_v39, %v7614_v38  ;;  %v7702_v41 = vpop.f32.mrf.mxu0  ;;  %v7704_v27 = vpop.f32.mrf.mxu1 }
 0x332   :  { %v7706_v59 = vadd.f32 %v2687_v58, %v2639_v50 }
 0x337   :  { %v7708_v55 = vpop.f32.mrf.mxu2  ;;  %v7710_v33 = vpop.f32.mrf.mxu3 }
 0x338   :  { %v2545_v38 = vpop.f32.mrf.mxu0  ;;  %v2594_v22 = vpop.f32.mrf.mxu1 }
 0x339   :  { %v2546_v5 = vadd.f32 %v2545_v38, %v7620_v0  ;;  %v6162_v0 = vor.u32 %v7013_v54, %v6159_v16  ;;  %v7030_v16 = vld [vmem:[#allocation12 + $0x194] sm:$0xf0] }
 0x33b   :  { %v7713_v57 = vadd.f32 %v2594_v22, %v2546_v5  ;;  %3030 = vmatmul.bf16.gmra.mxu0 %v5942_v30  ;;  %3079 = vmatmul.bf16.gmra.mxu1 %v5946_v35  ;;  %v5954_v5 = vor.u32 %v6913_v40, %v5951_v34  ;;  %v6151_v40 = vld [vmem:[#allocation12 + $0x108] sm:$0xf0]  ;;  %v7027_v34 = vld [vmem:[#allocation12 + $0x184] sm:$0xf] }
 0x33c   :  { %3128 = vmatmul.bf16.gmra.mxu2 %v5942_v30  ;;  %3177 = vmatmul.bf16.gmra.mxu3 %v5946_v35  ;;  %v6157_v30 = vld [vmem:[#allocation12 + $0x110] sm:$0xf]  ;;  %v7014_v35 = vld [vmem:[#allocation12 + $0x114] sm:$0xf0] }
 0x33d   :  { %3763 = vmatpush.bf16.msra.mxu2 %v6162_v0  ;;  %v6158_v54 = vor.u32 %v7014_v35, %v6157_v30  ;;  %v6149_v35 = vld [vmem:[#allocation12 + $0x100] sm:$0xf] }
 0x33f   :  { %v2643_v6 = vpop.f32.mrf.mxu2  ;;  %v2692_v26 = vpop.f32.mrf.mxu3  ;;  %3665 = vmatpush.bf16.msra.mxu0 %v6158_v54  ;;  %v6213_v54 = vld [vmem:[#allocation12 + $0x180] sm:$0xf] }
 0x340   :  { %v2644_v39 = vadd.f32 %v2643_v6, %v7622_v10  ;;  %v7716_v58 = vpop.f32.mrf.mxu0  ;;  %v7718_v50 = vpop.f32.mrf.mxu1  ;;  %v6221_v6 = vld [vmem:[#allocation12 + $0x190] sm:$0xf] }
 0x341   :  { %v6222_v13 = vor.u32 %v7030_v16, %v6221_v6  ;;  %v7012_v6 = vld [vmem:[#allocation12 + $0x104] sm:$0xf0] }
 0x342   :  { %v7720_v17 = vadd.f32 %v2692_v26, %v2644_v39 }
 0x343   :  { %3714 = vmatpush.bf16.msra.mxu1 %v6222_v13  ;;  %v6150_v13 = vor.u32 %v7012_v6, %v6149_v35 }
 0x345   :  { %3666 = vmatpush.bf16.msra.mxu0 %v6150_v13  ;;  %v6993_v13 = vld [vmem:[#allocation12 + $0xf4] sm:$0xf] }
 0x347   :  { %v7722_v3 = vpop.f32.mrf.mxu2  ;;  %v7724_v38 = vpop.f32.mrf.mxu3 }
 0x348   :  { %v2550_v10 = vpop.f32.mrf.mxu0  ;;  %v2599_v22 = vpop.f32.mrf.mxu1 }
 0x349   :  { %v2551_v15 = vadd.f32 %v2550_v10, %v7628_v24  ;;  %v6154_v10 = vor.u32 %v7011_v45, %v6151_v40 }
 0x34b   :  { %v7727_v26 = vadd.f32 %v2599_v22, %v2551_v15  ;;  %3035 = vmatmul.bf16.gmra.mxu0 %v5950_v42  ;;  %3084 = vmatmul.bf16.gmra.mxu1 %v5954_v5  ;;  %v6215_v22 = vld [vmem:[#allocation12 + $0x188] sm:$0xf0] }
 0x34c   :  { %3133 = vmatmul.bf16.gmra.mxu2 %v5950_v42  ;;  %3182 = vmatmul.bf16.gmra.mxu3 %v5954_v5  ;;  %v6218_v15 = vor.u32 %v7027_v34, %v6215_v22 }
 0x34d   :  { %3764 = vmatpush.bf16.msra.mxu2 %v6154_v10 }
 0x34e   :  { %3813 = vmatpush.bf16.msra.mxu3 %v6218_v15 }
 0x34f   :  { %v2648_v39 = vpop.f32.mrf.mxu2  ;;  %v2697_v0 = vpop.f32.mrf.mxu3 }
 0x350   :  { %v2649_v24 = vadd.f32 %v2648_v39, %v7630_v47  ;;  %v7730_v31 = vpop.f32.mrf.mxu0  ;;  %v7732_v14 = vpop.f32.mrf.mxu1  ;;  %v7028_v39 = vld [vmem:[#allocation12 + $0x184] sm:$0xf0] }
 0x351   :  { %8080 = vst [vmem:[#allocation19_spill] sm:$0xff] %v7732_v14 }
 0x352   :  { %v7734_v12 = vadd.f32 %v2697_v0, %v2649_v24  ;;  %v3220_v0 = vld [vmem:[%s8065_s4] sm:$0x3]  ;;  %v6214_v24 = vor.u32 %v7028_v39, %v6213_v54 }
 0x353   :  { %v7744_v40 = vperm.slane %v3220_v0, 0  ;;  %v7746_v15 = vperm.slane %v3220_v0, 1  ;;  %v6399_v54 = vld [vmem:[#allocation12 + $0x78] sm:$0xf0] }
 0x354   :  { %8081 = vst [vmem:[#allocation18_spill] sm:$0xff] %v7734_v12  ;;  %3715 = vmatpush.bf16.msra.mxu1 %v6214_v24  ;;  %v6463_v24 = vld [vmem:[#allocation12 + $0xf8] sm:$0xf0] }
 0x357   :  { %v7736_v42 = vpop.f32.mrf.mxu2  ;;  %v7738_v5 = vpop.f32.mrf.mxu3 }
 0x358   :  { %8082 = vst [vmem:[#allocation21_spill] sm:$0xff] %v7736_v42  ;;  %v3001_v30 = vpop.f32.mrf.mxu0  ;;  %v3050_v47 = vpop.f32.mrf.mxu1  ;;  %v6977_v42 = vld [vmem:[#allocation12 + $0x74] sm:$0xf] }
 0x359   :  { %8083 = vst [vmem:[#allocation22_spill] sm:$0xff] %v7738_v5  ;;  %v3051_v16 = vadd.f32 %v3050_v47, %v3001_v30  ;;  %v6402_v39 = vor.u32 %v6977_v42, %v6399_v54  ;;  %v6978_v54 = vld [vmem:[#allocation12 + $0x74] sm:$0xf0] }
 0x35b   :  { %v3188_v45 = vadd.f32 %v3051_v16, %v7637_v61  ;;  %v6466_v16 = vor.u32 %v6993_v13, %v6463_v24  ;;  %4193 = vmatpush.bf16.msrb.mxu2 %v6402_v39  ;;  %v6994_v39 = vld [vmem:[#allocation12 + $0xf4] sm:$0xf0] }
 0x35d   :  { %v3226_v47 = vadd.f32 %v7744_v40, %v3188_v45  ;;  %4242 = vmatpush.bf16.msrb.mxu3 %v6466_v16 }
 0x35f   :  { %v3099_v34 = vpop.f32.mrf.mxu2  ;;  %v3148_v10 = vpop.f32.mrf.mxu3  ;;  %v3258_v18 = vmax.f32 %v3226_v47, 0.0  ;;  %v6461_v47 = vld [vmem:[#allocation12 + $0xf0] sm:$0xf] }
 0x360   :  { %v3149_v22 = vadd.f32 %v3148_v10, %v3099_v34  ;;  %v3003_v5 = vpop.f32.mrf.mxu0  ;;  %v3052_v30 = vpop.f32.mrf.mxu1 }
 0x361   :  { %v3053_v6 = vadd.f32 %v3052_v30, %v3003_v5 }
 0x362   :  { %v3189_v35 = vadd.f32 %v3149_v22, %v7641_v11 }
 0x363   :  { %v3190_v0 = vadd.f32 %v3053_v6, %v7643_v9  ;;  %v6462_v6 = vor.u32 %v6994_v39, %v6461_v47 }
 0x364   :  { %v3227_v61 = vadd.f32 %v7746_v15, %v3189_v35  ;;  %v6397_v35 = vld [vmem:[#allocation12 + $0x70] sm:$0xf] }
 0x365   :  { %v3228_v22 = vadd.f32 %v7744_v40, %v3190_v0  ;;  %v6398_v13 = vor.u32 %v6978_v54, %v6397_v35  ;;  %4144 = vmatpush.bf16.msrb.mxu1 %v6462_v6  ;;  %v6455_v54 = vld [vmem:[#allocation12 + $0xe8] sm:$0xf0] }
 0x366   :  { %v3259_v34 = vmax.f32 %v3227_v61, 0.0 }
 0x367   :  { %v3101_v10 = vpop.f32.mrf.mxu2  ;;  %v3150_v14 = vpop.f32.mrf.mxu3  ;;  %4095 = vmatpush.bf16.msrb.mxu0 %v6398_v13  ;;  %v3260_v24 = vmax.f32 %v3228_v22, 0.0  ;;  %v6991_v22 = vld [vmem:[#allocation12 + $0xe4] sm:$0xf] }
 0x368   :  { %v3290_v45 = vpack.c.bf16 %v3259_v34, %v3258_v18  ;;  %v3151_v12 = vadd.f32 %v3150_v14, %v3101_v10  ;;  %v3006_v11 = vpop.f32.mrf.mxu0  ;;  %v3055_v5 = vpop.f32.mrf.mxu1 }
 0x369   :  { %v3056_v30 = vadd.f32 %v3055_v5, %v3006_v11  ;;  %v6975_v5 = vld [vmem:[#allocation12 + $0x64] sm:$0xf] }
 0x36a   :  { %3306 = vst [vmem:[#allocation3 + $0x8] sm:$0xff] %v3290_v45  ;;  %v3191_v42 = vadd.f32 %v3151_v12, %v7647_v1 }
 0x36b   :  { %v3192_v14 = vadd.f32 %v3056_v30, %v7649_v29  ;;  %v6458_v30 = vor.u32 %v6991_v22, %v6455_v54  ;;  %v6992_v22 = vld [vmem:[#allocation12 + $0xe4] sm:$0xf0] }
 0x36c   :  { %v3229_v9 = vadd.f32 %v7746_v15, %v3191_v42  ;;  %v6391_v42 = vld [vmem:[#allocation12 + $0x68] sm:$0xf0] }
 0x36d   :  { %v3230_v45 = vadd.f32 %v7744_v40, %v3192_v14  ;;  %v6394_v35 = vor.u32 %v6975_v5, %v6391_v42  ;;  %4243 = vmatpush.bf16.msrb.mxu3 %v6458_v30  ;;  %v6976_v5 = vld [vmem:[#allocation12 + $0x64] sm:$0xf0] }
 0x36e   :  { %v3261_v18 = vmax.f32 %v3229_v9, 0.0 }
 0x36f   :  { %v3104_v61 = vpop.f32.mrf.mxu2  ;;  %v3153_v16 = vpop.f32.mrf.mxu3  ;;  %4194 = vmatpush.bf16.msrb.mxu2 %v6394_v35  ;;  %v3262_v47 = vmax.f32 %v3230_v45, 0.0  ;;  %v6453_v35 = vld [vmem:[#allocation12 + $0xe0] sm:$0xf] }
 0x370   :  { %v3291_v34 = vpack.c.bf16 %v3261_v18, %v3260_v24  ;;  %v3154_v0 = vadd.f32 %v3153_v16, %v3104_v61  ;;  %v3008_v1 = vpop.f32.mrf.mxu0  ;;  %v3057_v12 = vpop.f32.mrf.mxu1 }
 0x371   :  { %v3058_v10 = vadd.f32 %v3057_v12, %v3008_v1  ;;  %v6085_v61 = vld [vmem:[#allocation3 + $0x8] sm:$0xf] }
 0x372   :  { %3307 = vst [vmem:[#allocation3 + $0x10] sm:$0xff] %v3291_v34  ;;  %v3193_v11 = vadd.f32 %v3154_v0, %v7653_v49  ;;  %v6995_v0 = vld [vmem:[#allocation3 + $0xc] sm:$0xf] }
 0x373   :  { %v3194_v13 = vadd.f32 %v3058_v10, %v7655_v20 }
 0x374   :  { %v3231_v29 = vadd.f32 %v7746_v15, %v3193_v11  ;;  %v6389_v11 = vld [vmem:[#allocation12 + $0x60] sm:$0xf] }
 0x375   :  { %v3232_v16 = vadd.f32 %v7744_v40, %v3194_v13  ;;  %v6390_v42 = vor.u32 %v6976_v5, %v6389_v11 }
 0x376   :  { %v3263_v39 = vmax.f32 %v3231_v29, 0.0  ;;  %v6454_v29 = vor.u32 %v6992_v22, %v6453_v35 }
 0x377   :  { %v3106_v9 = vpop.f32.mrf.mxu2  ;;  %v3155_v6 = vpop.f32.mrf.mxu3  ;;  %v3264_v30 = vmax.f32 %v3232_v16, 0.0  ;;  %4096 = vmatpush.bf16.msrb.mxu0 %v6390_v42 }
 0x378   :  { %v3292_v24 = vpack.c.bf16 %v3263_v39, %v3262_v47  ;;  %v3156_v18 = vadd.f32 %v3155_v6, %v3106_v9  ;;  %v3011_v14 = vpop.f32.mrf.mxu0  ;;  %v3060_v49 = vpop.f32.mrf.mxu1  ;;  %4145 = vmatpush.bf16.msrb.mxu1 %v6454_v29 }
 0x379   :  { %v6996_v34 = vld [vmem:[#allocation3 + $0xc] sm:$0xf0]  ;;  %v6087_v1 = vld [vmem:[#allocation3 + $0x10] sm:$0xf0]  ;;  %v3061_v20 = vadd.f32 %v3060_v49, %v3011_v14 }
 0x37a   :  { %3308 = vst [vmem:[#allocation3 + $0x18] sm:$0xff] %v3292_v24  ;;  %v3195_v12 = vadd.f32 %v3156_v18, %v7659_v53  ;;  %v6086_v10 = vor.u32 %v6996_v34, %v6085_v61  ;;  %v6090_v45 = vor.u32 %v6995_v0, %v6087_v1  ;;  %v6973_v34 = vld [vmem:[#allocation12 + $0x54] sm:$0xf]  ;;  %v6383_v0 = vld [vmem:[#allocation12 + $0x58] sm:$0xf0] }
 0x37b   :  { %v3196_v47 = vadd.f32 %v3061_v20, %v7661_v60  ;;  %v6386_v16 = vor.u32 %v6973_v34, %v6383_v0  ;;  %v6989_v1 = vld [vmem:[#allocation12 + $0xd4] sm:$0xf] }
 0x37c   :  { %v3233_v54 = vadd.f32 %v7746_v15, %v3195_v12  ;;  %3667 = vmatmul.bf16.vlgmr.msra.gmra.mxu0 %v6086_v10  ;;  %3716 = vmatmul.bf16.vlgmr.msra.gmra.mxu1 %v6090_v45  ;;  %v6447_v12 = vld [vmem:[#allocation12 + $0xd8] sm:$0xf0] }
 0x37d   :  { %3765 = vmatmul.bf16.vlgmr.msra.gmra.mxu2 %v6086_v10  ;;  %3814 = vmatmul.bf16.vlgmr.msra.gmra.mxu3 %v6090_v45  ;;  %v3234_v49 = vadd.f32 %v7744_v40, %v3196_v47  ;;  %v6450_v20 = vor.u32 %v6989_v1, %v6447_v12 }
 0x37e   :  { %v3265_v13 = vmax.f32 %v3233_v54, 0.0  ;;  %4195 = vmatpush.bf16.msrb.mxu2 %v6386_v16 }
 0x37f   :  { %v3109_v53 = vpop.f32.mrf.mxu2  ;;  %v3158_v39 = vpop.f32.mrf.mxu3  ;;  %v3266_v45 = vmax.f32 %v3234_v49, 0.0  ;;  %4244 = vmatpush.bf16.msrb.mxu3 %v6450_v20  ;;  %v6445_v49 = vld [vmem:[#allocation12 + $0xd0] sm:$0xf] }
 0x380   :  { %v3293_v9 = vpack.c.bf16 %v3265_v13, %v3264_v30  ;;  %v3159_v6 = vadd.f32 %v3158_v39, %v3109_v53  ;;  %v3013_v24 = vpop.f32.mrf.mxu0  ;;  %v3062_v18 = vpop.f32.mrf.mxu1 }
 0x381   :  { %v3063_v14 = vadd.f32 %v3062_v18, %v3013_v24  ;;  %v6093_v29 = vld [vmem:[#allocation3 + $0x18] sm:$0xf]  ;;  %v6997_v47 = vld [vmem:[#allocation3 + $0x1c] sm:$0xf]  ;;  %v6381_v24 = vld [vmem:[#allocation12 + $0x50] sm:$0xf] }
 0x382   :  { %3309 = vst [vmem:[#allocation3 + $0x20] sm:$0xff] %v3293_v9  ;;  %v3197_v61 = vadd.f32 %v3159_v6, %v7665_v28  ;;  %v6974_v18 = vld [vmem:[#allocation12 + $0x54] sm:$0xf0] }
 0x383   :  { %v3198_v10 = vadd.f32 %v3063_v14, %v7667_v36  ;;  %v6382_v14 = vor.u32 %v6974_v18, %v6381_v24 }
 0x384   :  { %v3235_v60 = vadd.f32 %v7746_v15, %v3197_v61  ;;  %v6990_v61 = vld [vmem:[#allocation12 + $0xd4] sm:$0xf0] }
 0x385   :  { %v3236_v30 = vadd.f32 %v7744_v40, %v3198_v10  ;;  %v6446_v0 = vor.u32 %v6990_v61, %v6445_v49  ;;  %4097 = vmatpush.bf16.msrb.mxu0 %v6382_v14 }
 0x386   :  { %v3267_v11 = vmax.f32 %v3235_v60, 0.0 }
 0x387   :  { %v3111_v5 = vpop.f32.mrf.mxu2  ;;  %v3160_v42 = vpop.f32.mrf.mxu3  ;;  %v3268_v16 = vmax.f32 %v3236_v30, 0.0  ;;  %4146 = vmatpush.bf16.msrb.mxu1 %v6446_v0  ;;  %v6439_v30 = vld [vmem:[#allocation12 + $0xc8] sm:$0xf0] }
 0x388   :  { %v3294_v35 = vpack.c.bf16 %v3267_v11, %v3266_v45  ;;  %v3161_v22 = vadd.f32 %v3160_v42, %v3111_v5  ;;  %v3016_v54 = vpop.f32.mrf.mxu0  ;;  %v3065_v28 = vpop.f32.mrf.mxu1 }
 0x389   :  { %v6998_v13 = vld [vmem:[#allocation3 + $0x1c] sm:$0xf0]  ;;  %v6095_v53 = vld [vmem:[#allocation3 + $0x20] sm:$0xf0]  ;;  %v3066_v36 = vadd.f32 %v3065_v28, %v3016_v54 }
 0x38a   :  { %3310 = vst [vmem:[#allocation3 + $0x28] sm:$0xff] %v3294_v35  ;;  %v3199_v39 = vadd.f32 %v3161_v22, %v7671_v51  ;;  %v6094_v9 = vor.u32 %v6998_v13, %v6093_v29  ;;  %v6098_v6 = vor.u32 %v6997_v47, %v6095_v53  ;;  %v6971_v22 = vld [vmem:[#allocation12 + $0x44] sm:$0xf]  ;;  %v6375_v54 = vld [vmem:[#allocation12 + $0x48] sm:$0xf0] }
 0x38b   :  { %v3200_v12 = vadd.f32 %v3066_v36, %v7673_v62  ;;  %v6378_v28 = vor.u32 %v6971_v22, %v6375_v54  ;;  %v6987_v29 = vld [vmem:[#allocation12 + $0xc4] sm:$0xf] }
 0x38c   :  { %v3237_v34 = vadd.f32 %v7746_v15, %v3199_v39  ;;  %3672 = vmatmul.bf16.gmra.mxu0 %v6094_v9  ;;  %3721 = vmatmul.bf16.gmra.mxu1 %v6098_v6  ;;  %v6442_v13 = vor.u32 %v6987_v29, %v6439_v30 }
 0x38d   :  { %3770 = vmatmul.bf16.gmra.mxu2 %v6094_v9  ;;  %3819 = vmatmul.bf16.gmra.mxu3 %v6098_v6  ;;  %v3238_v42 = vadd.f32 %v7744_v40, %v3200_v12 }
 0x38e   :  { %v3269_v1 = vmax.f32 %v3237_v34, 0.0  ;;  %4196 = vmatpush.bf16.msrb.mxu2 %v6378_v28  ;;  %4245 = vmatpush.bf16.msrb.mxu3 %v6442_v13 }
 0x38f   :  { %v3114_v51 = vpop.f32.mrf.mxu2  ;;  %v3163_v60 = vpop.f32.mrf.mxu3  ;;  %v3270_v53 = vmax.f32 %v3238_v42, 0.0 }
 0x390   :  { %v3295_v20 = vpack.c.bf16 %v3269_v1, %v3268_v16  ;;  %v3164_v10 = vadd.f32 %v3163_v60, %v3114_v51  ;;  %v3018_v45 = vpop.f32.mrf.mxu0  ;;  %v3067_v11 = vpop.f32.mrf.mxu1  ;;  %v6373_v51 = vld [vmem:[#allocation12 + $0x40] sm:$0xf]  ;;  %v6972_v60 = vld [vmem:[#allocation12 + $0x44] sm:$0xf0] }
 0x391   :  { %v3068_v5 = vadd.f32 %v3067_v11, %v3018_v45  ;;  %v6101_v14 = vld [vmem:[#allocation3 + $0x28] sm:$0xf]  ;;  %v6999_v34 = vld [vmem:[#allocation3 + $0x2c] sm:$0xf]  ;;  %v6988_v45 = vld [vmem:[#allocation12 + $0xc4] sm:$0xf0] }
 0x392   :  { %3311 = vst [vmem:[#allocation3 + $0x30] sm:$0xff] %v3295_v20  ;;  %v3201_v35 = vadd.f32 %v3164_v10, %v7677_v46  ;;  %v6374_v20 = vor.u32 %v6972_v60, %v6373_v51  ;;  %v6437_v10 = vld [vmem:[#allocation12 + $0xc0] sm:$0xf] }
 0x393   :  { %v3202_v47 = vadd.f32 %v3068_v5, %v7679_v7  ;;  %v6438_v5 = vor.u32 %v6988_v45, %v6437_v10 }
 0x394   :  { %v3239_v62 = vadd.f32 %v7746_v15, %v3201_v35  ;;  %4098 = vmatpush.bf16.msrb.mxu0 %v6374_v20 }
 0x395   :  { %v3240_v49 = vadd.f32 %v7744_v40, %v3202_v47  ;;  %4147 = vmatpush.bf16.msrb.mxu1 %v6438_v5  ;;  %v6365_v5 = vld [vmem:[#allocation12 + $0x30] sm:$0xf] }
 0x396   :  { %v3271_v39 = vmax.f32 %v3239_v62, 0.0 }
 0x397   :  { %v3116_v36 = vpop.f32.mrf.mxu2  ;;  %v3165_v9 = vpop.f32.mrf.mxu3  ;;  %v3272_v42 = vmax.f32 %v3240_v49, 0.0 }
 0x398   :  { %v3296_v6 = vpack.c.bf16 %v3271_v39, %v3270_v53  ;;  %v3166_v24 = vadd.f32 %v3165_v9, %v3116_v36  ;;  %v3021_v18 = vpop.f32.mrf.mxu0  ;;  %v3070_v46 = vpop.f32.mrf.mxu1  ;;  %v6969_v36 = vld [vmem:[#allocation12 + $0x34] sm:$0xf]  ;;  %v6367_v9 = vld [vmem:[#allocation12 + $0x38] sm:$0xf0] }
 0x399   :  { %v7000_v61 = vld [vmem:[#allocation3 + $0x2c] sm:$0xf0]  ;;  %v6103_v0 = vld [vmem:[#allocation3 + $0x30] sm:$0xf0]  ;;  %v3071_v7 = vadd.f32 %v3070_v46, %v3021_v18 }
 0x39a   :  { %3312 = vst [vmem:[#allocation3 + $0x38] sm:$0xff] %v3296_v6  ;;  %v3203_v16 = vadd.f32 %v3166_v24, %v7683_v25  ;;  %v6102_v1 = vor.u32 %v7000_v61, %v6101_v14  ;;  %v6106_v12 = vor.u32 %v6999_v34, %v6103_v0  ;;  %v2538_v25 = vadd.f32 %v7688_v63, %v7608_v32  ;;  %v6985_v24 = vld [vmem:[#allocation12 + $0xb4] sm:$0xf]  ;;  %v6431_v18 = vld [vmem:[#allocation12 + $0xb8] sm:$0xf0] }
 0x39b   :  { %v3204_v22 = vadd.f32 %v3071_v7, %v7685_v48  ;;  %v6370_v6 = vor.u32 %v6969_v36, %v6367_v9  ;;  %v2636_v32 = vadd.f32 %v7694_v43, %v7610_v23  ;;  %v6434_v46 = vor.u32 %v6985_v24, %v6431_v18  ;;  %v6967_v18 = vld [vmem:[#allocation12 + $0x24] sm:$0xf] }
 0x39c   :  { %v3241_v11 = vadd.f32 %v7746_v15, %v3203_v16  ;;  %3677 = vmatmul.bf16.gmra.mxu0 %v6102_v1  ;;  %3726 = vmatmul.bf16.gmra.mxu1 %v6106_v12  ;;  %v2587_v48 = vadd.f32 %v7690_v19, %v2538_v25 }
 0x39d   :  { %3775 = vmatmul.bf16.gmra.mxu2 %v6102_v1  ;;  %3824 = vmatmul.bf16.gmra.mxu3 %v6106_v12  ;;  %v3242_v53 = vadd.f32 %v7744_v40, %v3204_v22  ;;  %v2685_v0 = vadd.f32 %v7696_v8, %v2636_v32  ;;  %v6429_v22 = vld [vmem:[#allocation12 + $0xb0] sm:$0xf]  ;;  %v6986_v8 = vld [vmem:[#allocation12 + $0xb4] sm:$0xf0]  ;;  %v6359_v32 = vld [vmem:[#allocation12 + $0x28] sm:$0xf0] }
 0x39e   :  { %v3273_v35 = vmax.f32 %v3241_v11, 0.0  ;;  %4197 = vmatpush.bf16.msrb.mxu2 %v6370_v6  ;;  %4246 = vmatpush.bf16.msrb.mxu3 %v6434_v46  ;;  %v6983_v46 = vld [vmem:[#allocation12 + $0xa4] sm:$0xf] }
 0x39f   :  { %v3119_v54 = vpop.f32.mrf.mxu2  ;;  %v3168_v28 = vpop.f32.mrf.mxu3  ;;  %v3274_v49 = vmax.f32 %v3242_v53, 0.0 }
 0x3a0   :  { %v3297_v29 = vpack.c.bf16 %v3273_v35, %v3272_v42  ;;  %v3169_v30 = vadd.f32 %v3168_v28, %v3119_v54  ;;  %v3023_v62 = vpop.f32.mrf.mxu0  ;;  %v3072_v13 = vpop.f32.mrf.mxu1  ;;  %v6970_v42 = vld [vmem:[#allocation12 + $0x34] sm:$0xf0]  ;;  %v6430_v54 = vor.u32 %v6986_v8, %v6429_v22 }
 0x3a1   :  { %v3073_v47 = vadd.f32 %v3072_v13, %v3023_v62  ;;  %v6109_v12 = vld [vmem:[#allocation3 + $0x38] sm:$0xf]  ;;  %v7001_v43 = vld [vmem:[#allocation3 + $0x3c] sm:$0xf]  ;;  %v6366_v35 = vor.u32 %v6970_v42, %v6365_v5  ;;  %v2543_v62 = vadd.f32 %v7702_v41, %v7616_v56  ;;  %v2641_v56 = vadd.f32 %v7708_v55, %v7618_v44  ;;  %v6421_v42 = vld [vmem:[#allocation12 + $0xa0] sm:$0xf] }
 0x3a2   :  { %3313 = vst [vmem:[#allocation3 + $0x40] sm:$0xff] %v3297_v29  ;;  %v3205_v39 = vadd.f32 %v3169_v30, %v7692_v37  ;;  %4148 = vmatpush.bf16.msrb.mxu1 %v6430_v54 }
 0x3a3   :  { %v3206_v14 = vadd.f32 %v3073_v47, %v2587_v48  ;;  %4099 = vmatpush.bf16.msrb.mxu0 %v6366_v35 }
 0x3a4   :  { %v3243_v63 = vadd.f32 %v7746_v15, %v3205_v39 }
 0x3a5   :  { %v3244_v51 = vadd.f32 %v7744_v40, %v3206_v14  ;;  %v6423_v14 = vld [vmem:[#allocation12 + $0xa8] sm:$0xf0] }
 0x3a6   :  { %v3275_v61 = vmax.f32 %v3243_v63, 0.0  ;;  %v6362_v63 = vor.u32 %v6967_v18, %v6359_v32  ;;  %v6981_v18 = vld [vmem:[#allocation12 + $0x94] sm:$0xf]  ;;  %v6415_v32 = vld [vmem:[#allocation12 + $0x98] sm:$0xf0] }
 0x3a7   :  { %v3121_v34 = vpop.f32.mrf.mxu2  ;;  %v3170_v37 = vpop.f32.mrf.mxu3  ;;  %v3276_v28 = vmax.f32 %v3244_v51, 0.0 }
 0x3a8   :  { %v3298_v16 = vpack.c.bf16 %v3275_v61, %v3274_v49  ;;  %v3171_v19 = vadd.f32 %v3170_v37, %v3121_v34  ;;  %v3026_v7 = vpop.f32.mrf.mxu0  ;;  %v3075_v1 = vpop.f32.mrf.mxu1  ;;  %v6426_v49 = vor.u32 %v6983_v46, %v6423_v14  ;;  %4198 = vmatpush.bf16.msrb.mxu2 %v6362_v63  ;;  %v6418_v63 = vor.u32 %v6981_v18, %v6415_v32  ;;  %v6966_v46 = vld [vmem:[#allocation12 + $0x14] sm:$0xf0]  ;;  %v6413_v14 = vld [vmem:[#allocation12 + $0x90] sm:$0xf] }
 0x3a9   :  { %v7002_v23 = vld [vmem:[#allocation3 + $0x3c] sm:$0xf0]  ;;  %v6111_v60 = vld [vmem:[#allocation3 + $0x40] sm:$0xf0]  ;;  %v3076_v10 = vadd.f32 %v3075_v1, %v3026_v7 }
 0x3aa   :  { %3314 = vst [vmem:[#allocation3 + $0x48] sm:$0xff] %v3298_v16  ;;  %v3207_v20 = vadd.f32 %v3171_v19, %v2685_v0  ;;  %v6110_v45 = vor.u32 %v7002_v23, %v6109_v12  ;;  %v6114_v11 = vor.u32 %v7001_v43, %v6111_v60  ;;  %4247 = vmatpush.bf16.msrb.mxu3 %v6426_v49 }
 0x3ab   :  { %v3208_v30 = vadd.f32 %v3076_v10, %v7699_v2  ;;  %v2592_v2 = vadd.f32 %v7704_v27, %v2543_v62  ;;  %v2690_v16 = vadd.f32 %v7710_v33, %v2641_v56  ;;  %v6984_v33 = vld [vmem:[#allocation12 + $0xa4] sm:$0xf0]  ;;  %v6982_v56 = vld [vmem:[#allocation12 + $0x94] sm:$0xf0] }
 0x3ac   :  { %v3245_v25 = vadd.f32 %v7746_v15, %v3207_v20  ;;  %3682 = vmatmul.bf16.gmra.mxu0 %v6110_v45  ;;  %3731 = vmatmul.bf16.gmra.mxu1 %v6114_v11  ;;  %v6422_v22 = vor.u32 %v6984_v33, %v6421_v42  ;;  %v6414_v49 = vor.u32 %v6982_v56, %v6413_v14  ;;  %v6407_v42 = vld [vmem:[#allocation12 + $0x88] sm:$0xf0]  ;;  %v6341_v33 = vld [vmem:[#allocation12] sm:$0xf] }
 0x3ad   :  { %3780 = vmatmul.bf16.gmra.mxu2 %v6110_v45  ;;  %3829 = vmatmul.bf16.gmra.mxu3 %v6114_v11  ;;  %v3246_v6 = vadd.f32 %v7744_v40, %v3208_v30  ;;  %v6357_v45 = vld [vmem:[#allocation12 + $0x20] sm:$0xf]  ;;  %v6968_v11 = vld [vmem:[#allocation12 + $0x24] sm:$0xf0] }
 0x3ae   :  { %v3277_v29 = vmax.f32 %v3245_v25, 0.0  ;;  %v6358_v5 = vor.u32 %v6968_v11, %v6357_v45  ;;  %4149 = vmatpush.bf16.msrb.mxu1 %v6422_v22  ;;  %4248 = vmatpush.bf16.msrb.mxu3 %v6418_v63 }
 0x3af   :  { %v3124_v13 = vpop.f32.mrf.mxu2  ;;  %v3173_v47 = vpop.f32.mrf.mxu3  ;;  %v3278_v34 = vmax.f32 %v3246_v6, 0.0  ;;  %v6351_v6 = vld [vmem:[#allocation12 + $0x18] sm:$0xf0] }
 0x3b0   :  { %v3299_v53 = vpack.c.bf16 %v3277_v29, %v3276_v28  ;;  %v3174_v39 = vadd.f32 %v3173_v47, %v3124_v13  ;;  %v3028_v36 = vpop.f32.mrf.mxu0  ;;  %v3077_v9 = vpop.f32.mrf.mxu1  ;;  %4100 = vmatpush.bf16.msrb.mxu0 %v6358_v5  ;;  %v2548_v28 = vadd.f32 %v7716_v58, %v7624_v52  ;;  %v6349_v52 = vld [vmem:[#allocation12 + $0x10] sm:$0xf]  ;;  %v2646_v58 = vadd.f32 %v7722_v3, %v7626_v21 }
 0x3b1   :  { %v3078_v48 = vadd.f32 %v3077_v9, %v3028_v36  ;;  %v6117_v12 = vld [vmem:[#allocation3 + $0x48] sm:$0xf]  ;;  %v7003_v55 = vld [vmem:[#allocation3 + $0x4c] sm:$0xf] }
 0x3b2   :  { %3315 = vst [vmem:[#allocation3 + $0x50] sm:$0xff] %v3299_v53  ;;  %v3209_v24 = vadd.f32 %v3174_v39, %v7706_v59  ;;  %4150 = vmatpush.bf16.msrb.mxu1 %v6414_v49 }
 0x3b3   :  { %v3210_v61 = vadd.f32 %v3078_v48, %v2592_v2  ;;  %v6965_v48 = vld [vmem:[#allocation12 + $0x14] sm:$0xf] }
 0x3b4   :  { %v3247_v41 = vadd.f32 %v7746_v15, %v3209_v24  ;;  %v6354_v24 = vor.u32 %v6965_v48, %v6351_v6  ;;  %v8085_v6 = vld [vmem:[#allocation19_spill] sm:$0xff] }
 0x3b5   :  { %v3248_v51 = vadd.f32 %v7744_v40, %v3210_v61 }
 0x3b6   :  { %v3279_v37 = vmax.f32 %v3247_v41, 0.0  ;;  %4199 = vmatpush.bf16.msrb.mxu2 %v6354_v24 }
 0x3b7   :  { %v3126_v0 = vpop.f32.mrf.mxu2  ;;  %v3175_v59 = vpop.f32.mrf.mxu3  ;;  %v3280_v8 = vmax.f32 %v3248_v51, 0.0 }
 0x3b8   :  { %v3300_v19 = vpack.c.bf16 %v3279_v37, %v3278_v34  ;;  %v3176_v27 = vadd.f32 %v3175_v59, %v3126_v0  ;;  %v3031_v7 = vpop.f32.mrf.mxu0  ;;  %v3080_v1 = vpop.f32.mrf.mxu1  ;;  %v2695_v0 = vadd.f32 %v7724_v38, %v2646_v58  ;;  %v6963_v38 = vld [vmem:[#allocation12 + $0x4] sm:$0xf] }
 0x3b9   :  { %v7004_v44 = vld [vmem:[#allocation3 + $0x4c] sm:$0xf0]  ;;  %v6119_v23 = vld [vmem:[#allocation3 + $0x50] sm:$0xf0]  ;;  %v3081_v60 = vadd.f32 %v3080_v1, %v3031_v7 }
 0x3ba   :  { %3316 = vst [vmem:[#allocation3 + $0x58] sm:$0xff] %v3300_v19  ;;  %v3211_v43 = vadd.f32 %v3176_v27, %v2690_v16  ;;  %v6118_v20 = vor.u32 %v7004_v44, %v6117_v12  ;;  %v6122_v10 = vor.u32 %v7003_v55, %v6119_v23 }
 0x3bb   :  { %v3212_v54 = vadd.f32 %v3081_v60, %v7713_v57  ;;  %v2597_v57 = vadd.f32 %v7718_v50, %v2548_v28  ;;  %v6343_v60 = vld [vmem:[#allocation12 + $0x8] sm:$0xf0]  ;;  %v2553_v28 = vadd.f32 %v7730_v31, %v7632_v4  ;;  %v8086_v4 = vld [vmem:[#allocation20_spill] sm:$0xff]  ;;  %v8087_v31 = vld [vmem:[#allocation21_spill] sm:$0xff] }
 0x3bc   :  { %v3249_v35 = vadd.f32 %v7746_v15, %v3211_v43  ;;  %3687 = vmatmul.bf16.gmra.mxu0 %v6118_v20  ;;  %3736 = vmatmul.bf16.gmra.mxu1 %v6122_v10  ;;  %v6346_v5 = vor.u32 %v6963_v38, %v6343_v60  ;;  %v2651_v24 = vadd.f32 %v8087_v31, %v8086_v4  ;;  %v7069_v4 = vld [vmem:[#allocation12 + $0x254] sm:$0xf]  ;;  %v6575_v31 = vld [vmem:[#allocation12 + $0x258] sm:$0xf0] }
 0x3bd   :  { %3785 = vmatmul.bf16.gmra.mxu2 %v6118_v20  ;;  %3834 = vmatmul.bf16.gmra.mxu3 %v6122_v10  ;;  %v3250_v36 = vadd.f32 %v7744_v40, %v3212_v54  ;;  %v6979_v20 = vld [vmem:[#allocation12 + $0x84] sm:$0xf]  ;;  %v6405_v54 = vld [vmem:[#allocation12 + $0x80] sm:$0xf] }
 0x3be   :  { %v3281_v25 = vmax.f32 %v3249_v35, 0.0  ;;  %4200 = vmatpush.bf16.msrb.mxu2 %v6346_v5 }
 0x3bf   :  { %v3129_v29 = vpop.f32.mrf.mxu2  ;;  %v3178_v30 = vpop.f32.mrf.mxu3  ;;  %v3282_v61 = vmax.f32 %v3250_v36, 0.0  ;;  %v8084_v36 = vld [vmem:[#allocation18_spill] sm:$0xff] }
 0x3c0   :  { %v3301_v62 = vpack.c.bf16 %v3281_v25, %v3280_v8  ;;  %v3179_v13 = vadd.f32 %v3178_v30, %v3129_v29  ;;  %v3033_v47 = vpop.f32.mrf.mxu0  ;;  %v3082_v53 = vpop.f32.mrf.mxu1  ;;  %v6410_v8 = vor.u32 %v6979_v20, %v6407_v42  ;;  %v6964_v25 = vld [vmem:[#allocation12 + $0x4] sm:$0xf0]  ;;  %v7071_v42 = vld [vmem:[#allocation12 + $0x264] sm:$0xf] }
 0x3c1   :  { %v3083_v39 = vadd.f32 %v3082_v53, %v3033_v47  ;;  %v6125_v19 = vld [vmem:[#allocation3 + $0x58] sm:$0xf]  ;;  %v7005_v1 = vld [vmem:[#allocation3 + $0x5c] sm:$0xf]  ;;  %v6342_v47 = vor.u32 %v6964_v25, %v6341_v33 }
 0x3c2   :  { %3317 = vst [vmem:[#allocation3 + $0x60] sm:$0xff] %v3301_v62  ;;  %v3213_v9 = vadd.f32 %v3179_v13, %v7720_v17  ;;  %v6350_v17 = vor.u32 %v6966_v46, %v6349_v52  ;;  %v6980_v53 = vld [vmem:[#allocation12 + $0x84] sm:$0xf0]  ;;  %4249 = vmatpush.bf16.msrb.mxu3 %v6410_v8  ;;  %v8088_v46 = vld [vmem:[#allocation22_spill] sm:$0xff]  ;;  %v6583_v33 = vld [vmem:[#allocation12 + $0x268] sm:$0xf0] }
 0x3c3   :  { %v3214_v41 = vadd.f32 %v3083_v39, %v2597_v57  ;;  %v2602_v57 = vadd.f32 %v8085_v6, %v2553_v28  ;;  %v2700_v14 = vadd.f32 %v8088_v46, %v2651_v24  ;;  %v6647_v8 = vld [vmem:[#allocation12 + $0x2e8] sm:$0xf0]  ;;  %v7072_v28 = vld [vmem:[#allocation12 + $0x264] sm:$0xf0]  ;;  %v7085_v24 = vld [vmem:[#allocation12 + $0x2d4] sm:$0xf] }
 0x3c4   :  { %v3251_v2 = vadd.f32 %v7746_v15, %v3213_v9  ;;  %4101 = vmatpush.bf16.msrb.mxu0 %v6350_v17 }
 0x3c5   :  { %v3252_v27 = vadd.f32 %v7744_v40, %v3214_v41 }
 0x3c6   :  { %v3283_v34 = vmax.f32 %v3251_v2, 0.0 }
 0x3c7   :  { %v3131_v50 = vpop.f32.mrf.mxu2  ;;  %v3180_v37 = vpop.f32.mrf.mxu3  ;;  %v3284_v10 = vmax.f32 %v3252_v27, 0.0 }
 0x3c8   :  { %v3302_v21 = vpack.c.bf16 %v3283_v34, %v3282_v61  ;;  %v3181_v3 = vadd.f32 %v3180_v37, %v3131_v50  ;;  %v3036_v59 = vpop.f32.mrf.mxu0  ;;  %v3085_v16 = vpop.f32.mrf.mxu1  ;;  %4102 = vmatpush.bf16.msrb.mxu0 %v6342_v47  ;;  %v6277_v47 = vld [vmem:[#allocation3] sm:$0xf] }
 0x3c9   :  { %v7006_v7 = vld [vmem:[#allocation3 + $0x5c] sm:$0xf0]  ;;  %v6127_v12 = vld [vmem:[#allocation3 + $0x60] sm:$0xf0]  ;;  %v3086_v44 = vadd.f32 %v3085_v16, %v3036_v59  ;;  %v6591_v16 = vld [vmem:[#allocation12 + $0x278] sm:$0xf0] }
 0x3ca   :  { %3318 = vst [vmem:[#allocation3 + $0x68] sm:$0xff] %v3302_v21  ;;  %v3215_v51 = vadd.f32 %v3181_v3, %v2695_v0  ;;  %v6126_v55 = vor.u32 %v7006_v7, %v6125_v19  ;;  %v6130_v23 = vor.u32 %v7005_v1, %v6127_v12  ;;  %v7073_v59 = vld [vmem:[#allocation12 + $0x274] sm:$0xf]  ;;  %v6655_v12 = vld [vmem:[#allocation12 + $0x2f8] sm:$0xf0] }
 0x3cb   :  { %v3216_v11 = vadd.f32 %v3086_v44, %v7727_v26  ;;  %v6406_v26 = vor.u32 %v6980_v53, %v6405_v54  ;;  %v7089_v19 = vld [vmem:[#allocation12 + $0x2f4] sm:$0xf]  ;;  %v6594_v1 = vor.u32 %v7073_v59, %v6591_v16  ;;  %v6581_v54 = vld [vmem:[#allocation12 + $0x260] sm:$0xf] }
 0x3cc   :  { %v3253_v43 = vadd.f32 %v7746_v15, %v3215_v51  ;;  %3692 = vmatmul.bf16.gmra.mxu0 %v6126_v55  ;;  %3741 = vmatmul.bf16.gmra.mxu1 %v6130_v23  ;;  %v6658_v51 = vor.u32 %v7089_v19, %v6655_v12  ;;  %v6948_v53 = vld [vmem:[#allocation3 + $0x4] sm:$0xf0] }
 0x3cd   :  { %3790 = vmatmul.bf16.gmra.mxu2 %v6126_v55  ;;  %3839 = vmatmul.bf16.gmra.mxu3 %v6130_v23  ;;  %v3254_v39 = vadd.f32 %v7744_v40, %v3216_v11  ;;  %v7074_v55 = vld [vmem:[#allocation12 + $0x274] sm:$0xf0]  ;;  %v6278_v6 = vor.u32 %v6948_v53, %v6277_v47  ;;  %v6293_v47 = vld [vmem:[#allocation3 + $0x20] sm:$0xf]  ;;  %v6951_v53 = vld [vmem:[#allocation3 + $0x24] sm:$0xf] }
 0x3ce   :  { %v3285_v45 = vmax.f32 %v3253_v43, 0.0  ;;  %4151 = vmatpush.bf16.msrb.mxu1 %v6406_v26  ;;  %4678 = vmatpush.bf16.msra.mxu2 %v6594_v1  ;;  %v7090_v43 = vld [vmem:[#allocation12 + $0x2f4] sm:$0xf0]  ;;  %v6947_v26 = vld [vmem:[#allocation3 + $0x4] sm:$0xf] }
 0x3cf   :  { %v3134_v35 = vpop.f32.mrf.mxu2  ;;  %v3183_v22 = vpop.f32.mrf.mxu3  ;;  %v3286_v32 = vmax.f32 %v3254_v39, 0.0  ;;  %4727 = vmatpush.bf16.msra.mxu3 %v6658_v51  ;;  %v6279_v39 = vld [vmem:[#allocation3 + $0x8] sm:$0xf0] }
 0x3d0   :  { %v3303_v29 = vpack.c.bf16 %v3285_v45, %v3284_v10  ;;  %v3184_v30 = vadd.f32 %v3183_v22, %v3134_v35  ;;  %v3038_v62 = vpop.f32.mrf.mxu0  ;;  %v3087_v13 = vpop.f32.mrf.mxu1  ;;  %v7087_v35 = vld [vmem:[#allocation12 + $0x2e4] sm:$0xf]  ;;  %v6586_v22 = vor.u32 %v7071_v42, %v6583_v33  ;;  %v7068_v42 = vld [vmem:[#allocation12 + $0x244] sm:$0xf0]  ;;  %v6629_v33 = vld [vmem:[#allocation12 + $0x2c0] sm:$0xf] }
 0x3d1   :  { %v3088_v48 = vadd.f32 %v3087_v13, %v3038_v62  ;;  %v6133_v17 = vld [vmem:[#allocation3 + $0x68] sm:$0xf]  ;;  %v7007_v61 = vld [vmem:[#allocation3 + $0x6c] sm:$0xf]  ;;  %v6650_v25 = vor.u32 %v7087_v35, %v6647_v8  ;;  %v7088_v62 = vld [vmem:[#allocation12 + $0x2e4] sm:$0xf0] }
 0x3d2   :  { %3319 = vst [vmem:[#allocation3 + $0x70] sm:$0xff] %v3303_v29  ;;  %v3217_v9 = vadd.f32 %v3184_v30, %v8084_v36  ;;  %4679 = vmatpush.bf16.msra.mxu2 %v6586_v22  ;;  %v6645_v29 = vld [vmem:[#allocation12 + $0x2e0] sm:$0xf]  ;;  %v6582_v30 = vor.u32 %v7072_v28, %v6581_v54  ;;  %v7084_v22 = vld [vmem:[#allocation12 + $0x2c4] sm:$0xf0] }
 0x3d3   :  { %v3218_v58 = vadd.f32 %v3088_v48, %v2602_v57  ;;  %4728 = vmatpush.bf16.msra.mxu3 %v6650_v25  ;;  %v6646_v13 = vor.u32 %v7088_v62, %v6645_v29  ;;  %v6282_v57 = vor.u32 %v6947_v26, %v6279_v39  ;;  %v6630_v8 = vor.u32 %v7084_v22, %v6629_v33  ;;  %v6952_v25 = vld [vmem:[#allocation3 + $0x24] sm:$0xf0]  ;;  %v6295_v54 = vld [vmem:[#allocation3 + $0x28] sm:$0xf0]  ;;  %v7064_v22 = vld [vmem:[#allocation12 + $0x224] sm:$0xf0] }
 0x3d4   :  { %v3255_v18 = vadd.f32 %v7746_v15, %v3217_v9  ;;  %v6294_v39 = vor.u32 %v6952_v25, %v6293_v47 }
 0x3d5   :  { %v3256_v50 = vadd.f32 %v7744_v40, %v3218_v58  ;;  %v6589_v40 = vld [vmem:[#allocation12 + $0x270] sm:$0xf] }
 0x3d6   :  { %v3287_v52 = vmax.f32 %v3255_v18, 0.0  ;;  %v6590_v23 = vor.u32 %v7074_v55, %v6589_v40  ;;  %v6578_v18 = vor.u32 %v7069_v4, %v6575_v31  ;;  %v6567_v40 = vld [vmem:[#allocation12 + $0x248] sm:$0xf0]  ;;  %v7083_v55 = vld [vmem:[#allocation12 + $0x2c4] sm:$0xf] }
 0x3d7   :  { %v3136_v2 = vpop.f32.mrf.mxu2  ;;  %v3185_v63 = vpop.f32.mrf.mxu3  ;;  %v3288_v27 = vmax.f32 %v3256_v50, 0.0  ;;  %v6623_v31 = vld [vmem:[#allocation12 + $0x2b8] sm:$0xf0] }
 0x3d8   :  { %v3304_v56 = vpack.c.bf16 %v3287_v52, %v3286_v32  ;;  %v3186_v41 = vadd.f32 %v3185_v63, %v3136_v2  ;;  %4580 = vmatpush.bf16.msra.mxu0 %v6590_v23  ;;  %v6639_v32 = vld [vmem:[#allocation12 + $0x2d8] sm:$0xf0]  ;;  %4680 = vmatpush.bf16.msra.mxu2 %v6578_v18 }
 0x3d9   :  { %v7008_v49 = vld [vmem:[#allocation3 + $0x6c] sm:$0xf0]  ;;  %v6135_v34 = vld [vmem:[#allocation3 + $0x70] sm:$0xf0]  ;;  %v6642_v52 = vor.u32 %v7085_v24, %v6639_v32 }
 0x3da   :  { %3320 = vst [vmem:[#allocation3 + $0x78] sm:$0xff] %v3304_v56  ;;  %v3219_v37 = vadd.f32 %v3186_v41, %v2700_v14  ;;  %v6134_v0 = vor.u32 %v7008_v49, %v6133_v17  ;;  %v6138_v21 = vor.u32 %v7007_v61, %v6135_v34  ;;  %v6573_v41 = vld [vmem:[#allocation12 + $0x250] sm:$0xf]  ;;  %v7070_v17 = vld [vmem:[#allocation12 + $0x254] sm:$0xf0] }
 0x3db   :  { %4729 = vmatpush.bf16.msra.mxu3 %v6642_v52  ;;  %v6637_v49 = vld [vmem:[#allocation12 + $0x2d0] sm:$0xf]  ;;  %v6574_v61 = vor.u32 %v7070_v17, %v6573_v41  ;;  %v7086_v34 = vld [vmem:[#allocation12 + $0x2d4] sm:$0xf0] }
 0x3dc   :  { %v3257_v3 = vadd.f32 %v7746_v15, %v3219_v37  ;;  %3697 = vmatmul.bf16.gmra.mxu0 %v6134_v0  ;;  %3746 = vmatmul.bf16.gmra.mxu1 %v6138_v21  ;;  %v6653_v15 = vld [vmem:[#allocation12 + $0x2f0] sm:$0xf]  ;;  %v6638_v50 = vor.u32 %v7086_v34, %v6637_v49  ;;  %v6950_v37 = vld [vmem:[#allocation3 + $0x14] sm:$0xf0]  ;;  %v7066_v41 = vld [vmem:[#allocation12 + $0x234] sm:$0xf0] }
 0x3dd   :  { %3795 = vmatmul.bf16.gmra.mxu2 %v6134_v0  ;;  %3844 = vmatmul.bf16.gmra.mxu3 %v6138_v21  ;;  %v6654_v38 = vor.u32 %v7090_v43, %v6653_v15  ;;  %v6287_v0 = vld [vmem:[#allocation3 + $0x18] sm:$0xf0]  ;;  %v6621_v17 = vld [vmem:[#allocation12 + $0x2b0] sm:$0xf] }
 0x3de   :  { %v3289_v7 = vmax.f32 %v3257_v3, 0.0  ;;  %4581 = vmatpush.bf16.msra.mxu0 %v6582_v30  ;;  %v6631_v15 = vld [vmem:[#allocation12 + $0x2c8] sm:$0xf0] }
 0x3df   :  { %4629 = vmatpush.bf16.msra.mxu1 %v6654_v38  ;;  %v6634_v43 = vor.u32 %v7083_v55, %v6631_v15  ;;  %v6551_v55 = vld [vmem:[#allocation12 + $0x228] sm:$0xf0] }
 0x3e0   :  { %v3305_v44 = vpack.c.bf16 %v3289_v7, %v3288_v27  ;;  %v6285_v27 = vld [vmem:[#allocation3 + $0x10] sm:$0xf]  ;;  %v6949_v7 = vld [vmem:[#allocation3 + $0x14] sm:$0xf] }
 0x3e1   :  { %v6141_v60 = vld [vmem:[#allocation3 + $0x78] sm:$0xf]  ;;  %v7009_v10 = vld [vmem:[#allocation3 + $0x7c] sm:$0xf]  ;;  %v6286_v12 = vor.u32 %v6950_v37, %v6285_v27  ;;  %v6290_v51 = vor.u32 %v6949_v7, %v6287_v0  ;;  %4730 = vmatpush.bf16.msra.mxu3 %v6634_v43  ;;  %v6301_v27 = vld [vmem:[#allocation3 + $0x30] sm:$0xf] }
 0x3e2   :  { %3321 = vst [vmem:[#allocation3 + $0x80] sm:$0xff] %v3305_v44  ;;  %4582 = vmatpush.bf16.msra.mxu0 %v6574_v61  ;;  %v7067_v44 = vld [vmem:[#allocation12 + $0x244] sm:$0xf]  ;;  %v7082_v61 = vld [vmem:[#allocation12 + $0x2b4] sm:$0xf0] }
 0x3e3   :  { %4630 = vmatpush.bf16.msra.mxu1 %v6646_v13  ;;  %v6570_v23 = vor.u32 %v7067_v44, %v6567_v40  ;;  %v6622_v34 = vor.u32 %v7082_v61, %v6621_v17  ;;  %v6303_v37 = vld [vmem:[#allocation3 + $0x38] sm:$0xf0]  ;;  %v6953_v7 = vld [vmem:[#allocation3 + $0x34] sm:$0xf] }
 0x3e4   :  { %v6306_v44 = vor.u32 %v6953_v7, %v6303_v37  ;;  %v7063_v40 = vld [vmem:[#allocation12 + $0x224] sm:$0xf]  ;;  %v6615_v43 = vld [vmem:[#allocation12 + $0x2a8] sm:$0xf0]  ;;  %v6541_v37 = vld [vmem:[#allocation12 + $0x210] sm:$0xf] }
 0x3e5   :  { %4681 = vmatpush.bf16.msra.mxu2 %v6570_v23  ;;  %v7079_v23 = vld [vmem:[#allocation12 + $0x2a4] sm:$0xf]  ;;  %v6554_v15 = vor.u32 %v7063_v40, %v6551_v55 }
 0x3e6   :  { %v6958_v7 = vld [vmem:[#allocation3 + $0x54] sm:$0xf0] }
 0x3e7   :  { %4631 = vmatpush.bf16.msra.mxu1 %v6638_v50  ;;  %v6954_v50 = vld [vmem:[#allocation3 + $0x34] sm:$0xf0] }
 0x3e9   :  { %v7010_v20 = vld [vmem:[#allocation3 + $0x7c] sm:$0xf0]  ;;  %v6143_v45 = vld [vmem:[#allocation3 + $0x80] sm:$0xf0] }
 0x3ea   :  { %v6142_v11 = vor.u32 %v7010_v20, %v6141_v60  ;;  %v6146_v5 = vor.u32 %v7009_v10, %v6143_v45 }
 0x3eb   :  { %4632 = vmatpush.bf16.msra.mxu1 %v6630_v8  ;;  %v6613_v8 = vld [vmem:[#allocation12 + $0x2a0] sm:$0xf] }
 0x3ec   :  { %3702 = vmatmul.bf16.gmra.mxu0 %v6142_v11  ;;  %3751 = vmatmul.bf16.gmra.mxu1 %v6146_v5 }
 0x3ed   :  { %3800 = vmatmul.bf16.gmra.mxu2 %v6142_v11  ;;  %3849 = vmatmul.bf16.gmra.mxu3 %v6146_v5  ;;  %v6565_v5 = vld [vmem:[#allocation12 + $0x240] sm:$0xf] }
 0x3ee   :  { %v6566_v35 = vor.u32 %v7068_v42, %v6565_v5 }
 0x3ef   :  { %4633 = vmatpush.bf16.msra.mxu1 %v6622_v34 }
 0x3f0   :  { %4583 = vmatpush.bf16.msra.mxu0 %v6566_v35  ;;  %v6549_v35 = vld [vmem:[#allocation12 + $0x220] sm:$0xf] }
 0x3f1   :  { %v6550_v25 = vor.u32 %v7064_v22, %v6549_v35  ;;  %v6535_v35 = vld [vmem:[#allocation12 + $0x208] sm:$0xf0]  ;;  %v7075_v22 = vld [vmem:[#allocation12 + $0x284] sm:$0xf] }
 0x3f9   :  { %v3668_v36 = vpop.f32.mrf.mxu0  ;;  %v3717_v9 = vpop.f32.mrf.mxu1 }
 0x3fa   :  { %v7827_v48 = vadd.f32 %v3717_v9, %v3668_v36  ;;  %v6298_v36 = vor.u32 %v6951_v53, %v6295_v54  ;;  %v7065_v9 = vld [vmem:[#allocation12 + $0x234] sm:$0xf]  ;;  %v7080_v54 = vld [vmem:[#allocation12 + $0x2a4] sm:$0xf0] }
 0x3fc   :  { %4103 = vmatmul.bf16.vlgmr.msrb.gmra.mxu0 %v6278_v6  ;;  %4152 = vmatmul.bf16.vlgmr.msrb.gmra.mxu1 %v6282_v57 }
 0x3fd   :  { %4201 = vmatmul.bf16.vlgmr.msrb.gmra.mxu2 %v6278_v6  ;;  %4250 = vmatmul.bf16.vlgmr.msrb.gmra.mxu3 %v6282_v57  ;;  %v6559_v6 = vld [vmem:[#allocation12 + $0x238] sm:$0xf0]  ;;  %v7081_v57 = vld [vmem:[#allocation12 + $0x2b4] sm:$0xf] }
 0x3fe   :  { %v6562_v4 = vor.u32 %v7065_v9, %v6559_v6  ;;  %v6626_v24 = vor.u32 %v7081_v57, %v6623_v31  ;;  %v6309_v9 = vld [vmem:[#allocation3 + $0x40] sm:$0xf]  ;;  %v6955_v6 = vld [vmem:[#allocation3 + $0x44] sm:$0xf] }
 0x400   :  { %v3766_v58 = vpop.f32.mrf.mxu2  ;;  %v3815_v2 = vpop.f32.mrf.mxu3  ;;  %4682 = vmatpush.bf16.msra.mxu2 %v6562_v4  ;;  %4731 = vmatpush.bf16.msra.mxu3 %v6626_v24  ;;  %v7061_v24 = vld [vmem:[#allocation12 + $0x214] sm:$0xf] }
 0x401   :  { %v7829_v63 = vadd.f32 %v3815_v2, %v3766_v58  ;;  %v3670_v46 = vpop.f32.mrf.mxu0  ;;  %v3719_v14 = vpop.f32.mrf.mxu1 }
 0x402   :  { %v7831_v56 = vadd.f32 %v3719_v14, %v3670_v46  ;;  %v6557_v14 = vld [vmem:[#allocation12 + $0x230] sm:$0xf] }
 0x403   :  { %v6558_v49 = vor.u32 %v7066_v41, %v6557_v14 }
 0x404   :  { %4683 = vmatpush.bf16.msra.mxu2 %v6554_v15 }
 0x405   :  { %4584 = vmatpush.bf16.msra.mxu0 %v6558_v49 }
 0x408   :  { %v3768_v21 = vpop.f32.mrf.mxu2  ;;  %v3817_v3 = vpop.f32.mrf.mxu3 }
 0x409   :  { %v7833_v59 = vadd.f32 %v3817_v3, %v3768_v21  ;;  %v3673_v16 = vpop.f32.mrf.mxu0  ;;  %v3722_v19 = vpop.f32.mrf.mxu1  ;;  %4585 = vmatpush.bf16.msra.mxu0 %v6550_v25  ;;  %v6599_v25 = vld [vmem:[#allocation12 + $0x288] sm:$0xf0] }
 0x40a   :  { %v7835_v1 = vadd.f32 %v3722_v19, %v3673_v16 }
 0x40c   :  { %4108 = vmatmul.bf16.gmra.mxu0 %v6286_v12  ;;  %4157 = vmatmul.bf16.gmra.mxu1 %v6290_v51 }
 0x40d   :  { %4206 = vmatmul.bf16.gmra.mxu2 %v6286_v12  ;;  %4255 = vmatmul.bf16.gmra.mxu3 %v6290_v51  ;;  %v6302_v51 = vor.u32 %v6954_v50, %v6301_v27 }
 0x410   :  { %v3771_v38 = vpop.f32.mrf.mxu2  ;;  %v3820_v60 = vpop.f32.mrf.mxu3 }
 0x411   :  { %v7837_v20 = vadd.f32 %v3820_v60, %v3771_v38  ;;  %v3675_v10 = vpop.f32.mrf.mxu0  ;;  %v3724_v45 = vpop.f32.mrf.mxu1  ;;  %v6618_v38 = vor.u32 %v7079_v23, %v6615_v43  ;;  %v6317_v43 = vld [vmem:[#allocation3 + $0x50] sm:$0xf] }
 0x412   :  { %v7839_v11 = vadd.f32 %v3724_v45, %v3675_v10 }
 0x413   :  { %4732 = vmatpush.bf16.msra.mxu3 %v6618_v38  ;;  %v6957_v38 = vld [vmem:[#allocation3 + $0x54] sm:$0xf] }
 0x418   :  { %v3773_v28 = vpop.f32.mrf.mxu2  ;;  %v3822_v29 = vpop.f32.mrf.mxu3 }
 0x419   :  { %v7841_v30 = vadd.f32 %v3822_v29, %v3773_v28  ;;  %v3678_v62 = vpop.f32.mrf.mxu0  ;;  %v3727_v13 = vpop.f32.mrf.mxu1  ;;  %v6614_v28 = vor.u32 %v7080_v54, %v6613_v8  ;;  %v6956_v29 = vld [vmem:[#allocation3 + $0x44] sm:$0xf0]  ;;  %v6602_v54 = vor.u32 %v7075_v22, %v6599_v25 }
 0x41a   :  { %v7843_v26 = vadd.f32 %v3727_v13, %v3678_v62  ;;  %v6311_v62 = vld [vmem:[#allocation3 + $0x48] sm:$0xf0]  ;;  %v6310_v4 = vor.u32 %v6956_v29, %v6309_v9  ;;  %v7060_v9 = vld [vmem:[#allocation12 + $0x204] sm:$0xf0] }
 0x41b   :  { %4634 = vmatpush.bf16.msra.mxu1 %v6614_v28  ;;  %v6314_v31 = vor.u32 %v6955_v6, %v6311_v62  ;;  %v6597_v6 = vld [vmem:[#allocation12 + $0x280] sm:$0xf] }
 0x41c   :  { %4113 = vmatmul.bf16.gmra.mxu0 %v6294_v39  ;;  %4162 = vmatmul.bf16.gmra.mxu1 %v6298_v36 }
 0x41d   :  { %4211 = vmatmul.bf16.gmra.mxu2 %v6294_v39  ;;  %4260 = vmatmul.bf16.gmra.mxu3 %v6298_v36 }
 0x420   :  { %v3776_v18 = vpop.f32.mrf.mxu2  ;;  %v3825_v32 = vpop.f32.mrf.mxu3 }
 0x421   :  { %v7845_v52 = vadd.f32 %v3825_v32, %v3776_v18  ;;  %v3680_v58 = vpop.f32.mrf.mxu0  ;;  %v3729_v2 = vpop.f32.mrf.mxu1  ;;  %v6543_v18 = vld [vmem:[#allocation12 + $0x218] sm:$0xf0]  ;;  %v7077_v32 = vld [vmem:[#allocation12 + $0x294] sm:$0xf] }
 0x422   :  { %v7847_v46 = vadd.f32 %v3729_v2, %v3680_v58  ;;  %v6546_v58 = vor.u32 %v7061_v24, %v6543_v18  ;;  %v6607_v2 = vld [vmem:[#allocation12 + $0x298] sm:$0xf0]  ;;  %v6960_v18 = vld [vmem:[#allocation3 + $0x64] sm:$0xf0] }
 0x423   :  { %v6610_v14 = vor.u32 %v7077_v32, %v6607_v2  ;;  %v6327_v32 = vld [vmem:[#allocation3 + $0x68] sm:$0xf0] }
 0x424   :  { %4684 = vmatpush.bf16.msra.mxu2 %v6546_v58 }
 0x425   :  { %4733 = vmatpush.bf16.msra.mxu3 %v6610_v14 }
 0x428   :  { %v3778_v0 = vpop.f32.mrf.mxu2  ;;  %v3827_v21 = vpop.f32.mrf.mxu3 }
 0x429   :  { %v7849_v3 = vadd.f32 %v3827_v21, %v3778_v0  ;;  %v3683_v16 = vpop.f32.mrf.mxu0  ;;  %v3732_v19 = vpop.f32.mrf.mxu1  ;;  %v7062_v0 = vld [vmem:[#allocation12 + $0x214] sm:$0xf0]  ;;  %v6605_v21 = vld [vmem:[#allocation12 + $0x290] sm:$0xf]  ;;  %4734 = vmatpush.bf16.msra.mxu3 %v6602_v54 }
 0x42a   :  { %v7851_v12 = vadd.f32 %v3732_v19, %v3683_v16  ;;  %v6542_v16 = vor.u32 %v7062_v0, %v6541_v37  ;;  %v7078_v19 = vld [vmem:[#allocation12 + $0x294] sm:$0xf0] }
 0x42b   :  { %v6606_v27 = vor.u32 %v7078_v19, %v6605_v21 }
 0x42c   :  { %4118 = vmatmul.bf16.gmra.mxu0 %v6302_v51  ;;  %4167 = vmatmul.bf16.gmra.mxu1 %v6306_v44 }
 0x42d   :  { %4216 = vmatmul.bf16.gmra.mxu2 %v6302_v51  ;;  %4265 = vmatmul.bf16.gmra.mxu3 %v6306_v44  ;;  %v6319_v51 = vld [vmem:[#allocation3 + $0x58] sm:$0xf0] }
 0x42e   :  { %4586 = vmatpush.bf16.msra.mxu0 %v6542_v16  ;;  %4635 = vmatpush.bf16.msra.mxu1 %v6606_v27 }
 0x430   :  { %v3781_v60 = vpop.f32.mrf.mxu2  ;;  %v3830_v10 = vpop.f32.mrf.mxu3 }
 0x431   :  { %v7853_v45 = vadd.f32 %v3830_v10, %v3781_v60  ;;  %v3685_v5 = vpop.f32.mrf.mxu0  ;;  %v3734_v42 = vpop.f32.mrf.mxu1  ;;  %v6318_v10 = vor.u32 %v6958_v7, %v6317_v43 }
 0x432   :  { %v7855_v33 = vadd.f32 %v3734_v42, %v3685_v5  ;;  %v6322_v5 = vor.u32 %v6957_v38, %v6319_v51  ;;  %v7059_v42 = vld [vmem:[#allocation12 + $0x204] sm:$0xf] }
 0x433   :  { %v6538_v8 = vor.u32 %v7059_v42, %v6535_v35  ;;  %v6333_v42 = vld [vmem:[#allocation3 + $0x70] sm:$0xf]  ;;  %v6961_v35 = vld [vmem:[#allocation3 + $0x74] sm:$0xf] }
 0x435   :  { %4685 = vmatpush.bf16.msra.mxu2 %v6538_v8 }
 0x438   :  { %v3783_v13 = vpop.f32.mrf.mxu2  ;;  %v3832_v47 = vpop.f32.mrf.mxu3 }
 0x439   :  { %v7857_v53 = vadd.f32 %v3832_v47, %v3783_v13  ;;  %v3688_v39 = vpop.f32.mrf.mxu0  ;;  %v3737_v36 = vpop.f32.mrf.mxu1 }
 0x43a   :  { %v7859_v57 = vadd.f32 %v3737_v36, %v3688_v39  ;;  %v6533_v36 = vld [vmem:[#allocation12 + $0x200] sm:$0xf] }
 0x43c   :  { %4123 = vmatmul.bf16.gmra.mxu0 %v6310_v4  ;;  %4172 = vmatmul.bf16.gmra.mxu1 %v6314_v31 }
 0x43d   :  { %4221 = vmatmul.bf16.gmra.mxu2 %v6310_v4  ;;  %4270 = vmatmul.bf16.gmra.mxu3 %v6314_v31  ;;  %v6534_v4 = vor.u32 %v7060_v9, %v6533_v36  ;;  %v7076_v31 = vld [vmem:[#allocation12 + $0x284] sm:$0xf0] }
 0x43e   :  { %v6598_v24 = vor.u32 %v7076_v31, %v6597_v6  ;;  %v7044_v9 = vld [vmem:[#allocation3 + $0x14] sm:$0xf0]  ;;  %v6471_v6 = vld [vmem:[#allocation3 + $0x18] sm:$0xf0] }
 0x43f   :  { %4587 = vmatpush.bf16.msra.mxu0 %v6534_v4 }
 0x440   :  { %v3786_v41 = vpop.f32.mrf.mxu2  ;;  %v3835_v17 = vpop.f32.mrf.mxu3  ;;  %4636 = vmatpush.bf16.msra.mxu1 %v6598_v24 }
 0x441   :  { %v7861_v49 = vadd.f32 %v3835_v17, %v3786_v41  ;;  %v3690_v61 = vpop.f32.mrf.mxu0  ;;  %v3739_v34 = vpop.f32.mrf.mxu1 }
 0x442   :  { %v7863_v50 = vadd.f32 %v3739_v34, %v3690_v61  ;;  %v6325_v61 = vld [vmem:[#allocation3 + $0x60] sm:$0xf]  ;;  %v6959_v34 = vld [vmem:[#allocation3 + $0x64] sm:$0xf] }
 0x443   :  { %v6326_v0 = vor.u32 %v6960_v18, %v6325_v61  ;;  %v6330_v21 = vor.u32 %v6959_v34, %v6327_v32 }
 0x448   :  { %v3788_v44 = vpop.f32.mrf.mxu2  ;;  %v3837_v40 = vpop.f32.mrf.mxu3 }
 0x449   :  { %v7865_v55 = vadd.f32 %v3837_v40, %v3788_v44  ;;  %v3693_v23 = vpop.f32.mrf.mxu0  ;;  %v3742_v15 = vpop.f32.mrf.mxu1  ;;  %v6962_v40 = vld [vmem:[#allocation3 + $0x74] sm:$0xf0] }
 0x44a   :  { %v7867_v60 = vadd.f32 %v3742_v15, %v3693_v23  ;;  %v6335_v23 = vld [vmem:[#allocation3 + $0x78] sm:$0xf0]  ;;  %v6334_v8 = vor.u32 %v6962_v40, %v6333_v42 }
 0x44b   :  { %v6338_v25 = vor.u32 %v6961_v35, %v6335_v23 }
 0x44c   :  { %4128 = vmatmul.bf16.gmra.mxu0 %v6318_v10  ;;  %4177 = vmatmul.bf16.gmra.mxu1 %v6322_v5 }
 0x44d   :  { %4226 = vmatmul.bf16.gmra.mxu2 %v6318_v10  ;;  %4275 = vmatmul.bf16.gmra.mxu3 %v6322_v5 }
 0x450   :  { %v3791_v28 = vpop.f32.mrf.mxu2  ;;  %v3840_v29 = vpop.f32.mrf.mxu3 }
 0x451   :  { %v7869_v62 = vadd.f32 %v3840_v29, %v3791_v28  ;;  %v3695_v13 = vpop.f32.mrf.mxu0  ;;  %v3744_v47 = vpop.f32.mrf.mxu1 }
 0x452   :  { %v7871_v39 = vadd.f32 %v3744_v47, %v3695_v13 }
 0x458   :  { %v3793_v58 = vpop.f32.mrf.mxu2  ;;  %v3842_v2 = vpop.f32.mrf.mxu3 }
 0x459   :  { %v7873_v14 = vadd.f32 %v3842_v2, %v3793_v58  ;;  %v3698_v41 = vpop.f32.mrf.mxu0  ;;  %v3747_v17 = vpop.f32.mrf.mxu1  ;;  %v6469_v58 = vld [vmem:[#allocation3 + $0x10] sm:$0xf]  ;;  %v7043_v2 = vld [vmem:[#allocation3 + $0x14] sm:$0xf] }
 0x45a   :  { %v7875_v37 = vadd.f32 %v3747_v17, %v3698_v41  ;;  %v6470_v17 = vor.u32 %v7044_v9, %v6469_v58  ;;  %v6474_v61 = vor.u32 %v7043_v2, %v6471_v6  ;;  %v6487_v58 = vld [vmem:[#allocation3 + $0x38] sm:$0xf0] }
 0x45c   :  { %4133 = vmatmul.bf16.gmra.mxu0 %v6326_v0  ;;  %4182 = vmatmul.bf16.gmra.mxu1 %v6330_v21 }
 0x45d   :  { %4231 = vmatmul.bf16.gmra.mxu2 %v6326_v0  ;;  %4280 = vmatmul.bf16.gmra.mxu3 %v6330_v21 }
 0x460   :  { %v3796_v16 = vpop.f32.mrf.mxu2  ;;  %v3845_v19 = vpop.f32.mrf.mxu3 }
 0x461   :  { %v7877_v27 = vadd.f32 %v3845_v19, %v3796_v16  ;;  %v3700_v7 = vpop.f32.mrf.mxu0  ;;  %v3749_v51 = vpop.f32.mrf.mxu1 }
 0x462   :  { %v7879_v44 = vadd.f32 %v3749_v51, %v3700_v7 }
 0x468   :  { %v3798_v15 = vpop.f32.mrf.mxu2  ;;  %v3847_v43 = vpop.f32.mrf.mxu3 }
 0x469   :  { %v7881_v38 = vadd.f32 %v3847_v43, %v3798_v15  ;;  %v3703_v10 = vpop.f32.mrf.mxu0  ;;  %v3752_v5 = vpop.f32.mrf.mxu1  ;;  %v6479_v15 = vld [vmem:[#allocation3 + $0x28] sm:$0xf0] }
 0x46a   :  { %v7883_v22 = vadd.f32 %v3752_v5, %v3703_v10 }
 0x46c   :  { %4138 = vmatmul.bf16.gmra.mxu0 %v6334_v8  ;;  %4187 = vmatmul.bf16.gmra.mxu1 %v6338_v25 }
 0x46d   :  { %4236 = vmatmul.bf16.gmra.mxu2 %v6334_v8  ;;  %4285 = vmatmul.bf16.gmra.mxu3 %v6338_v25  ;;  %v6477_v8 = vld [vmem:[#allocation3 + $0x20] sm:$0xf]  ;;  %v7045_v25 = vld [vmem:[#allocation3 + $0x24] sm:$0xf] }
 0x470   :  { %v3801_v54 = vpop.f32.mrf.mxu2  ;;  %v3850_v28 = vpop.f32.mrf.mxu3 }
 0x471   :  { %v7885_v29 = vadd.f32 %v3850_v28, %v3801_v54  ;;  %v3705_v13 = vpop.f32.mrf.mxu0  ;;  %v3754_v47 = vpop.f32.mrf.mxu1  ;;  %v6482_v28 = vor.u32 %v7045_v25, %v6479_v15 }
 0x472   :  { %v7887_v36 = vadd.f32 %v3754_v47, %v3705_v13 }
 0x478   :  { %v3803_v4 = vpop.f32.mrf.mxu2  ;;  %v3852_v31 = vpop.f32.mrf.mxu3 }
 0x479   :  { %v7889_v24 = vadd.f32 %v3852_v31, %v3803_v4  ;;  %v4104_v18 = vpop.f32.mrf.mxu0  ;;  %v4153_v32 = vpop.f32.mrf.mxu1 }
 0x47a   :  { %v4105_v41 = vadd.f32 %v4104_v18, %v7827_v48  ;;  %v7046_v48 = vld [vmem:[#allocation3 + $0x24] sm:$0xf0] }
 0x47b   :  { %v6478_v54 = vor.u32 %v7046_v48, %v6477_v8  ;;  %v6495_v8 = vld [vmem:[#allocation3 + $0x48] sm:$0xf0] }
 0x47c   :  { %v7892_v34 = vadd.f32 %v4153_v32, %v4105_v41  ;;  %4588 = vmatmul.bf16.vlgmr.msra.gmra.mxu0 %v6470_v17  ;;  %4637 = vmatmul.bf16.vlgmr.msra.gmra.mxu1 %v6474_v61  ;;  %v7048_v32 = vld [vmem:[#allocation3 + $0x34] sm:$0xf0] }
 0x47d   :  { %4686 = vmatmul.bf16.vlgmr.msra.gmra.mxu2 %v6470_v17  ;;  %4735 = vmatmul.bf16.vlgmr.msra.gmra.mxu3 %v6474_v61 }
 0x480   :  { %v4202_v0 = vpop.f32.mrf.mxu2  ;;  %v4251_v21 = vpop.f32.mrf.mxu3 }
 0x481   :  { %v4203_v16 = vadd.f32 %v4202_v0, %v7829_v63  ;;  %v4106_v19 = vpop.f32.mrf.mxu0  ;;  %v4155_v7 = vpop.f32.mrf.mxu1 }
 0x482   :  { %v4107_v51 = vadd.f32 %v4106_v19, %v7831_v56 }
 0x483   :  { %v7896_v40 = vadd.f32 %v4251_v21, %v4203_v16  ;;  %v6485_v21 = vld [vmem:[#allocation3 + $0x30] sm:$0xf]  ;;  %v7047_v16 = vld [vmem:[#allocation3 + $0x34] sm:$0xf] }
 0x484   :  { %v7898_v23 = vadd.f32 %v4155_v7, %v4107_v51  ;;  %v6486_v19 = vor.u32 %v7048_v32, %v6485_v21  ;;  %v6490_v7 = vor.u32 %v7047_v16, %v6487_v58  ;;  %v6503_v21 = vld [vmem:[#allocation3 + $0x58] sm:$0xf0] }
 0x488   :  { %v4204_v43 = vpop.f32.mrf.mxu2  ;;  %v4253_v10 = vpop.f32.mrf.mxu3 }
 0x489   :  { %v4205_v5 = vadd.f32 %v4204_v43, %v7833_v59  ;;  %v4109_v42 = vpop.f32.mrf.mxu0  ;;  %v4158_v35 = vpop.f32.mrf.mxu1 }
 0x48a   :  { %v4110_v63 = vadd.f32 %v4109_v42, %v7835_v1 }
 0x48b   :  { %v7902_v13 = vadd.f32 %v4253_v10, %v4205_v5 }
 0x48c   :  { %v7904_v56 = vadd.f32 %v4158_v35, %v4110_v63  ;;  %4593 = vmatmul.bf16.gmra.mxu0 %v6478_v54  ;;  %4642 = vmatmul.bf16.gmra.mxu1 %v6482_v28  ;;  %v7050_v35 = vld [vmem:[#allocation3 + $0x44] sm:$0xf0] }
 0x48d   :  { %4691 = vmatmul.bf16.gmra.mxu2 %v6478_v54  ;;  %4740 = vmatmul.bf16.gmra.mxu3 %v6482_v28 }
 0x490   :  { %v4207_v47 = vpop.f32.mrf.mxu2  ;;  %v4256_v9 = vpop.f32.mrf.mxu3 }
 0x491   :  { %v4208_v59 = vadd.f32 %v4207_v47, %v7837_v20  ;;  %v4111_v6 = vpop.f32.mrf.mxu0  ;;  %v4160_v4 = vpop.f32.mrf.mxu1 }
 0x492   :  { %v4112_v31 = vadd.f32 %v4111_v6, %v7839_v11 }
 0x493   :  { %v7908_v18 = vadd.f32 %v4256_v9, %v4208_v59  ;;  %v6493_v9 = vld [vmem:[#allocation3 + $0x40] sm:$0xf]  ;;  %v7049_v59 = vld [vmem:[#allocation3 + $0x44] sm:$0xf] }
 0x494   :  { %v7910_v1 = vadd.f32 %v4160_v4, %v4112_v31  ;;  %v6494_v6 = vor.u32 %v7050_v35, %v6493_v9  ;;  %v6498_v4 = vor.u32 %v7049_v59, %v6495_v8  ;;  %v6511_v9 = vld [vmem:[#allocation3 + $0x68] sm:$0xf0] }
 0x498   :  { %v4209_v2 = vpop.f32.mrf.mxu2  ;;  %v4258_v41 = vpop.f32.mrf.mxu3 }
 0x499   :  { %v4210_v17 = vadd.f32 %v4209_v2, %v7841_v30  ;;  %v4114_v61 = vpop.f32.mrf.mxu0  ;;  %v4163_v0 = vpop.f32.mrf.mxu1 }
 0x49a   :  { %v4115_v20 = vadd.f32 %v4114_v61, %v7843_v26 }
 0x49b   :  { %v7914_v51 = vadd.f32 %v4258_v41, %v4210_v17 }
 0x49c   :  { %v7916_v11 = vadd.f32 %v4163_v0, %v4115_v20  ;;  %4598 = vmatmul.bf16.gmra.mxu0 %v6486_v19  ;;  %4647 = vmatmul.bf16.gmra.mxu1 %v6490_v7  ;;  %v7052_v0 = vld [vmem:[#allocation3 + $0x54] sm:$0xf0] }
 0x49d   :  { %4696 = vmatmul.bf16.gmra.mxu2 %v6486_v19  ;;  %4745 = vmatmul.bf16.gmra.mxu3 %v6490_v7 }
 0x4a0   :  { %v4212_v48 = vpop.f32.mrf.mxu2  ;;  %v4261_v15 = vpop.f32.mrf.mxu3 }
 0x4a1   :  { %v4213_v30 = vadd.f32 %v4212_v48, %v7845_v52  ;;  %v4116_v43 = vpop.f32.mrf.mxu0  ;;  %v4165_v10 = vpop.f32.mrf.mxu1 }
 0x4a2   :  { %v4117_v5 = vadd.f32 %v4116_v43, %v7847_v46 }
 0x4a3   :  { %v7920_v42 = vadd.f32 %v4261_v15, %v4213_v30  ;;  %v6501_v15 = vld [vmem:[#allocation3 + $0x50] sm:$0xf]  ;;  %v7051_v30 = vld [vmem:[#allocation3 + $0x54] sm:$0xf] }
 0x4a4   :  { %v7922_v26 = vadd.f32 %v4165_v10, %v4117_v5  ;;  %v6502_v43 = vor.u32 %v7052_v0, %v6501_v15  ;;  %v6506_v10 = vor.u32 %v7051_v30, %v6503_v21  ;;  %v6519_v15 = vld [vmem:[#allocation3 + $0x78] sm:$0xf0] }
 0x4a8   :  { %v4214_v25 = vpop.f32.mrf.mxu2  ;;  %v4263_v63 = vpop.f32.mrf.mxu3 }
 0x4a9   :  { %v4215_v54 = vadd.f32 %v4214_v25, %v7849_v3  ;;  %v4119_v28 = vpop.f32.mrf.mxu0  ;;  %v4168_v47 = vpop.f32.mrf.mxu1 }
 0x4aa   :  { %v4120_v52 = vadd.f32 %v4119_v28, %v7851_v12 }
 0x4ab   :  { %v7926_v31 = vadd.f32 %v4263_v63, %v4215_v54 }
 0x4ac   :  { %v7928_v46 = vadd.f32 %v4168_v47, %v4120_v52  ;;  %4603 = vmatmul.bf16.gmra.mxu0 %v6494_v6  ;;  %4652 = vmatmul.bf16.gmra.mxu1 %v6498_v4  ;;  %v7054_v47 = vld [vmem:[#allocation3 + $0x64] sm:$0xf0] }
 0x4ad   :  { %4701 = vmatmul.bf16.gmra.mxu2 %v6494_v6  ;;  %4750 = vmatmul.bf16.gmra.mxu3 %v6498_v4 }
 0x4b0   :  { %v4217_v32 = vpop.f32.mrf.mxu2  ;;  %v4266_v58 = vpop.f32.mrf.mxu3 }
 0x4b1   :  { %v4218_v3 = vadd.f32 %v4217_v32, %v7853_v45  ;;  %v4121_v2 = vpop.f32.mrf.mxu0  ;;  %v4170_v41 = vpop.f32.mrf.mxu1 }
 0x4b2   :  { %v4122_v17 = vadd.f32 %v4121_v2, %v7855_v33 }
 0x4b3   :  { %v7932_v61 = vadd.f32 %v4266_v58, %v4218_v3  ;;  %v6509_v58 = vld [vmem:[#allocation3 + $0x60] sm:$0xf]  ;;  %v7053_v3 = vld [vmem:[#allocation3 + $0x64] sm:$0xf] }
 0x4b4   :  { %v7934_v12 = vadd.f32 %v4170_v41, %v4122_v17  ;;  %v6510_v2 = vor.u32 %v7054_v47, %v6509_v58  ;;  %v6514_v41 = vor.u32 %v7053_v3, %v6511_v9  ;;  %v6525_v58 = vld [vmem:[#allocation3 + $0x80] sm:$0xf]  ;;  %v7057_v3 = vld [vmem:[#allocation3 + $0x84] sm:$0xf] }
 0x4b8   :  { %v4219_v16 = vpop.f32.mrf.mxu2  ;;  %v4268_v20 = vpop.f32.mrf.mxu3 }
 0x4b9   :  { %v4220_v19 = vadd.f32 %v4219_v16, %v7857_v53  ;;  %v4124_v7 = vpop.f32.mrf.mxu0  ;;  %v4173_v48 = vpop.f32.mrf.mxu1 }
 0x4ba   :  { %v4125_v45 = vadd.f32 %v4124_v7, %v7859_v57 }
 0x4bb   :  { %v7938_v5 = vadd.f32 %v4268_v20, %v4220_v19 }
 0x4bc   :  { %v7940_v33 = vadd.f32 %v4173_v48, %v4125_v45  ;;  %4608 = vmatmul.bf16.gmra.mxu0 %v6502_v43  ;;  %4657 = vmatmul.bf16.gmra.mxu1 %v6506_v10  ;;  %v7056_v48 = vld [vmem:[#allocation3 + $0x74] sm:$0xf0] }
 0x4bd   :  { %4706 = vmatmul.bf16.gmra.mxu2 %v6502_v43  ;;  %4755 = vmatmul.bf16.gmra.mxu3 %v6506_v10 }
 0x4c0   :  { %v4222_v35 = vpop.f32.mrf.mxu2  ;;  %v4271_v8 = vpop.f32.mrf.mxu3 }
 0x4c1   :  { %v4223_v53 = vadd.f32 %v4222_v35, %v7861_v49  ;;  %v4126_v25 = vpop.f32.mrf.mxu0  ;;  %v4175_v63 = vpop.f32.mrf.mxu1 }
 0x4c2   :  { %v4127_v54 = vadd.f32 %v4126_v25, %v7863_v50 }
 0x4c3   :  { %v7944_v28 = vadd.f32 %v4271_v8, %v4223_v53  ;;  %v6517_v8 = vld [vmem:[#allocation3 + $0x70] sm:$0xf]  ;;  %v7055_v53 = vld [vmem:[#allocation3 + $0x74] sm:$0xf] }
 0x4c4   :  { %v7946_v57 = vadd.f32 %v4175_v63, %v4127_v54  ;;  %v6518_v25 = vor.u32 %v7056_v48, %v6517_v8  ;;  %v6522_v63 = vor.u32 %v7055_v53, %v6519_v15 }
 0x4c8   :  { %v4224_v59 = vpop.f32.mrf.mxu2  ;;  %v4273_v52 = vpop.f32.mrf.mxu3 }
 0x4c9   :  { %v4225_v6 = vadd.f32 %v4224_v59, %v7865_v55  ;;  %v4129_v4 = vpop.f32.mrf.mxu0  ;;  %v4178_v32 = vpop.f32.mrf.mxu1 }
 0x4ca   :  { %v4130_v49 = vadd.f32 %v4129_v4, %v7867_v60 }
 0x4cb   :  { %v7950_v17 = vadd.f32 %v4273_v52, %v4225_v6 }
 0x4cc   :  { %v7952_v50 = vadd.f32 %v4178_v32, %v4130_v49  ;;  %4613 = vmatmul.bf16.gmra.mxu0 %v6510_v2  ;;  %4662 = vmatmul.bf16.gmra.mxu1 %v6514_v41  ;;  %v7058_v32 = vld [vmem:[#allocation3 + $0x84] sm:$0xf0]  ;;  %v6527_v49 = vld [vmem:[#allocation3 + $0x88] sm:$0xf0] }
 0x4cd   :  { %4711 = vmatmul.bf16.gmra.mxu2 %v6510_v2  ;;  %4760 = vmatmul.bf16.gmra.mxu3 %v6514_v41 }
 0x4d0   :  { %v4227_v0 = vpop.f32.mrf.mxu2  ;;  %v4276_v21 = vpop.f32.mrf.mxu3 }
 0x4d1   :  { %v4228_v55 = vadd.f32 %v4227_v0, %v7869_v62  ;;  %v4131_v16 = vpop.f32.mrf.mxu0  ;;  %v4180_v20 = vpop.f32.mrf.mxu1 }
 0x4d2   :  { %v4132_v19 = vadd.f32 %v4131_v16, %v7871_v39  ;;  %v6526_v16 = vor.u32 %v7058_v32, %v6525_v58 }
 0x4d3   :  { %v7956_v7 = vadd.f32 %v4276_v21, %v4228_v55 }
 0x4d4   :  { %v7958_v60 = vadd.f32 %v4180_v20, %v4132_v19  ;;  %v6530_v20 = vor.u32 %v7057_v3, %v6527_v49 }
 0x4d8   :  { %v4229_v30 = vpop.f32.mrf.mxu2  ;;  %v4278_v45 = vpop.f32.mrf.mxu3 }
 0x4d9   :  { %v4230_v43 = vadd.f32 %v4229_v30, %v7873_v14  ;;  %v4134_v10 = vpop.f32.mrf.mxu0  ;;  %v4183_v35 = vpop.f32.mrf.mxu1 }
 0x4da   :  { %v4135_v62 = vadd.f32 %v4134_v10, %v7875_v37 }
 0x4db   :  { %v7962_v54 = vadd.f32 %v4278_v45, %v4230_v43 }
 0x4dc   :  { %v7964_v39 = vadd.f32 %v4183_v35, %v4135_v62  ;;  %4618 = vmatmul.bf16.gmra.mxu0 %v6518_v25  ;;  %4667 = vmatmul.bf16.gmra.mxu1 %v6522_v63  ;;  %v4808_v35 = vld [vmem:[%s8067_s6] sm:$0x3]  ;;  %s7262_s6 = smov [#allocation13]  }
 0x4dd   :  { %4716 = vmatmul.bf16.gmra.mxu2 %v6518_v25  ;;  %4765 = vmatmul.bf16.gmra.mxu3 %v6522_v63  ;;  %v7994_v58 = vperm.slane %v4808_v35, 1  ;;  %s4914_s26 = sshll.u32 %s7262_s6, 4  ;;  %s4915_s26 = int_to_ptr.vmem [resolvable:$true] %s4914_s26 }
 0x4e0   :  { %v4232_v47 = vpop.f32.mrf.mxu2  ;;  %v4281_v9 = vpop.f32.mrf.mxu3 }
 0x4e1   :  { %v4233_v14 = vadd.f32 %v4232_v47, %v7877_v27  ;;  %v4136_v59 = vpop.f32.mrf.mxu0  ;;  %v4185_v52 = vpop.f32.mrf.mxu1 }
 0x4e2   :  { %v4137_v6 = vadd.f32 %v4136_v59, %v7879_v44 }
 0x4e3   :  { %v7968_v4 = vadd.f32 %v4281_v9, %v4233_v14 }
 0x4e4   :  { %v7970_v37 = vadd.f32 %v4185_v52, %v4137_v6 }
 0x4e8   :  { %v4234_v2 = vpop.f32.mrf.mxu2  ;;  %v4283_v41 = vpop.f32.mrf.mxu3 }
 0x4e9   :  { %v4235_v0 = vadd.f32 %v4234_v2, %v7881_v38  ;;  %v4139_v21 = vpop.f32.mrf.mxu0  ;;  %v4188_v55 = vpop.f32.mrf.mxu1 }
 0x4ea   :  { %v4140_v27 = vadd.f32 %v4139_v21, %v7883_v22 }
 0x4eb   :  { %v7974_v19 = vadd.f32 %v4283_v41, %v4235_v0 }
 0x4ec   :  { %v7976_v44 = vadd.f32 %v4188_v55, %v4140_v27  ;;  %4623 = vmatmul.bf16.gmra.mxu0 %v6526_v16  ;;  %4672 = vmatmul.bf16.gmra.mxu1 %v6530_v20 }
 0x4ed   :  { %4721 = vmatmul.bf16.gmra.mxu2 %v6526_v16  ;;  %4770 = vmatmul.bf16.gmra.mxu3 %v6530_v20 }
 0x4f0   :  { %v4237_v48 = vpop.f32.mrf.mxu2  ;;  %v4286_v15 = vpop.f32.mrf.mxu3 }
 0x4f1   :  { %v4238_v30 = vadd.f32 %v4237_v48, %v7885_v29  ;;  %v4141_v45 = vpop.f32.mrf.mxu0  ;;  %v4190_v38 = vpop.f32.mrf.mxu1  ;;  %v7988_v29 = vperm.slane %v4808_v35, 0 }
 0x4f2   :  { %v4142_v43 = vadd.f32 %v4141_v45, %v7887_v36 }
 0x4f3   :  { %v7980_v10 = vadd.f32 %v4286_v15, %v4238_v30 }
 0x4f4   :  { %v7982_v22 = vadd.f32 %v4190_v38, %v4142_v43 }
 0x4f8   :  { %v4239_v8 = vpop.f32.mrf.mxu2  ;;  %v4288_v53 = vpop.f32.mrf.mxu3 }
 0x4f9   :  { %v4240_v62 = vadd.f32 %v4239_v8, %v7889_v24  ;;  %v4589_v25 = vpop.f32.mrf.mxu0  ;;  %v4638_v63 = vpop.f32.mrf.mxu1 }
 0x4fa   :  { %v4639_v47 = vadd.f32 %v4638_v63, %v4589_v25 }
 0x4fb   :  { %v7990_v9 = vadd.f32 %v4288_v53, %v4240_v62 }
 0x4fc   :  { %v4776_v36 = vadd.f32 %v4639_v47, %v7892_v34 }
 0x4fe   :  { %v4814_v14 = vadd.f32 %v7988_v29, %v4776_v36 }
 0x500   :  { %v4846_v59 = vmax.f32 %v4814_v14, 0.0  ;;  %v4687_v52 = vpop.f32.mrf.mxu2  ;;  %v4736_v6 = vpop.f32.mrf.mxu3 }
 0x501   :  { %v4737_v32 = vadd.f32 %v4736_v6, %v4687_v52  ;;  %v4591_v3 = vpop.f32.mrf.mxu0  ;;  %v4640_v49 = vpop.f32.mrf.mxu1 }
 0x502   :  { %4878 = vst [vmem:[#allocation13] sm:$0xff] %v4846_v59  ;;  %v4641_v24 = vadd.f32 %v4640_v49, %v4591_v3 }
 0x503   :  { %v4777_v2 = vadd.f32 %v4737_v32, %v7896_v40 }
 0x504   :  { %v4778_v41 = vadd.f32 %v4641_v24, %v7898_v23 }
 0x505   :  { %v4815_v0 = vadd.f32 %v7994_v58, %v4777_v2 }
 0x506   :  { %v4816_v34 = vadd.f32 %v7988_v29, %v4778_v41 }
 0x507   :  { %v4847_v21 = vmax.f32 %v4815_v0, 0.0 }
 0x508   :  { %v4848_v55 = vmax.f32 %v4816_v34, 0.0  ;;  %v4689_v27 = vpop.f32.mrf.mxu2  ;;  %v4738_v16 = vpop.f32.mrf.mxu3 }
 0x509   :  { %4879 = vst [vmem:[#allocation13 + $0x8] sm:$0xff] %v4847_v21  ;;  %v4739_v20 = vadd.f32 %v4738_v16, %v4689_v27  ;;  %v4594_v48 = vpop.f32.mrf.mxu0  ;;  %v4643_v15 = vpop.f32.mrf.mxu1 }
 0x50a   :  { %4880 = vst [vmem:[#allocation13 + $0x10] sm:$0xff] %v4848_v55  ;;  %v4644_v30 = vadd.f32 %v4643_v15, %v4594_v48 }
 0x50b   :  { %v4779_v45 = vadd.f32 %v4739_v20, %v7902_v13 }
 0x50c   :  { %v4780_v40 = vadd.f32 %v4644_v30, %v7904_v56 }
 0x50d   :  { %v4817_v23 = vadd.f32 %v7994_v58, %v4779_v45 }
 0x50e   :  { %v4818_v38 = vadd.f32 %v7988_v29, %v4780_v40 }
 0x50f   :  { %v4849_v43 = vmax.f32 %v4817_v23, 0.0 }
 0x510   :  { %v4850_v35 = vmax.f32 %v4818_v38, 0.0  ;;  %v4692_v8 = vpop.f32.mrf.mxu2  ;;  %v4741_v53 = vpop.f32.mrf.mxu3 }
 0x511   :  { %4881 = vst [vmem:[#allocation13 + $0x18] sm:$0xff] %v4849_v43  ;;  %v4742_v62 = vadd.f32 %v4741_v53, %v4692_v8  ;;  %v4596_v25 = vpop.f32.mrf.mxu0  ;;  %v4645_v63 = vpop.f32.mrf.mxu1 }
 0x512   :  { %4882 = vst [vmem:[#allocation13 + $0x20] sm:$0xff] %v4850_v35  ;;  %v4646_v47 = vadd.f32 %v4645_v63, %v4596_v25 }
 0x513   :  { %v4781_v36 = vadd.f32 %v4742_v62, %v7908_v18 }
 0x514   :  { %v4782_v13 = vadd.f32 %v4646_v47, %v7910_v1 }
 0x515   :  { %v4819_v56 = vadd.f32 %v7994_v58, %v4781_v36 }
 0x516   :  { %v4820_v14 = vadd.f32 %v7988_v29, %v4782_v13 }
 0x517   :  { %v4851_v59 = vmax.f32 %v4819_v56, 0.0 }
 0x518   :  { %v4852_v52 = vmax.f32 %v4820_v14, 0.0  ;;  %v4694_v6 = vpop.f32.mrf.mxu2  ;;  %v4743_v32 = vpop.f32.mrf.mxu3 }
 0x519   :  { %4883 = vst [vmem:[#allocation13 + $0x28] sm:$0xff] %v4851_v59  ;;  %v4744_v3 = vadd.f32 %v4743_v32, %v4694_v6  ;;  %v4599_v49 = vpop.f32.mrf.mxu0  ;;  %v4648_v24 = vpop.f32.mrf.mxu1 }
 0x51a   :  { %4884 = vst [vmem:[#allocation13 + $0x30] sm:$0xff] %v4852_v52  ;;  %v4649_v2 = vadd.f32 %v4648_v24, %v4599_v49 }
 0x51b   :  { %v4783_v41 = vadd.f32 %v4744_v3, %v7914_v51 }
 0x51c   :  { %v4784_v18 = vadd.f32 %v4649_v2, %v7916_v11 }
 0x51d   :  { %v4821_v1 = vadd.f32 %v7994_v58, %v4783_v41 }
 0x51e   :  { %v4822_v0 = vadd.f32 %v7988_v29, %v4784_v18 }
 0x51f   :  { %v4853_v34 = vmax.f32 %v4821_v1, 0.0 }
 0x520   :  { %v4854_v21 = vmax.f32 %v4822_v0, 0.0  ;;  %v4697_v55 = vpop.f32.mrf.mxu2  ;;  %v4746_v27 = vpop.f32.mrf.mxu3 }
 0x521   :  { %4885 = vst [vmem:[#allocation13 + $0x38] sm:$0xff] %v4853_v34  ;;  %v4747_v16 = vadd.f32 %v4746_v27, %v4697_v55  ;;  %v4601_v20 = vpop.f32.mrf.mxu0  ;;  %v4650_v48 = vpop.f32.mrf.mxu1 }
 0x522   :  { %4886 = vst [vmem:[#allocation13 + $0x40] sm:$0xff] %v4854_v21  ;;  %v4651_v15 = vadd.f32 %v4650_v48, %v4601_v20 }
 0x523   :  { %v4785_v30 = vadd.f32 %v4747_v16, %v7920_v42 }
 0x524   :  { %v4786_v51 = vadd.f32 %v4651_v15, %v7922_v26 }
 0x525   :  { %v4823_v11 = vadd.f32 %v7994_v58, %v4785_v30 }
 0x526   :  { %v4824_v45 = vadd.f32 %v7988_v29, %v4786_v51 }
 0x527   :  { %v4855_v40 = vmax.f32 %v4823_v11, 0.0 }
 0x528   :  { %v4856_v23 = vmax.f32 %v4824_v45, 0.0  ;;  %v4699_v38 = vpop.f32.mrf.mxu2  ;;  %v4748_v43 = vpop.f32.mrf.mxu3 }
 0x529   :  { %4887 = vst [vmem:[#allocation13 + $0x48] sm:$0xff] %v4855_v40  ;;  %v4749_v35 = vadd.f32 %v4748_v43, %v4699_v38  ;;  %v4604_v8 = vpop.f32.mrf.mxu0  ;;  %v4653_v53 = vpop.f32.mrf.mxu1 }
 0x52a   :  { %4888 = vst [vmem:[#allocation13 + $0x50] sm:$0xff] %v4856_v23  ;;  %v4654_v62 = vadd.f32 %v4653_v53, %v4604_v8 }
 0x52b   :  { %v4787_v25 = vadd.f32 %v4749_v35, %v7926_v31 }
 0x52c   :  { %v4788_v42 = vadd.f32 %v4654_v62, %v7928_v46 }
 0x52d   :  { %v4825_v26 = vadd.f32 %v7994_v58, %v4787_v25 }
 0x52e   :  { %v4826_v63 = vadd.f32 %v7988_v29, %v4788_v42 }
 0x52f   :  { %v4857_v47 = vmax.f32 %v4825_v26, 0.0 }
 0x530   :  { %v4858_v36 = vmax.f32 %v4826_v63, 0.0  ;;  %v4702_v13 = vpop.f32.mrf.mxu2  ;;  %v4751_v56 = vpop.f32.mrf.mxu3 }
 0x531   :  { %4889 = vst [vmem:[#allocation13 + $0x58] sm:$0xff] %v4857_v47  ;;  %v4752_v14 = vadd.f32 %v4751_v56, %v4702_v13  ;;  %v4606_v59 = vpop.f32.mrf.mxu0  ;;  %v4655_v52 = vpop.f32.mrf.mxu1 }
 0x532   :  { %4890 = vst [vmem:[#allocation13 + $0x60] sm:$0xff] %v4858_v36  ;;  %v4656_v6 = vadd.f32 %v4655_v52, %v4606_v59 }
 0x533   :  { %v4789_v32 = vadd.f32 %v4752_v14, %v7932_v61 }
 0x534   :  { %v4790_v31 = vadd.f32 %v4656_v6, %v7934_v12 }
 0x535   :  { %v4827_v46 = vadd.f32 %v7994_v58, %v4789_v32 }
 0x536   :  { %v4828_v3 = vadd.f32 %v7988_v29, %v4790_v31 }
 0x537   :  { %v4859_v49 = vmax.f32 %v4827_v46, 0.0 }
 0x538   :  { %v4860_v24 = vmax.f32 %v4828_v3, 0.0  ;;  %v4704_v2 = vpop.f32.mrf.mxu2  ;;  %v4753_v41 = vpop.f32.mrf.mxu3 }
 0x539   :  { %4891 = vst [vmem:[#allocation13 + $0x68] sm:$0xff] %v4859_v49  ;;  %v4754_v18 = vadd.f32 %v4753_v41, %v4704_v2  ;;  %v4609_v1 = vpop.f32.mrf.mxu0  ;;  %v4658_v0 = vpop.f32.mrf.mxu1 }
 0x53a   :  { %4892 = vst [vmem:[#allocation13 + $0x70] sm:$0xff] %v4860_v24  ;;  %v4659_v34 = vadd.f32 %v4658_v0, %v4609_v1 }
 0x53b   :  { %v4791_v21 = vadd.f32 %v4754_v18, %v7938_v5 }
 0x53c   :  { %v4792_v61 = vadd.f32 %v4659_v34, %v7940_v33 }
 0x53d   :  { %v4829_v12 = vadd.f32 %v7994_v58, %v4791_v21 }
 0x53e   :  { %v4830_v55 = vadd.f32 %v7988_v29, %v4792_v61 }
 0x53f   :  { %v4861_v27 = vmax.f32 %v4829_v12, 0.0 }
 0x540   :  { %v4862_v16 = vmax.f32 %v4830_v55, 0.0  ;;  %v4707_v20 = vpop.f32.mrf.mxu2  ;;  %v4756_v48 = vpop.f32.mrf.mxu3 }
 0x541   :  { %4893 = vst [vmem:[#allocation13 + $0x78] sm:$0xff] %v4861_v27  ;;  %v4757_v15 = vadd.f32 %v4756_v48, %v4707_v20  ;;  %v4611_v30 = vpop.f32.mrf.mxu0  ;;  %v4660_v51 = vpop.f32.mrf.mxu1 }
 0x542   :  { %4894 = vst [vmem:[#allocation13 + $0x80] sm:$0xff] %v4862_v16  ;;  %v4661_v11 = vadd.f32 %v4660_v51, %v4611_v30 }
 0x543   :  { %v4793_v45 = vadd.f32 %v4757_v15, %v7944_v28 }
 0x544   :  { %v4794_v5 = vadd.f32 %v4661_v11, %v7946_v57 }
 0x545   :  { %v4831_v33 = vadd.f32 %v7994_v58, %v4793_v45 }
 0x546   :  { %v4832_v40 = vadd.f32 %v7988_v29, %v4794_v5 }
 0x547   :  { %v4863_v23 = vmax.f32 %v4831_v33, 0.0 }
 0x548   :  { %v4864_v38 = vmax.f32 %v4832_v40, 0.0  ;;  %v4709_v43 = vpop.f32.mrf.mxu2  ;;  %v4758_v35 = vpop.f32.mrf.mxu3 }
 0x549   :  { %4895 = vst [vmem:[#allocation13 + $0x88] sm:$0xff] %v4863_v23  ;;  %v4759_v8 = vadd.f32 %v4758_v35, %v4709_v43  ;;  %v4614_v53 = vpop.f32.mrf.mxu0  ;;  %v4663_v62 = vpop.f32.mrf.mxu1 }
 0x54a   :  { %4896 = vst [vmem:[#allocation13 + $0x90] sm:$0xff] %v4864_v38  ;;  %v4664_v25 = vadd.f32 %v4663_v62, %v4614_v53 }
 0x54b   :  { %v4795_v42 = vadd.f32 %v4759_v8, %v7950_v17 }
 0x54c   :  { %v4796_v28 = vadd.f32 %v4664_v25, %v7952_v50 }
 0x54d   :  { %v4833_v57 = vadd.f32 %v7994_v58, %v4795_v42 }
 0x54e   :  { %v4834_v26 = vadd.f32 %v7988_v29, %v4796_v28 }
 0x54f   :  { %v4865_v63 = vmax.f32 %v4833_v57, 0.0 }
 0x550   :  { %v4866_v47 = vmax.f32 %v4834_v26, 0.0  ;;  %v4712_v36 = vpop.f32.mrf.mxu2  ;;  %v4761_v13 = vpop.f32.mrf.mxu3 }
 0x551   :  { %4897 = vst [vmem:[#allocation13 + $0x98] sm:$0xff] %v4865_v63  ;;  %v4762_v56 = vadd.f32 %v4761_v13, %v4712_v36  ;;  %v4616_v14 = vpop.f32.mrf.mxu0  ;;  %v4665_v59 = vpop.f32.mrf.mxu1 }
 0x552   :  { %4898 = vst [vmem:[#allocation13 + $0xa0] sm:$0xff] %v4866_v47  ;;  %v4666_v52 = vadd.f32 %v4665_v59, %v4616_v14 }
 0x553   :  { %v4797_v6 = vadd.f32 %v4762_v56, %v7956_v7 }
 0x554   :  { %v4798_v17 = vadd.f32 %v4666_v52, %v7958_v60 }
 0x555   :  { %v4835_v50 = vadd.f32 %v7994_v58, %v4797_v6 }
 0x556   :  { %v4836_v32 = vadd.f32 %v7988_v29, %v4798_v17 }
 0x557   :  { %v4867_v31 = vmax.f32 %v4835_v50, 0.0 }
 0x558   :  { %v4868_v46 = vmax.f32 %v4836_v32, 0.0  ;;  %v4714_v3 = vpop.f32.mrf.mxu2  ;;  %v4763_v49 = vpop.f32.mrf.mxu3 }
 0x559   :  { %4899 = vst [vmem:[#allocation13 + $0xa8] sm:$0xff] %v4867_v31  ;;  %v4764_v24 = vadd.f32 %v4763_v49, %v4714_v3  ;;  %v4619_v2 = vpop.f32.mrf.mxu0  ;;  %v4668_v41 = vpop.f32.mrf.mxu1 }
 0x55a   :  { %4900 = vst [vmem:[#allocation13 + $0xb0] sm:$0xff] %v4868_v46  ;;  %v4669_v18 = vadd.f32 %v4668_v41, %v4619_v2 }
 0x55b   :  { %v4799_v1 = vadd.f32 %v4764_v24, %v7962_v54 }
 0x55c   :  { %v4800_v7 = vadd.f32 %v4669_v18, %v7964_v39 }
 0x55d   :  { %v4837_v60 = vadd.f32 %v7994_v58, %v4799_v1 }
 0x55e   :  { %v4838_v0 = vadd.f32 %v7988_v29, %v4800_v7 }
 0x55f   :  { %v4869_v34 = vmax.f32 %v4837_v60, 0.0 }
 0x560   :  { %v4870_v21 = vmax.f32 %v4838_v0, 0.0  ;;  %v4717_v61 = vpop.f32.mrf.mxu2  ;;  %v4766_v12 = vpop.f32.mrf.mxu3 }
 0x561   :  { %4901 = vst [vmem:[#allocation13 + $0xb8] sm:$0xff] %v4869_v34  ;;  %v4767_v55 = vadd.f32 %v4766_v12, %v4717_v61  ;;  %v4621_v27 = vpop.f32.mrf.mxu0  ;;  %v4670_v16 = vpop.f32.mrf.mxu1 }
 0x562   :  { %4902 = vst [vmem:[#allocation13 + $0xc0] sm:$0xff] %v4870_v21  ;;  %v4671_v20 = vadd.f32 %v4670_v16, %v4621_v27 }
 0x563   :  { %v4801_v48 = vadd.f32 %v4767_v55, %v7968_v4 }
 0x564   :  { %v4802_v54 = vadd.f32 %v4671_v20, %v7970_v37 }
 0x565   :  { %v4839_v39 = vadd.f32 %v7994_v58, %v4801_v48 }
 0x566   :  { %v4840_v15 = vadd.f32 %v7988_v29, %v4802_v54 }
 0x567   :  { %v4871_v30 = vmax.f32 %v4839_v39, 0.0 }
 0x568   :  { %v4872_v51 = vmax.f32 %v4840_v15, 0.0  ;;  %v4719_v11 = vpop.f32.mrf.mxu2  ;;  %v4768_v45 = vpop.f32.mrf.mxu3 }
 0x569   :  { %4903 = vst [vmem:[#allocation13 + $0xc8] sm:$0xff] %v4871_v30  ;;  %v4769_v5 = vadd.f32 %v4768_v45, %v4719_v11  ;;  %v4624_v33 = vpop.f32.mrf.mxu0  ;;  %v4673_v40 = vpop.f32.mrf.mxu1 }
 0x56a   :  { %4904 = vst [vmem:[#allocation13 + $0xd0] sm:$0xff] %v4872_v51  ;;  %v4674_v23 = vadd.f32 %v4673_v40, %v4624_v33 }
 0x56b   :  { %v4803_v38 = vadd.f32 %v4769_v5, %v7974_v19 }
 0x56c   :  { %v4804_v4 = vadd.f32 %v4674_v23, %v7976_v44 }
 0x56d   :  { %v4841_v37 = vadd.f32 %v7994_v58, %v4803_v38 }
 0x56e   :  { %v4842_v43 = vadd.f32 %v7988_v29, %v4804_v4 }
 0x56f   :  { %v4873_v35 = vmax.f32 %v4841_v37, 0.0 }
 0x570   :  { %v4874_v8 = vmax.f32 %v4842_v43, 0.0  ;;  %v4722_v53 = vpop.f32.mrf.mxu2  ;;  %v4771_v62 = vpop.f32.mrf.mxu3 }
 0x571   :  { %4905 = vst [vmem:[#allocation13 + $0xd8] sm:$0xff] %v4873_v35  ;;  %v4772_v25 = vadd.f32 %v4771_v62, %v4722_v53  ;;  %v4626_v42 = vpop.f32.mrf.mxu0  ;;  %v4675_v28 = vpop.f32.mrf.mxu1 }
 0x572   :  { %4906 = vst [vmem:[#allocation13 + $0xe0] sm:$0xff] %v4874_v8  ;;  %v4676_v57 = vadd.f32 %v4675_v28, %v4626_v42 }
 0x573   :  { %v4805_v26 = vadd.f32 %v4772_v25, %v7980_v10 }
 0x574   :  { %v4806_v19 = vadd.f32 %v4676_v57, %v7982_v22 }
 0x575   :  { %v4843_v44 = vadd.f32 %v7994_v58, %v4805_v26 }
 0x576   :  { %v4844_v63 = vadd.f32 %v7988_v29, %v4806_v19 }
 0x577   :  { %v4875_v47 = vmax.f32 %v4843_v44, 0.0 }
 0x578   :  { %v4876_v36 = vmax.f32 %v4844_v63, 0.0  ;;  %v4724_v13 = vpop.f32.mrf.mxu2  ;;  %v4773_v56 = vpop.f32.mrf.mxu3 }
 0x579   :  { %4907 = vst [vmem:[#allocation13 + $0xe8] sm:$0xff] %v4875_v47  ;;  %v4774_v14 = vadd.f32 %v4773_v56, %v4724_v13 }
 0x57a   :  { %4908 = vst [vmem:[#allocation13 + $0xf0] sm:$0xff] %v4876_v36 }
 0x57b   :  { %v4807_v59 = vadd.f32 %v4774_v14, %v7990_v9 }
 0x57d   :  { %v4845_v10 = vadd.f32 %v7994_v58, %v4807_v59 }
 0x57f   :  { %v4877_v22 = vmax.f32 %v4845_v10, 0.0 }
 0x581   :  { %4909 = vst [vmem:[#allocation13 + $0xf8] sm:$0xff] %v4877_v22 }
 0x582   :  { %4922 = dma.vmem_to_hbm [thread:$0]  %s4915_s26, 4096, %s4917_s29, [#allocation6], %s7263_s30, %s7263_s30, %s7264_s8  }
 0x583   :  { %7252 = dma.done.wait [#allocation6], 4096  }
 0x584   :  { %7253 = vsyncadd [#allocation6], 4294963200 }
 0x585   :  { %4927 = vsyncpa [#allocation5], 1 }
 0x586   :  { %4928 = vsyncpa [#allocation8], 1 }
 0x587   :  { %4929 = vsyncpa [#allocation11], 1 }
 0x588   :  { %4930 = vsyncpa [#allocation6], 1 }

</bundles_post_ra>
